<compile_context>
chip_gen: v7x
topology: tpu7x:2x2x1
jax: 0.10.0
libtpu: 0.0.40
codegen_flags: <defaults>
</compile_context>

<pallas_src>
import functools

import jax
import jax.numpy as jnp
from jax import lax
from jax.experimental import pallas as pl
from jax.experimental.pallas import tpu as pltpu

EPS = 1e-5


def _chip_config():
    """Per-generation knobs: (vmem_limit_bytes, use_gram_for_sweep3, tm_target)."""
    kind = ""
    try:
        kind = jax.devices()[0].device_kind.lower()
    except Exception:
        pass
    is_v5 = "v5" in kind
    big_vmem = ("v4" in kind) or ("v5" in kind) or ("v6" in kind)   # 128 MiB parts
    vmem_limit = (96 << 20) if big_vmem else (48 << 20)             # v7x: 64 MiB phys
    # v5e's 4x128^2 MXU already bounds sweep B; keep Σz3² on the (slack) VPU
    # there instead of adding +12.5% MXU work via the Gram trick.
    use_gram3 = not is_v5
    return vmem_limit, use_gram3, 2048


VMEM_LIMIT, USE_GRAM3, TM_TARGET = _chip_config()


def _choose_tm(n, target=TM_TARGET):
    """Row tile (multiple of 8).  N is padded up to a multiple of the tile."""
    if n <= target:
        return ((n + 7) // 8) * 8
    best_tm, best_pad = None, None
    tm = target
    while tm >= 128:
        pad = (-n) % tm
        if pad * 8 <= n:          # <= 12.5% wasted (masked) rows: take biggest tile
            return tm
        if best_pad is None or pad < best_pad:
            best_tm, best_pad = tm, pad
        tm //= 2
    return best_tm


def _conv1_bn_relu(x, w1f, sh1, D):
    """a1 = relu(x @ (w1*sc1) + sh1).  Tiny contraction depth D stays off the
    MXU (D unrolled VPU broadcast-FMAs) unless D is reasonably large."""
    if D >= 16:
        z = jnp.dot(x, w1f, preferred_element_type=jnp.float32)
    else:
        z = x[:, 0:1] * w1f[0:1, :]
        for d in range(1, D):
            z = z + x[:, d:d + 1] * w1f[d:d + 1, :]
    return jnp.maximum(z + sh1, 0.0)


# ----------------------------------------------------------------------------
# Sweep kernels over the points axis (grid = (B, N_pad // TM)).
# ----------------------------------------------------------------------------
def make_sweepA_kernel(D, TM, n_valid, need_mask):
    """Accumulate Σ a1 and Gram(a1) per batch (→ bn2 stats in the wrapper)."""
    def kernel(x_ref, w1f_ref, sh1_ref, sa1_ref, g1_ref):
        @pl.when(pl.program_id(1) == 0)
        def _():
            sa1_ref[...] = jnp.zeros_like(sa1_ref)
            g1_ref[...] = jnp.zeros_like(g1_ref)

        a1 = _conv1_bn_relu(x_ref[...], w1f_ref[...], sh1_ref[...], D)  # (TM,64) f32
        if need_mask:
            rows = lax.broadcasted_iota(jnp.int32, (TM, 1), 0) + pl.program_id(1) * TM
            a1 = jnp.where(rows < n_valid, a1, 0.0)

        sa1_ref[...] += jnp.sum(a1, axis=0, keepdims=True)
        a1b = a1.astype(jnp.bfloat16)
        g1_ref[...] += lax.dot_general(                      # a1ᵀ a1 on the MXU
            a1b, a1b, (((0,), (0,)), ((), ())),
            preferred_element_type=jnp.float32)
    return kernel


def make_sweepB_kernel(D, TM, n_valid, need_mask, use_gram):
    """Accumulate Σ a2, second moment of z3 (Gram or direct), and per-cloud
    running max/min of the pre-BN conv3 output z3."""
    def kernel(x_ref, w1f_ref, sh1_ref, w2f_ref, sh2_ref, w3_ref,
               sa2_ref, q_ref, mx_ref, mn_ref):
        @pl.when(pl.program_id(1) == 0)
        def _():
            sa2_ref[...] = jnp.zeros_like(sa2_ref)
            q_ref[...] = jnp.zeros_like(q_ref)
            mx_ref[...] = jnp.full(mx_ref.shape, -jnp.inf, dtype=mx_ref.dtype)
            mn_ref[...] = jnp.full(mn_ref.shape, jnp.inf, dtype=mn_ref.dtype)

        a1 = _conv1_bn_relu(x_ref[...], w1f_ref[...], sh1_ref[...], D)
        z2 = jnp.dot(a1.astype(jnp.bfloat16), w2f_ref[...],
                     preferred_element_type=jnp.float32)              # (TM,128)
        a2 = jnp.maximum(z2 + sh2_ref[...], 0.0)

        if need_mask:
            rows = lax.broadcasted_iota(jnp.int32, (TM, 1), 0) + pl.program_id(1) * TM
            valid = rows < n_valid
            a2 = jnp.where(valid, a2, 0.0)

        a2b = a2.astype(jnp.bfloat16)
        z3 = jnp.dot(a2b, w3_ref[...], preferred_element_type=jnp.float32)  # (TM,1024)

        sa2_ref[...] += jnp.sum(a2, axis=0, keepdims=True)
        if use_gram:
            q_ref[...] += lax.dot_general(                    # a2ᵀ a2 on the MXU
                a2b, a2b, (((0,), (0,)), ((), ())),
                preferred_element_type=jnp.float32)
        else:
            q_ref[...] += jnp.sum(z3 * z3, axis=0, keepdims=True)

        if need_mask:
            z3mx = jnp.where(valid, z3, -jnp.inf)
            z3mn = jnp.where(valid, z3, jnp.inf)
        else:
            z3mx = z3mn = z3
        mx_ref[...] = jnp.maximum(mx_ref[...], jnp.max(z3mx, axis=0, keepdims=True))
        mn_ref[...] = jnp.minimum(mn_ref[...], jnp.min(z3mn, axis=0, keepdims=True))
    return kernel


# ----------------------------------------------------------------------------
# Small FC tail kernel (latency-bound, gridless).
# ----------------------------------------------------------------------------
def _bn_relu_rows(h, gamma, beta):
    # Training-mode BatchNorm1d over the row (batch) axis + ReLU.
    # NOTE: single-pass variance (E[x²]-E[x]²) — documented f32 tolerance.
    n = h.shape[0]
    mean = jnp.sum(h, axis=0, keepdims=True) / n
    var = jnp.maximum(jnp.sum(h * h, axis=0, keepdims=True) / n - mean * mean, 0.0)
    scale = gamma * lax.rsqrt(var + EPS)
    return jnp.maximum(h * scale + (beta - mean * scale), 0.0)


def tail_kernel(zmax_ref, zmin_ref, sc3_ref, sh3_ref,
                wl1_ref, g4_ref, be4_ref,
                wl2_ref, g5_ref, be5_ref,
                wl3_ref, bl3_ref, out_ref):
    sc3 = sc3_ref[...]
    # max_N relu(bn3(z)) == relu(bn3(max_N z)) if scale >= 0 else relu(bn3(min_N z))
    z = jnp.where(sc3 >= 0.0, zmax_ref[...], zmin_ref[...])
    pooled = jnp.maximum(z * sc3 + sh3_ref[...], 0.0)                  # (B, 1024)

    f = jnp.dot(pooled.astype(jnp.bfloat16), wl1_ref[...],
                preferred_element_type=jnp.float32)
    f = _bn_relu_rows(f, g4_ref[...], be4_ref[...])                    # (B, 512)
    f = jnp.dot(f.astype(jnp.bfloat16), wl2_ref[...],
                preferred_element_type=jnp.float32)
    f = _bn_relu_rows(f, g5_ref[...], be5_ref[...])                    # (B, 256)
    out_ref[...] = jnp.dot(f, wl3_ref[...],
                           preferred_element_type=jnp.float32) + bl3_ref[...]


# ----------------------------------------------------------------------------
# Parameters (PyTorch-style init; BN-cancelled biases omitted — exact).
# ----------------------------------------------------------------------------
def init_params(key, D):
    def lin_w(k, cin, cout):
        bound = 1.0 / (cin ** 0.5)
        return jax.random.uniform(k, (cin, cout), jnp.float32, -bound, bound)

    def lin_wb(k, cin, cout):
        kw, kb = jax.random.split(k)
        bound = 1.0 / (cin ** 0.5)
        w = jax.random.uniform(kw, (cin, cout), jnp.float32, -bound, bound)
        b = jax.random.uniform(kb, (1, cout), jnp.float32, -bound, bound)
        return w, b

    def bn(c):
        return jnp.ones((1, c), jnp.float32), jnp.zeros((1, c), jnp.float32)

    k1, k2, k3, k4, k5, k6 = jax.random.split(key, 6)
    w1 = lin_w(k1, D, 64)
    w2 = lin_w(k2, 64, 128)
    w3 = lin_w(k3, 128, 1024)
    wl1 = lin_w(k4, 1024, 512)
    wl2 = lin_w(k5, 512, 256)
    wl3, bl3 = lin_wb(k6, 256, D * D)
    g1, be1 = bn(64)
    g2, be2 = bn(128)
    g3, be3 = bn(1024)
    g4, be4 = bn(512)
    g5, be5 = bn(256)

    # Fold identity residual into the last bias; lane-pad the D*D output
    # columns up to a multiple of 128 (avoids masked partial stores).
    bl3 = bl3 + jnp.eye(D, dtype=jnp.float32).reshape(1, D * D)
    outp = ((D * D + 127) // 128) * 128
    wl3p = jnp.zeros((256, outp), jnp.float32).at[:, :D * D].set(wl3)
    bl3p = jnp.zeros((1, outp), jnp.float32).at[:, :D * D].set(bl3)

    return (w1, g1, be1, w2, g2, be2, w3, g3, be3,
            wl1, g4, be4, wl2, g5, be5, wl3p, bl3p)


def _stats_to_affine(s, ss, count, gamma, beta):
    mean = s / count
    var = jnp.maximum(ss / count - mean * mean, 0.0)   # biased var (training-mode BN)
    scale = gamma * lax.rsqrt(var + EPS)               # (1, C)
    shift = beta - mean * scale                        # (1, C)
    return scale, shift


# ----------------------------------------------------------------------------
# Forward wrapper.
# ----------------------------------------------------------------------------
@functools.partial(jax.jit, static_argnames=("D",))
def tnet_forward(x, params, D):
    (w1, g1, be1, w2, g2, be2, w3, g3, be3,
     wl1, g4, be4, wl2, g5, be5, wl3p, bl3p) = params

    B, N, _ = x.shape
    x = x.astype(jnp.float32)
    count = float(B * N)

    TM = _choose_tm(N)
    N_pad = ((N + TM - 1) // TM) * TM
    NT = N_pad // TM
    need_mask = N_pad != N
    xp = jnp.pad(x, ((0, 0), (0, N_pad - N), (0, 0))) if need_mask else x

    # --- conv1 pre-BN batch stats: analytic (no sweep, tiny XLA einsum) -----
    x_sum = jnp.sum(x, axis=(0, 1))                       # (D,)
    x_gram = jnp.einsum('bnd,bne->de', x, x)              # (D, D)
    s1 = x_sum @ w1                                       # (64,)
    ss1 = jnp.sum((x_gram @ w1) * w1, axis=0)             # (64,)
    sc1, sh1 = _stats_to_affine(s1, ss1, count, g1, be1)  # (1,64) each
    w1f = w1 * sc1                                        # fold bn1 scale (f32)

    grid = (B, NT)
    cparams = pltpu.CompilerParams(
        dimension_semantics=("parallel", "arbitrary"),
        vmem_limit_bytes=VMEM_LIMIT)

    x_spec = pl.BlockSpec((None, TM, D), lambda b, t: (b, t, 0))

    def const_spec(shape):
        return pl.BlockSpec(shape, lambda b, t: (0,) * len(shape))

    def acc_spec(r, c):   # per-batch accumulator: array (B, r, c), block (r, c)
        return pl.BlockSpec((None, r, c), lambda b, t: (b, 0, 0))

    # --- sweep A: Σa1 + Gram(a1) → bn2 stats --------------------------------
    sa1, g1acc = pl.pallas_call(
        make_sweepA_kernel(D, TM, N, need_mask),
        grid=grid,
        in_specs=[x_spec, const_spec((D, 64)), const_spec((1, 64))],
        out_specs=[acc_spec(1, 64), acc_spec(64, 64)],
        out_shape=[jax.ShapeDtypeStruct((B, 1, 64), jnp.float32),
                   jax.ShapeDtypeStruct((B, 64, 64), jnp.float32)],
        compiler_params=cparams,
    )(xp, w1f, sh1)

    sa1_tot = jnp.sum(sa1[:, 0, :], axis=0)               # (64,)
    g1_tot = jnp.sum(g1acc, axis=0)                       # (64, 64)
    s2 = sa1_tot @ w2                                     # linearity: Σz2
    ss2 = jnp.sum((g1_tot @ w2) * w2, axis=0)             # Σz2² via Gram
    sc2, sh2 = _stats_to_affine(s2, ss2, count, g2, be2)
    w2f = (w2 * sc2).astype(jnp.bfloat16)                 # fold bn2 scale (f32→bf16)
    w3b = w3.astype(jnp.bfloat16)

    # --- sweep B: Σa2, z3 second moment, per-cloud max/min of z3 ------------
    if USE_GRAM3:
        q_shape = jax.ShapeDtypeStruct((B, 128, 128), jnp.float32)
        q_spec = acc_spec(128, 128)
    else:
        q_shape = jax.ShapeDtypeStruct((B, 1, 1024), jnp.float32)
        q_spec = acc_spec(1, 1024)

    sa2, q, zmax, zmin = pl.pallas_call(
        make_sweepB_kernel(D, TM, N, need_mask, USE_GRAM3),
        grid=grid,
        in_specs=[x_spec, const_spec((D, 64)), const_spec((1, 64)),
                  const_spec((64, 128)), const_spec((1, 128)),
                  const_spec((128, 1024))],
        out_specs=[acc_spec(1, 128), q_spec,
                   acc_spec(1, 1024), acc_spec(1, 1024)],
        out_shape=[jax.ShapeDtypeStruct((B, 1, 128), jnp.float32), q_shape,
                   jax.ShapeDtypeStruct((B, 1, 1024), jnp.float32),
                   jax.ShapeDtypeStruct((B, 1, 1024), jnp.float32)],
        compiler_params=cparams,
    )(xp, w1f, sh1, w2f, sh2, w3b)

    sa2_tot = jnp.sum(sa2[:, 0, :], axis=0)               # (128,)
    s3 = sa2_tot @ w3                                     # linearity: Σz3
    if USE_GRAM3:
        ss3 = jnp.sum((jnp.sum(q, axis=0) @ w3) * w3, axis=0)
    else:
        ss3 = jnp.sum(q[:, 0, :], axis=0)
    sc3, sh3 = _stats_to_affine(s3, ss3, count, g3, be3)

    zmax = zmax[:, 0, :]
    zmin = zmin[:, 0, :]

    # --- FC tail (small, gridless) ------------------------------------------
    vmem = pl.BlockSpec(memory_space=pltpu.MemorySpace.VMEM)
    outp = wl3p.shape[1]
    out = pl.pallas_call(
        tail_kernel,
        out_shape=jax.ShapeDtypeStruct((B, outp), jnp.float32),
        in_specs=[vmem] * 12,
        out_specs=vmem,
        compiler_params=pltpu.CompilerParams(vmem_limit_bytes=VMEM_LIMIT),
    )(zmax, zmin, sc3, sh3,
      wl1.astype(jnp.bfloat16), g4, be4,
      wl2.astype(jnp.bfloat16), g5, be5,
      wl3p, bl3p)

    return out[:, :D * D].reshape(B, D, D)   # x.view(-1, dim, dim)


if __name__ == "__main__":
    D = 4          # self.dim
    B = 2          # batch
    N = 16         # points per cloud

    key = jax.random.PRNGKey(0)
    kx, kp = jax.random.split(key)
    x = jax.random.normal(kx, (B, N, D), dtype=jnp.float32)
    params = init_params(kp, D)

    out = tnet_forward(x, params, D)
    out = jax.block_until_ready(out)
    assert out.shape == (B, D, D), out.shape
    print("KERNEL_OK")
</pallas_src>

<mosaic_0001>
module attributes {stable_mosaic.version = 11 : i64} {
  func.func @kernel(%arg0: i32, %arg1: i32, %arg2: memref<1x16x4xf32, #tpu.memory_space<vmem>>, %arg3: memref<4x64xf32, #tpu.memory_space<vmem>>, %arg4: memref<1x64xf32, #tpu.memory_space<vmem>>, %arg5: memref<1x1x64xf32, #tpu.memory_space<vmem>>, %arg6: memref<1x64x64xf32, #tpu.memory_space<vmem>>) attributes {dimension_semantics = [#tpu.dimension_semantics<parallel>, #tpu.dimension_semantics<arbitrary>], iteration_bounds = array<i64: 2, 1>, scalar_prefetch = 0 : i64, scratch_operands = 0 : i64, tpu.core_type = #tpu.core_type<tc>, window_params = [{transform_indices = @transform_0, window_bounds = array<i64: 1, 16, 4>}, {pipeline_mode = #tpu.pipeline_mode<synchronous>, transform_indices = @transform_1, window_bounds = array<i64: 4, 64>}, {pipeline_mode = #tpu.pipeline_mode<synchronous>, transform_indices = @transform_2, window_bounds = array<i64: 1, 64>}, {transform_indices = @transform_3, window_bounds = array<i64: 1, 1, 64>}, {transform_indices = @transform_4, window_bounds = array<i64: 1, 64, 64>}]} {
    %c0_i32 = arith.constant 0 : i32
    %0 = arith.cmpi eq, %arg1, %c0_i32 : i32
    %1 = arith.extui %0 : i1 to i32
    %c0_i32_0 = arith.constant 0 : i32
    %2 = arith.cmpi ne, %1, %c0_i32_0 : i32
    scf.if %2 {
      %cst_21 = arith.constant 0.000000e+00 : f32
      %50 = vector.broadcast %cst_21 : f32 to vector<1x64xf32>
      %c0_22 = arith.constant 0 : index
      %c0_23 = arith.constant 0 : index
      %c0_24 = arith.constant 0 : index
      %51 = vector.load %arg5[%c0_22, %c0_23, %c0_24] : memref<1x1x64xf32, #tpu.memory_space<vmem>>, vector<1x1x64xf32>
      %52 = vector.shape_cast %51 : vector<1x1x64xf32> to vector<1x64xf32>
      %53 = vector.shape_cast %50 : vector<1x64xf32> to vector<1x1x64xf32>
      tpu.vector_store %arg5[%c0_22, %c0_23, %c0_24], %53 {strides = array<i32>} : memref<1x1x64xf32, #tpu.memory_space<vmem>>, vector<1x1x64xf32>,
      %cst_25 = arith.constant 0.000000e+00 : f32
      %54 = vector.broadcast %cst_25 : f32 to vector<64x64xf32>
      %c0_26 = arith.constant 0 : index
      %c0_27 = arith.constant 0 : index
      %c0_28 = arith.constant 0 : index
      %55 = vector.load %arg6[%c0_26, %c0_27, %c0_28] : memref<1x64x64xf32, #tpu.memory_space<vmem>>, vector<1x64x64xf32>
      %56 = vector.shape_cast %55 : vector<1x64x64xf32> to vector<64x64xf32>
      %57 = vector.shape_cast %54 : vector<64x64xf32> to vector<1x64x64xf32>
      tpu.vector_store %arg6[%c0_26, %c0_27, %c0_28], %57 {strides = array<i32>} : memref<1x64x64xf32, #tpu.memory_space<vmem>>, vector<1x64x64xf32>,
    } else {
    }
    %c0 = arith.constant 0 : index
    %c0_1 = arith.constant 0 : index
    %c0_2 = arith.constant 0 : index
    %3 = vector.load %arg2[%c0, %c0_1, %c0_2] : memref<1x16x4xf32, #tpu.memory_space<vmem>>, vector<1x16x4xf32>
    %4 = vector.shape_cast %3 : vector<1x16x4xf32> to vector<16x4xf32>
    %c0_3 = arith.constant 0 : index
    %c0_4 = arith.constant 0 : index
    %5 = vector.load %arg3[%c0_3, %c0_4] : memref<4x64xf32, #tpu.memory_space<vmem>>, vector<4x64xf32>
    %c0_5 = arith.constant 0 : index
    %c0_6 = arith.constant 0 : index
    %6 = vector.load %arg4[%c0_5, %c0_6] : memref<1x64xf32, #tpu.memory_space<vmem>>, vector<1x64xf32>
    %7 = vector.extract_strided_slice %4 {offsets = [0, 0], sizes = [16, 1], strides = [1, 1]} : vector<16x4xf32> to vector<16x1xf32>
    %8 = vector.extract_strided_slice %5 {offsets = [0, 0], sizes = [1, 64], strides = [1, 1]} : vector<4x64xf32> to vector<1x64xf32>
    %9 = vector.broadcast %7 : vector<16x1xf32> to vector<16x64xf32>
    %10 = vector.broadcast %8 : vector<1x64xf32> to vector<16x64xf32>
    %11 = arith.mulf %9, %10 : vector<16x64xf32>
    %12 = vector.extract_strided_slice %4 {offsets = [0, 1], sizes = [16, 1], strides = [1, 1]} : vector<16x4xf32> to vector<16x1xf32>
    %13 = vector.extract_strided_slice %5 {offsets = [1, 0], sizes = [1, 64], strides = [1, 1]} : vector<4x64xf32> to vector<1x64xf32>
    %14 = vector.broadcast %12 : vector<16x1xf32> to vector<16x64xf32>
    %15 = vector.broadcast %13 : vector<1x64xf32> to vector<16x64xf32>
    %16 = arith.mulf %14, %15 : vector<16x64xf32>
    %17 = arith.addf %11, %16 : vector<16x64xf32>
    %18 = vector.extract_strided_slice %4 {offsets = [0, 2], sizes = [16, 1], strides = [1, 1]} : vector<16x4xf32> to vector<16x1xf32>
    %19 = vector.extract_strided_slice %5 {offsets = [2, 0], sizes = [1, 64], strides = [1, 1]} : vector<4x64xf32> to vector<1x64xf32>
    %20 = vector.broadcast %18 : vector<16x1xf32> to vector<16x64xf32>
    %21 = vector.broadcast %19 : vector<1x64xf32> to vector<16x64xf32>
    %22 = arith.mulf %20, %21 : vector<16x64xf32>
    %23 = arith.addf %17, %22 : vector<16x64xf32>
    %24 = vector.extract_strided_slice %4 {offsets = [0, 3], sizes = [16, 1], strides = [1, 1]} : vector<16x4xf32> to vector<16x1xf32>
    %25 = vector.extract_strided_slice %5 {offsets = [3, 0], sizes = [1, 64], strides = [1, 1]} : vector<4x64xf32> to vector<1x64xf32>
    %26 = vector.broadcast %24 : vector<16x1xf32> to vector<16x64xf32>
    %27 = vector.broadcast %25 : vector<1x64xf32> to vector<16x64xf32>
    %28 = arith.mulf %26, %27 : vector<16x64xf32>
    %29 = arith.addf %23, %28 : vector<16x64xf32>
    %30 = vector.broadcast %6 : vector<1x64xf32> to vector<16x64xf32>
    %31 = arith.addf %29, %30 : vector<16x64xf32>
    %cst = arith.constant 0.000000e+00 : f32
    %32 = vector.broadcast %cst : f32 to vector<16x64xf32>
    %33 = arith.maximumf %31, %32 : vector<16x64xf32>
    %c0_7 = arith.constant 0 : index
    %c0_8 = arith.constant 0 : index
    %c0_9 = arith.constant 0 : index
    %34 = vector.load %arg5[%c0_7, %c0_8, %c0_9] : memref<1x1x64xf32, #tpu.memory_space<vmem>>, vector<1x1x64xf32>
    %35 = vector.shape_cast %34 : vector<1x1x64xf32> to vector<1x64xf32>
    %cst_10 = arith.constant dense<0.000000e+00> : vector<64xf32>
    %36 = vector.multi_reduction <add>, %33, %cst_10 [0] : vector<16x64xf32> to vector<64xf32>
    %37 = vector.shape_cast %36 : vector<64xf32> to vector<1x64xf32>
    %38 = arith.addf %35, %37 : vector<1x64xf32>
    %c0_11 = arith.constant 0 : index
    %c0_12 = arith.constant 0 : index
    %c0_13 = arith.constant 0 : index
    %39 = vector.load %arg5[%c0_11, %c0_12, %c0_13] : memref<1x1x64xf32, #tpu.memory_space<vmem>>, vector<1x1x64xf32>
    %40 = vector.shape_cast %39 : vector<1x1x64xf32> to vector<1x64xf32>
    %41 = vector.shape_cast %38 : vector<1x64xf32> to vector<1x1x64xf32>
    tpu.vector_store %arg5[%c0_11, %c0_12, %c0_13], %41 {strides = array<i32>} : memref<1x1x64xf32, #tpu.memory_space<vmem>>, vector<1x1x64xf32>,
    %42 = arith.truncf %33 : vector<16x64xf32> to vector<16x64xbf16>
    %c0_14 = arith.constant 0 : index
    %c0_15 = arith.constant 0 : index
    %c0_16 = arith.constant 0 : index
    %43 = vector.load %arg6[%c0_14, %c0_15, %c0_16] : memref<1x64x64xf32, #tpu.memory_space<vmem>>, vector<1x64x64xf32>
    %44 = vector.shape_cast %43 : vector<1x64x64xf32> to vector<64x64xf32>
    %cst_17 = arith.constant dense<0.000000e+00> : vector<64x64xf32>
    %45 = tpu.matmul %42, %42, %cst_17 {dimension_numbers = #tpu.dot_dimension_numbers<[0], [0], [1], [1], [0, 1, 1, 1], [], []>} : vector<16x64xbf16>, vector<16x64xbf16>, vector<64x64xf32> -> vector<64x64xf32>
    %46 = arith.addf %44, %45 : vector<64x64xf32>
    %c0_18 = arith.constant 0 : index
    %c0_19 = arith.constant 0 : index
    %c0_20 = arith.constant 0 : index
    %47 = vector.load %arg6[%c0_18, %c0_19, %c0_20] : memref<1x64x64xf32, #tpu.memory_space<vmem>>, vector<1x64x64xf32>
    %48 = vector.shape_cast %47 : vector<1x64x64xf32> to vector<64x64xf32>
    %49 = vector.shape_cast %46 : vector<64x64xf32> to vector<1x64x64xf32>
    tpu.vector_store %arg6[%c0_18, %c0_19, %c0_20], %49 {strides = array<i32>} : memref<1x64x64xf32, #tpu.memory_space<vmem>>, vector<1x64x64xf32>,
    return
  }
  func.func @transform_0(%arg0: i32, %arg1: i32) -> (i32, i32, i32) {
    %c0_i32 = arith.constant 0 : i32
    %c0_i32_0 = arith.constant 0 : i32
    return %arg0, %arg1, %c0_i32 : i32, i32, i32
  }
  func.func @transform_1(%arg0: i32, %arg1: i32) -> (i32, i32) {
    %c0_i32 = arith.constant 0 : i32
    %c0_i32_0 = arith.constant 0 : i32
    %c0_i32_1 = arith.constant 0 : i32
    return %c0_i32, %c0_i32_0 : i32, i32
  }
  func.func @transform_2(%arg0: i32, %arg1: i32) -> (i32, i32) {
    %c0_i32 = arith.constant 0 : i32
    %c0_i32_0 = arith.constant 0 : i32
    %c0_i32_1 = arith.constant 0 : i32
    return %c0_i32, %c0_i32_0 : i32, i32
  }
  func.func @transform_3(%arg0: i32, %arg1: i32) -> (i32, i32, i32) {
    %c0_i32 = arith.constant 0 : i32
    %c0_i32_0 = arith.constant 0 : i32
    %c0_i32_1 = arith.constant 0 : i32
    return %arg0, %c0_i32, %c0_i32_0 : i32, i32, i32
  }
  func.func @transform_4(%arg0: i32, %arg1: i32) -> (i32, i32, i32) {
    %c0_i32 = arith.constant 0 : i32
    %c0_i32_0 = arith.constant 0 : i32
    %c0_i32_1 = arith.constant 0 : i32
    return %arg0, %c0_i32, %c0_i32_0 : i32, i32, i32
  }
}

module attributes {stable_mosaic.version = 11 : i64} {
  func.func @kernel(%arg0: i32, %arg1: i32, %arg2: memref<1x16x4xf32, #tpu.memory_space<vmem>>, %arg3: memref<4x64xf32, #tpu.memory_space<vmem>>, %arg4: memref<1x64xf32, #tpu.memory_space<vmem>>, %arg5: memref<64x128xbf16, #tpu.memory_space<vmem>>, %arg6: memref<1x128xf32, #tpu.memory_space<vmem>>, %arg7: memref<128x1024xbf16, #tpu.memory_space<vmem>>, %arg8: memref<1x1x128xf32, #tpu.memory_space<vmem>>, %arg9: memref<1x128x128xf32, #tpu.memory_space<vmem>>, %arg10: memref<1x1x1024xf32, #tpu.memory_space<vmem>>, %arg11: memref<1x1x1024xf32, #tpu.memory_space<vmem>>) attributes {dimension_semantics = [#tpu.dimension_semantics<parallel>, #tpu.dimension_semantics<arbitrary>], iteration_bounds = array<i64: 2, 1>, scalar_prefetch = 0 : i64, scratch_operands = 0 : i64, tpu.core_type = #tpu.core_type<tc>, window_params = [{transform_indices = @transform_0, window_bounds = array<i64: 1, 16, 4>}, {pipeline_mode = #tpu.pipeline_mode<synchronous>, transform_indices = @transform_1, window_bounds = array<i64: 4, 64>}, {pipeline_mode = #tpu.pipeline_mode<synchronous>, transform_indices = @transform_2, window_bounds = array<i64: 1, 64>}, {pipeline_mode = #tpu.pipeline_mode<synchronous>, transform_indices = @transform_3, window_bounds = array<i64: 64, 128>}, {pipeline_mode = #tpu.pipeline_mode<synchronous>, transform_indices = @transform_4, window_bounds = array<i64: 1, 128>}, {pipeline_mode = #tpu.pipeline_mode<synchronous>, transform_indices = @transform_5, window_bounds = array<i64: 128, 1024>}, {transform_indices = @transform_6, window_bounds = array<i64: 1, 1, 128>}, {transform_indices = @transform_7, window_bounds = array<i64: 1, 128, 128>}, {transform_indices = @transform_8, window_bounds = array<i64: 1, 1, 1024>}, {transform_indices = @transform_9, window_bounds = array<i64: 1, 1, 1024>}]} {
    %c0_i32 = arith.constant 0 : i32
    %0 = arith.cmpi eq, %arg1, %c0_i32 : i32
    %1 = arith.extui %0 : i1 to i32
    %c0_i32_0 = arith.constant 0 : i32
    %2 = arith.cmpi ne, %1, %c0_i32_0 : i32
    scf.if %2 {
      %cst_44 = arith.constant 0.000000e+00 : f32
      %76 = vector.broadcast %cst_44 : f32 to vector<1x128xf32>
      %c0_45 = arith.constant 0 : index
      %c0_46 = arith.constant 0 : index
      %c0_47 = arith.constant 0 : index
      %77 = vector.load %arg8[%c0_45, %c0_46, %c0_47] : memref<1x1x128xf32, #tpu.memory_space<vmem>>, vector<1x1x128xf32>
      %78 = vector.shape_cast %77 : vector<1x1x128xf32> to vector<1x128xf32>
      %79 = vector.shape_cast %76 : vector<1x128xf32> to vector<1x1x128xf32>
      tpu.vector_store %arg8[%c0_45, %c0_46, %c0_47], %79 {strides = array<i32>} : memref<1x1x128xf32, #tpu.memory_space<vmem>>, vector<1x1x128xf32>,
      %cst_48 = arith.constant 0.000000e+00 : f32
      %80 = vector.broadcast %cst_48 : f32 to vector<128x128xf32>
      %c0_49 = arith.constant 0 : index
      %c0_50 = arith.constant 0 : index
      %c0_51 = arith.constant 0 : index
      %81 = vector.load %arg9[%c0_49, %c0_50, %c0_51] : memref<1x128x128xf32, #tpu.memory_space<vmem>>, vector<1x128x128xf32>
      %82 = vector.shape_cast %81 : vector<1x128x128xf32> to vector<128x128xf32>
      %83 = vector.shape_cast %80 : vector<128x128xf32> to vector<1x128x128xf32>
      tpu.vector_store %arg9[%c0_49, %c0_50, %c0_51], %83 {strides = array<i32>} : memref<1x128x128xf32, #tpu.memory_space<vmem>>, vector<1x128x128xf32>,
      %cst_52 = arith.constant 0xFF800000 : f32
      %84 = vector.broadcast %cst_52 : f32 to vector<1x1024xf32>
      %c0_53 = arith.constant 0 : index
      %c0_54 = arith.constant 0 : index
      %c0_55 = arith.constant 0 : index
      %85 = vector.load %arg10[%c0_53, %c0_54, %c0_55] : memref<1x1x1024xf32, #tpu.memory_space<vmem>>, vector<1x1x1024xf32>
      %86 = vector.shape_cast %85 : vector<1x1x1024xf32> to vector<1x1024xf32>
      %87 = vector.shape_cast %84 : vector<1x1024xf32> to vector<1x1x1024xf32>
      tpu.vector_store %arg10[%c0_53, %c0_54, %c0_55], %87 {strides = array<i32>} : memref<1x1x1024xf32, #tpu.memory_space<vmem>>, vector<1x1x1024xf32>,
      %cst_56 = arith.constant 0x7F800000 : f32
      %88 = vector.broadcast %cst_56 : f32 to vector<1x1024xf32>
      %c0_57 = arith.constant 0 : index
      %c0_58 = arith.constant 0 : index
      %c0_59 = arith.constant 0 : index
      %89 = vector.load %arg11[%c0_57, %c0_58, %c0_59] : memref<1x1x1024xf32, #tpu.memory_space<vmem>>, vector<1x1x1024xf32>
      %90 = vector.shape_cast %89 : vector<1x1x1024xf32> to vector<1x1024xf32>
      %91 = vector.shape_cast %88 : vector<1x1024xf32> to vector<1x1x1024xf32>
      tpu.vector_store %arg11[%c0_57, %c0_58, %c0_59], %91 {strides = array<i32>} : memref<1x1x1024xf32, #tpu.memory_space<vmem>>, vector<1x1x1024xf32>,
    } else {
    }
    %c0 = arith.constant 0 : index
    %c0_1 = arith.constant 0 : index
    %c0_2 = arith.constant 0 : index
    %3 = vector.load %arg2[%c0, %c0_1, %c0_2] : memref<1x16x4xf32, #tpu.memory_space<vmem>>, vector<1x16x4xf32>
    %4 = vector.shape_cast %3 : vector<1x16x4xf32> to vector<16x4xf32>
    %c0_3 = arith.constant 0 : index
    %c0_4 = arith.constant 0 : index
    %5 = vector.load %arg3[%c0_3, %c0_4] : memref<4x64xf32, #tpu.memory_space<vmem>>, vector<4x64xf32>
    %c0_5 = arith.constant 0 : index
    %c0_6 = arith.constant 0 : index
    %6 = vector.load %arg4[%c0_5, %c0_6] : memref<1x64xf32, #tpu.memory_space<vmem>>, vector<1x64xf32>
    %7 = vector.extract_strided_slice %4 {offsets = [0, 0], sizes = [16, 1], strides = [1, 1]} : vector<16x4xf32> to vector<16x1xf32>
    %8 = vector.extract_strided_slice %5 {offsets = [0, 0], sizes = [1, 64], strides = [1, 1]} : vector<4x64xf32> to vector<1x64xf32>
    %9 = vector.broadcast %7 : vector<16x1xf32> to vector<16x64xf32>
    %10 = vector.broadcast %8 : vector<1x64xf32> to vector<16x64xf32>
    %11 = arith.mulf %9, %10 : vector<16x64xf32>
    %12 = vector.extract_strided_slice %4 {offsets = [0, 1], sizes = [16, 1], strides = [1, 1]} : vector<16x4xf32> to vector<16x1xf32>
    %13 = vector.extract_strided_slice %5 {offsets = [1, 0], sizes = [1, 64], strides = [1, 1]} : vector<4x64xf32> to vector<1x64xf32>
    %14 = vector.broadcast %12 : vector<16x1xf32> to vector<16x64xf32>
    %15 = vector.broadcast %13 : vector<1x64xf32> to vector<16x64xf32>
    %16 = arith.mulf %14, %15 : vector<16x64xf32>
    %17 = arith.addf %11, %16 : vector<16x64xf32>
    %18 = vector.extract_strided_slice %4 {offsets = [0, 2], sizes = [16, 1], strides = [1, 1]} : vector<16x4xf32> to vector<16x1xf32>
    %19 = vector.extract_strided_slice %5 {offsets = [2, 0], sizes = [1, 64], strides = [1, 1]} : vector<4x64xf32> to vector<1x64xf32>
    %20 = vector.broadcast %18 : vector<16x1xf32> to vector<16x64xf32>
    %21 = vector.broadcast %19 : vector<1x64xf32> to vector<16x64xf32>
    %22 = arith.mulf %20, %21 : vector<16x64xf32>
    %23 = arith.addf %17, %22 : vector<16x64xf32>
    %24 = vector.extract_strided_slice %4 {offsets = [0, 3], sizes = [16, 1], strides = [1, 1]} : vector<16x4xf32> to vector<16x1xf32>
    %25 = vector.extract_strided_slice %5 {offsets = [3, 0], sizes = [1, 64], strides = [1, 1]} : vector<4x64xf32> to vector<1x64xf32>
    %26 = vector.broadcast %24 : vector<16x1xf32> to vector<16x64xf32>
    %27 = vector.broadcast %25 : vector<1x64xf32> to vector<16x64xf32>
    %28 = arith.mulf %26, %27 : vector<16x64xf32>
    %29 = arith.addf %23, %28 : vector<16x64xf32>
    %30 = vector.broadcast %6 : vector<1x64xf32> to vector<16x64xf32>
    %31 = arith.addf %29, %30 : vector<16x64xf32>
    %cst = arith.constant 0.000000e+00 : f32
    %32 = vector.broadcast %cst : f32 to vector<16x64xf32>
    %33 = arith.maximumf %31, %32 : vector<16x64xf32>
    %34 = arith.truncf %33 : vector<16x64xf32> to vector<16x64xbf16>
    %c0_7 = arith.constant 0 : index
    %c0_8 = arith.constant 0 : index
    %35 = vector.load %arg5[%c0_7, %c0_8] : memref<64x128xbf16, #tpu.memory_space<vmem>>, vector<64x128xbf16>
    %cst_9 = arith.constant dense<0.000000e+00> : vector<16x128xf32>
    %36 = tpu.matmul %34, %35, %cst_9 {dimension_numbers = #tpu.dot_dimension_numbers<[1], [0], [0], [1], [0, 0, 1, 1], [], []>} : vector<16x64xbf16>, vector<64x128xbf16>, vector<16x128xf32> -> vector<16x128xf32>
    %c0_10 = arith.constant 0 : index
    %c0_11 = arith.constant 0 : index
    %37 = vector.load %arg6[%c0_10, %c0_11] : memref<1x128xf32, #tpu.memory_space<vmem>>, vector<1x128xf32>
    %38 = vector.broadcast %37 : vector<1x128xf32> to vector<16x128xf32>
    %39 = arith.addf %36, %38 : vector<16x128xf32>
    %cst_12 = arith.constant 0.000000e+00 : f32
    %40 = vector.broadcast %cst_12 : f32 to vector<16x128xf32>
    %41 = arith.maximumf %39, %40 : vector<16x128xf32>
    %42 = arith.truncf %41 : vector<16x128xf32> to vector<16x128xbf16>
    %c0_13 = arith.constant 0 : index
    %c0_14 = arith.constant 0 : index
    %43 = vector.load %arg7[%c0_13, %c0_14] : memref<128x1024xbf16, #tpu.memory_space<vmem>>, vector<128x1024xbf16>
    %cst_15 = arith.constant dense<0.000000e+00> : vector<16x1024xf32>
    %44 = tpu.matmul %42, %43, %cst_15 {dimension_numbers = #tpu.dot_dimension_numbers<[1], [0], [0], [1], [0, 0, 1, 1], [], []>} : vector<16x128xbf16>, vector<128x1024xbf16>, vector<16x1024xf32> -> vector<16x1024xf32>
    %c0_16 = arith.constant 0 : index
    %c0_17 = arith.constant 0 : index
    %c0_18 = arith.constant 0 : index
    %45 = vector.load %arg8[%c0_16, %c0_17, %c0_18] : memref<1x1x128xf32, #tpu.memory_space<vmem>>, vector<1x1x128xf32>
    %46 = vector.shape_cast %45 : vector<1x1x128xf32> to vector<1x128xf32>
    %cst_19 = arith.constant dense<0.000000e+00> : vector<128xf32>
    %47 = vector.multi_reduction <add>, %41, %cst_19 [0] : vector<16x128xf32> to vector<128xf32>
    %48 = vector.shape_cast %47 : vector<128xf32> to vector<1x128xf32>
    %49 = arith.addf %46, %48 : vector<1x128xf32>
    %c0_20 = arith.constant 0 : index
    %c0_21 = arith.constant 0 : index
    %c0_22 = arith.constant 0 : index
    %50 = vector.load %arg8[%c0_20, %c0_21, %c0_22] : memref<1x1x128xf32, #tpu.memory_space<vmem>>, vector<1x1x128xf32>
    %51 = vector.shape_cast %50 : vector<1x1x128xf32> to vector<1x128xf32>
    %52 = vector.shape_cast %49 : vector<1x128xf32> to vector<1x1x128xf32>
    tpu.vector_store %arg8[%c0_20, %c0_21, %c0_22], %52 {strides = array<i32>} : memref<1x1x128xf32, #tpu.memory_space<vmem>>, vector<1x1x128xf32>,
    %c0_23 = arith.constant 0 : index
    %c0_24 = arith.constant 0 : index
    %c0_25 = arith.constant 0 : index
    %53 = vector.load %arg9[%c0_23, %c0_24, %c0_25] : memref<1x128x128xf32, #tpu.memory_space<vmem>>, vector<1x128x128xf32>
    %54 = vector.shape_cast %53 : vector<1x128x128xf32> to vector<128x128xf32>
    %cst_26 = arith.constant dense<0.000000e+00> : vector<128x128xf32>
    %55 = tpu.matmul %42, %42, %cst_26 {dimension_numbers = #tpu.dot_dimension_numbers<[0], [0], [1], [1], [0, 1, 1, 1], [], []>} : vector<16x128xbf16>, vector<16x128xbf16>, vector<128x128xf32> -> vector<128x128xf32>
    %56 = arith.addf %54, %55 : vector<128x128xf32>
    %c0_27 = arith.constant 0 : index
    %c0_28 = arith.constant 0 : index
    %c0_29 = arith.constant 0 : index
    %57 = vector.load %arg9[%c0_27, %c0_28, %c0_29] : memref<1x128x128xf32, #tpu.memory_space<vmem>>, vector<1x128x128xf32>
    %58 = vector.shape_cast %57 : vector<1x128x128xf32> to vector<128x128xf32>
    %59 = vector.shape_cast %56 : vector<128x128xf32> to vector<1x128x128xf32>
    tpu.vector_store %arg9[%c0_27, %c0_28, %c0_29], %59 {strides = array<i32>} : memref<1x128x128xf32, #tpu.memory_space<vmem>>, vector<1x128x128xf32>,
    %c0_30 = arith.constant 0 : index
    %c0_31 = arith.constant 0 : index
    %c0_32 = arith.constant 0 : index
    %60 = vector.load %arg10[%c0_30, %c0_31, %c0_32] : memref<1x1x1024xf32, #tpu.memory_space<vmem>>, vector<1x1x1024xf32>
    %61 = vector.shape_cast %60 : vector<1x1x1024xf32> to vector<1x1024xf32>
    %cst_33 = arith.constant dense<0xFF800000> : vector<1024xf32>
    %62 = vector.multi_reduction <maximumf>, %44, %cst_33 [0] : vector<16x1024xf32> to vector<1024xf32>
    %63 = vector.shape_cast %62 : vector<1024xf32> to vector<1x1024xf32>
    %64 = arith.maximumf %61, %63 : vector<1x1024xf32>
    %c0_34 = arith.constant 0 : index
    %c0_35 = arith.constant 0 : index
    %c0_36 = arith.constant 0 : index
    %65 = vector.load %arg10[%c0_34, %c0_35, %c0_36] : memref<1x1x1024xf32, #tpu.memory_space<vmem>>, vector<1x1x1024xf32>
    %66 = vector.shape_cast %65 : vector<1x1x1024xf32> to vector<1x1024xf32>
    %67 = vector.shape_cast %64 : vector<1x1024xf32> to vector<1x1x1024xf32>
    tpu.vector_store %arg10[%c0_34, %c0_35, %c0_36], %67 {strides = array<i32>} : memref<1x1x1024xf32, #tpu.memory_space<vmem>>, vector<1x1x1024xf32>,
    %c0_37 = arith.constant 0 : index
    %c0_38 = arith.constant 0 : index
    %c0_39 = arith.constant 0 : index
    %68 = vector.load %arg11[%c0_37, %c0_38, %c0_39] : memref<1x1x1024xf32, #tpu.memory_space<vmem>>, vector<1x1x1024xf32>
    %69 = vector.shape_cast %68 : vector<1x1x1024xf32> to vector<1x1024xf32>
    %cst_40 = arith.constant dense<0x7F800000> : vector<1024xf32>
    %70 = vector.multi_reduction <minimumf>, %44, %cst_40 [0] : vector<16x1024xf32> to vector<1024xf32>
    %71 = vector.shape_cast %70 : vector<1024xf32> to vector<1x1024xf32>
    %72 = arith.minimumf %69, %71 : vector<1x1024xf32>
    %c0_41 = arith.constant 0 : index
    %c0_42 = arith.constant 0 : index
    %c0_43 = arith.constant 0 : index
    %73 = vector.load %arg11[%c0_41, %c0_42, %c0_43] : memref<1x1x1024xf32, #tpu.memory_space<vmem>>, vector<1x1x1024xf32>
    %74 = vector.shape_cast %73 : vector<1x1x1024xf32> to vector<1x1024xf32>
    %75 = vector.shape_cast %72 : vector<1x1024xf32> to vector<1x1x1024xf32>
    tpu.vector_store %arg11[%c0_41, %c0_42, %c0_43], %75 {strides = array<i32>} : memref<1x1x1024xf32, #tpu.memory_space<vmem>>, vector<1x1x1024xf32>,
    return
  }
  func.func @transform_0(%arg0: i32, %arg1: i32) -> (i32, i32, i32) {
    %c0_i32 = arith.constant 0 : i32
    %c0_i32_0 = arith.constant 0 : i32
    return %arg0, %arg1, %c0_i32 : i32, i32, i32
  }
  func.func @transform_1(%arg0: i32, %arg1: i32) -> (i32, i32) {
    %c0_i32 = arith.constant 0 : i32
    %c0_i32_0 = arith.constant 0 : i32
    %c0_i32_1 = arith.constant 0 : i32
    return %c0_i32, %c0_i32_0 : i32, i32
  }
  func.func @transform_2(%arg0: i32, %arg1: i32) -> (i32, i32) {
    %c0_i32 = arith.constant 0 : i32
    %c0_i32_0 = arith.constant 0 : i32
    %c0_i32_1 = arith.constant 0 : i32
    return %c0_i32, %c0_i32_0 : i32, i32
  }
  func.func @transform_3(%arg0: i32, %arg1: i32) -> (i32, i32) {
    %c0_i32 = arith.constant 0 : i32
    %c0_i32_0 = arith.constant 0 : i32
    %c0_i32_1 = arith.constant 0 : i32
    return %c0_i32, %c0_i32_0 : i32, i32
  }
  func.func @transform_4(%arg0: i32, %arg1: i32) -> (i32, i32) {
    %c0_i32 = arith.constant 0 : i32
    %c0_i32_0 = arith.constant 0 : i32
    %c0_i32_1 = arith.constant 0 : i32
    return %c0_i32, %c0_i32_0 : i32, i32
  }
  func.func @transform_5(%arg0: i32, %arg1: i32) -> (i32, i32) {
    %c0_i32 = arith.constant 0 : i32
    %c0_i32_0 = arith.constant 0 : i32
    %c0_i32_1 = arith.constant 0 : i32
    return %c0_i32, %c0_i32_0 : i32, i32
  }
  func.func @transform_6(%arg0: i32, %arg1: i32) -> (i32, i32, i32) {
    %c0_i32 = arith.constant 0 : i32
    %c0_i32_0 = arith.constant 0 : i32
    %c0_i32_1 = arith.constant 0 : i32
    return %arg0, %c0_i32, %c0_i32_0 : i32, i32, i32
  }
  func.func @transform_7(%arg0: i32, %arg1: i32) -> (i32, i32, i32) {
    %c0_i32 = arith.constant 0 : i32
    %c0_i32_0 = arith.constant 0 : i32
    %c0_i32_1 = arith.constant 0 : i32
    return %arg0, %c0_i32, %c0_i32_0 : i32, i32, i32
  }
  func.func @transform_8(%arg0: i32, %arg1: i32) -> (i32, i32, i32) {
    %c0_i32 = arith.constant 0 : i32
    %c0_i32_0 = arith.constant 0 : i32
    %c0_i32_1 = arith.constant 0 : i32
    return %arg0, %c0_i32, %c0_i32_0 : i32, i32, i32
  }
  func.func @transform_9(%arg0: i32, %arg1: i32) -> (i32, i32, i32) {
    %c0_i32 = arith.constant 0 : i32
    %c0_i32_0 = arith.constant 0 : i32
    %c0_i32_1 = arith.constant 0 : i32
    return %arg0, %c0_i32, %c0_i32_0 : i32, i32, i32
  }
}

module attributes {stable_mosaic.version = 11 : i64} {
  func.func @tail_kernel(%arg0: memref<2x1024xf32, #tpu.memory_space<vmem>>, %arg1: memref<2x1024xf32, #tpu.memory_space<vmem>>, %arg2: memref<1x1024xf32, #tpu.memory_space<vmem>>, %arg3: memref<1x1024xf32, #tpu.memory_space<vmem>>, %arg4: memref<1024x512xbf16, #tpu.memory_space<vmem>>, %arg5: memref<1x512xf32, #tpu.memory_space<vmem>>, %arg6: memref<1x512xf32, #tpu.memory_space<vmem>>, %arg7: memref<512x256xbf16, #tpu.memory_space<vmem>>, %arg8: memref<1x256xf32, #tpu.memory_space<vmem>>, %arg9: memref<1x256xf32, #tpu.memory_space<vmem>>, %arg10: memref<256x128xf32, #tpu.memory_space<vmem>>, %arg11: memref<1x128xf32, #tpu.memory_space<vmem>>, %arg12: memref<2x128xf32, #tpu.memory_space<vmem>>) attributes {dimension_semantics = [], scalar_prefetch = 0 : i64, scratch_operands = 0 : i64, tpu.core_type = #tpu.core_type<tc>} {
    %c0 = arith.constant 0 : index
    %c0_0 = arith.constant 0 : index
    %0 = vector.load %arg2[%c0, %c0_0] : memref<1x1024xf32, #tpu.memory_space<vmem>>, vector<1x1024xf32>
    %cst = arith.constant 0.000000e+00 : f32
    %1 = vector.broadcast %cst : f32 to vector<1x1024xf32>
    %2 = arith.cmpf oge, %0, %1 : vector<1x1024xf32>
    %c0_1 = arith.constant 0 : index
    %c0_2 = arith.constant 0 : index
    %3 = vector.load %arg0[%c0_1, %c0_2] : memref<2x1024xf32, #tpu.memory_space<vmem>>, vector<2x1024xf32>
    %c0_3 = arith.constant 0 : index
    %c0_4 = arith.constant 0 : index
    %4 = vector.load %arg1[%c0_3, %c0_4] : memref<2x1024xf32, #tpu.memory_space<vmem>>, vector<2x1024xf32>
    %5 = vector.shape_cast %2 : vector<1x1024xi1> to vector<1x1024xi1>
    %6 = vector.broadcast %5 : vector<1x1024xi1> to vector<2x1024xi1>
    %7 = arith.select %6, %3, %4 : vector<2x1024xi1>, vector<2x1024xf32>
    %8 = vector.broadcast %0 : vector<1x1024xf32> to vector<2x1024xf32>
    %9 = arith.mulf %7, %8 : vector<2x1024xf32>
    %c0_5 = arith.constant 0 : index
    %c0_6 = arith.constant 0 : index
    %10 = vector.load %arg3[%c0_5, %c0_6] : memref<1x1024xf32, #tpu.memory_space<vmem>>, vector<1x1024xf32>
    %11 = vector.broadcast %10 : vector<1x1024xf32> to vector<2x1024xf32>
    %12 = arith.addf %9, %11 : vector<2x1024xf32>
    %cst_7 = arith.constant 0.000000e+00 : f32
    %13 = vector.broadcast %cst_7 : f32 to vector<2x1024xf32>
    %14 = arith.maximumf %12, %13 : vector<2x1024xf32>
    %15 = arith.truncf %14 : vector<2x1024xf32> to vector<2x1024xbf16>
    %c0_8 = arith.constant 0 : index
    %c0_9 = arith.constant 0 : index
    %16 = vector.load %arg4[%c0_8, %c0_9] : memref<1024x512xbf16, #tpu.memory_space<vmem>>, vector<1024x512xbf16>
    %cst_10 = arith.constant dense<0.000000e+00> : vector<2x512xf32>
    %17 = tpu.matmul %15, %16, %cst_10 {dimension_numbers = #tpu.dot_dimension_numbers<[1], [0], [0], [1], [0, 0, 1, 1], [], []>} : vector<2x1024xbf16>, vector<1024x512xbf16>, vector<2x512xf32> -> vector<2x512xf32>
    %c0_11 = arith.constant 0 : index
    %c0_12 = arith.constant 0 : index
    %18 = vector.load %arg5[%c0_11, %c0_12] : memref<1x512xf32, #tpu.memory_space<vmem>>, vector<1x512xf32>
    %c0_13 = arith.constant 0 : index
    %c0_14 = arith.constant 0 : index
    %19 = vector.load %arg6[%c0_13, %c0_14] : memref<1x512xf32, #tpu.memory_space<vmem>>, vector<1x512xf32>
    %cst_15 = arith.constant dense<0.000000e+00> : vector<512xf32>
    %20 = vector.multi_reduction <add>, %17, %cst_15 [0] : vector<2x512xf32> to vector<512xf32>
    %21 = vector.shape_cast %20 : vector<512xf32> to vector<1x512xf32>
    %cst_16 = arith.constant 2.000000e+00 : f32
    %22 = vector.broadcast %cst_16 : f32 to vector<1x512xf32>
    %23 = arith.divf %21, %22 : vector<1x512xf32>
    %24 = arith.mulf %17, %17 : vector<2x512xf32>
    %cst_17 = arith.constant dense<0.000000e+00> : vector<512xf32>
    %25 = vector.multi_reduction <add>, %24, %cst_17 [0] : vector<2x512xf32> to vector<512xf32>
    %26 = vector.shape_cast %25 : vector<512xf32> to vector<1x512xf32>
    %cst_18 = arith.constant 2.000000e+00 : f32
    %27 = vector.broadcast %cst_18 : f32 to vector<1x512xf32>
    %28 = arith.divf %26, %27 : vector<1x512xf32>
    %29 = arith.mulf %23, %23 : vector<1x512xf32>
    %30 = arith.subf %28, %29 : vector<1x512xf32>
    %cst_19 = arith.constant 0.000000e+00 : f32
    %31 = vector.broadcast %cst_19 : f32 to vector<1x512xf32>
    %32 = arith.maximumf %30, %31 : vector<1x512xf32>
    %cst_20 = arith.constant 9.99999974E-6 : f32
    %33 = vector.broadcast %cst_20 : f32 to vector<1x512xf32>
    %34 = arith.addf %32, %33 : vector<1x512xf32>
    %35 = math.rsqrt %34 : vector<1x512xf32>
    %36 = arith.mulf %18, %35 : vector<1x512xf32>
    %37 = vector.broadcast %36 : vector<1x512xf32> to vector<2x512xf32>
    %38 = arith.mulf %17, %37 : vector<2x512xf32>
    %39 = arith.mulf %23, %36 : vector<1x512xf32>
    %40 = arith.subf %19, %39 : vector<1x512xf32>
    %41 = vector.broadcast %40 : vector<1x512xf32> to vector<2x512xf32>
    %42 = arith.addf %38, %41 : vector<2x512xf32>
    %cst_21 = arith.constant 0.000000e+00 : f32
    %43 = vector.broadcast %cst_21 : f32 to vector<2x512xf32>
    %44 = arith.maximumf %42, %43 : vector<2x512xf32>
    %45 = arith.truncf %44 : vector<2x512xf32> to vector<2x512xbf16>
    %c0_22 = arith.constant 0 : index
    %c0_23 = arith.constant 0 : index
    %46 = vector.load %arg7[%c0_22, %c0_23] : memref<512x256xbf16, #tpu.memory_space<vmem>>, vector<512x256xbf16>
    %cst_24 = arith.constant dense<0.000000e+00> : vector<2x256xf32>
    %47 = tpu.matmul %45, %46, %cst_24 {dimension_numbers = #tpu.dot_dimension_numbers<[1], [0], [0], [1], [0, 0, 1, 1], [], []>} : vector<2x512xbf16>, vector<512x256xbf16>, vector<2x256xf32> -> vector<2x256xf32>
    %c0_25 = arith.constant 0 : index
    %c0_26 = arith.constant 0 : index
    %48 = vector.load %arg8[%c0_25, %c0_26] : memref<1x256xf32, #tpu.memory_space<vmem>>, vector<1x256xf32>
    %c0_27 = arith.constant 0 : index
    %c0_28 = arith.constant 0 : index
    %49 = vector.load %arg9[%c0_27, %c0_28] : memref<1x256xf32, #tpu.memory_space<vmem>>, vector<1x256xf32>
    %cst_29 = arith.constant dense<0.000000e+00> : vector<256xf32>
    %50 = vector.multi_reduction <add>, %47, %cst_29 [0] : vector<2x256xf32> to vector<256xf32>
    %51 = vector.shape_cast %50 : vector<256xf32> to vector<1x256xf32>
    %cst_30 = arith.constant 2.000000e+00 : f32
    %52 = vector.broadcast %cst_30 : f32 to vector<1x256xf32>
    %53 = arith.divf %51, %52 : vector<1x256xf32>
    %54 = arith.mulf %47, %47 : vector<2x256xf32>
    %cst_31 = arith.constant dense<0.000000e+00> : vector<256xf32>
    %55 = vector.multi_reduction <add>, %54, %cst_31 [0] : vector<2x256xf32> to vector<256xf32>
    %56 = vector.shape_cast %55 : vector<256xf32> to vector<1x256xf32>
    %cst_32 = arith.constant 2.000000e+00 : f32
    %57 = vector.broadcast %cst_32 : f32 to vector<1x256xf32>
    %58 = arith.divf %56, %57 : vector<1x256xf32>
    %59 = arith.mulf %53, %53 : vector<1x256xf32>
    %60 = arith.subf %58, %59 : vector<1x256xf32>
    %cst_33 = arith.constant 0.000000e+00 : f32
    %61 = vector.broadcast %cst_33 : f32 to vector<1x256xf32>
    %62 = arith.maximumf %60, %61 : vector<1x256xf32>
    %cst_34 = arith.constant 9.99999974E-6 : f32
    %63 = vector.broadcast %cst_34 : f32 to vector<1x256xf32>
    %64 = arith.addf %62, %63 : vector<1x256xf32>
    %65 = math.rsqrt %64 : vector<1x256xf32>
    %66 = arith.mulf %48, %65 : vector<1x256xf32>
    %67 = vector.broadcast %66 : vector<1x256xf32> to vector<2x256xf32>
    %68 = arith.mulf %47, %67 : vector<2x256xf32>
    %69 = arith.mulf %53, %66 : vector<1x256xf32>
    %70 = arith.subf %49, %69 : vector<1x256xf32>
    %71 = vector.broadcast %70 : vector<1x256xf32> to vector<2x256xf32>
    %72 = arith.addf %68, %71 : vector<2x256xf32>
    %cst_35 = arith.constant 0.000000e+00 : f32
    %73 = vector.broadcast %cst_35 : f32 to vector<2x256xf32>
    %74 = arith.maximumf %72, %73 : vector<2x256xf32>
    %c0_36 = arith.constant 0 : index
    %c0_37 = arith.constant 0 : index
    %75 = vector.load %arg10[%c0_36, %c0_37] : memref<256x128xf32, #tpu.memory_space<vmem>>, vector<256x128xf32>
    %cst_38 = arith.constant dense<0.000000e+00> : vector<2x128xf32>
    %76 = tpu.matmul %74, %75, %cst_38 {dimension_numbers = #tpu.dot_dimension_numbers<[1], [0], [0], [1], [0, 0, 1, 1], [], []>} : vector<2x256xf32>, vector<256x128xf32>, vector<2x128xf32> -> vector<2x128xf32>
    %c0_39 = arith.constant 0 : index
    %c0_40 = arith.constant 0 : index
    %77 = vector.load %arg11[%c0_39, %c0_40] : memref<1x128xf32, #tpu.memory_space<vmem>>, vector<1x128xf32>
    %78 = vector.broadcast %77 : vector<1x128xf32> to vector<2x128xf32>
    %79 = arith.addf %76, %78 : vector<2x128xf32>
    %c0_41 = arith.constant 0 : index
    %c0_42 = arith.constant 0 : index
    %80 = vector.load %arg12[%c0_41, %c0_42] : memref<2x128xf32, #tpu.memory_space<vmem>>, vector<2x128xf32>
    tpu.vector_store %arg12[%c0_41, %c0_42], %79 {strides = array<i32>} : memref<2x128xf32, #tpu.memory_space<vmem>>, vector<2x128xf32>,
    return
  }
}

</mosaic_0001>

<bundles_post_ra>
// kernel: tnet_forward.3
= control target key start
LH: loop header
LB: loop body
LE: loop exit
PB: predicated region body
PF: predicated region fallthrough
CT: control target
= control target key end

     0   :  { %s680_s15 = smov 0   ;;  %s682_s16 = smov 0   ;;  %s773_s0 = inlined_call_operand.vmem [shape: f32[2,16,4], index: 0, kind: input, shape index: {}]   ;;  %s774_s1 = inlined_call_operand.vmem [shape: f32[4,64], index: 1, kind: input, shape index: {}]   ;;  %s775_s2 = inlined_call_operand.vmem [shape: f32[1,64], index: 2, kind: input, shape index: {}]   ;;  %s776_s3 = inlined_call_operand.vmem [shape: f32[2,1,64], index: 3, kind: output, shape index: {0}]   ;;  %s777_s4 = inlined_call_operand.vmem [shape: f32[2,64,64], index: 4, kind: output, shape index: {1}]  }
   0x1   :  { %s684_s17 = smov 0  }
   0x2 LB: > { %s27_s18 = sadd.s32 1, %s644_s16  ;;  %p560_p0 = scmp.ge.s32.totalorder %s648_s17, 1  ;;  %s648_s17 = sphi %s684_s17, %s15_s17   ;;  %s644_s16 = sphi %s682_s16, %s779_s16   ;;  %s640_s15 = sphi %s680_s15, %s778_s15  }
   0x3   : > { %p29_p1 = scmp.ge.s32.totalorder %s27_s18, 2  ;;  %p184_p2 = scmp.lt.s32.totalorder %s648_s17, 3 }
   0x5   : > { %s781_s18 = smov (%p29_p1, %s27_s18), 0  ;;  %p185_p3 = pnand %p560_p0, %p184_p2 }
   0x6   : > { %p218_p4 = scmp.lt.s32.totalorder (!%p185_p3), %s640_s15, 1  ;;  %v650_v0 = vmov (!%p185_p3), 1   ;;  %v651_v1 = vmov (!%p185_p3), 0   ;;  %vm240_vm0 = vcmask (!%p185_p3), 516096   ;;  %v652_v2 = vmov (!%p185_p3), 0.0  }
   0x7   : > { %188 = sbr.rel (%p185_p3) target bundleno = 503 (0x1f7), region = 32  ;;  %621 = vset.pattern.permute.xlu1 (!%p185_p3), %v650_v0  ;;  %620 = vset.pattern.permute.xlu0 (!%p185_p3), %v651_v1  ;;  %v653_v5 = vmov (!%p185_p3), 2   ;;  %vm242_vm1 = vcmask (!%p185_p3), 523264   ;;  %v654_v6 = vmov (!%p185_p3), 3   ;;  %v265_v7 = vlaneseq (!%p185_p3)  ;;  %v253_v13 = vld [vmem:[%s774_s1] sm:$0xf] (!%p185_p3) }
   0x8   : > { %v565_v38 = vld [vmem:[%s775_s2] ss:$0 sm:$0xff] (!%p185_p3)  ;;  %vm368_vm2 = vcmask (!%p185_p3), 130048  }
   0x9   : > { %v266_v8 = vshrl.u32 (!%p185_p3), %v265_v7, 7 }
   0xb   : > { %v281_v11 = vsub.s32 (!%p185_p3), 1, %v266_v8  ;;  %v267_v12 = vsub.s32 (!%p185_p3), 0, %v266_v8  ;;  %v297_v14 = vsub.s32 (!%p185_p3), 2, %v266_v8  ;;  %v313_v20 = vsub.s32 (!%p185_p3), 3, %v266_v8 }
   0xd   : > { %v282_v17 = vrot.slane (!%p185_p3), %v253_v13, %v281_v11  ;;  %v268_v18 = vrot.slane (!%p185_p3), %v253_v13, %v267_v12  ;;  %v298_v19 = vrot.slane (!%p185_p3), %v253_v13, %v297_v14  ;;  %v314_v29 = vrot.slane (!%p185_p3), %v253_v13, %v313_v20 }
   0xe   : > { %s783_s15 = smov (!%p218_p4, %s640_s15), 1 }
   0xf   : > { %s572_s19 = sshll.u32 %s783_s15, 4  ;;  %s701_s22 = scalar_lea.vmem %s776_s3, %s783_s15 }
  0x10   : > { %s225_s25 = scalar_lea.vmem %s773_s0, %s572_s19  ;;  %241 = vst.msk [vmem:[%s701_s22] sm:$0x1] %vm240_vm0, %v652_v2  ;;  %s573_s26 = sshll.u32 %s783_s15, 6 }
  0x11   : > { %v251_v3 = vld [vmem:[%s225_s25] sm:$0xff]  ;;  %v252_v4 = vld [vmem:[%s225_s25 + $0x8] sm:$0xff]  ;;  %s711_s29 = scalar_lea.vmem %s777_s4, %s573_s26 }
  0x12   : > { %272 = vperm.xlu1 %621, %v251_v3   ;;  %257 = vperm.xlu0 %620, %v251_v3   ;;  %243 = vst.msk [vmem:[%s711_s29] sm:$0xff] %vm242_vm1, %v652_v2  ;;  %244 = vst.msk [vmem:[%s711_s29 + $0x8] sm:$0xff] %vm242_vm1, %v652_v2 }
  0x13   : > { %245 = vst.msk [vmem:[%s711_s29 + $0x10] sm:$0xff] %vm242_vm1, %v652_v2  ;;  %246 = vst.msk [vmem:[%s711_s29 + $0x18] sm:$0xff] %vm242_vm1, %v652_v2 }
  0x14   : > { %247 = vst.msk [vmem:[%s711_s29 + $0x20] sm:$0xff] %vm242_vm1, %v652_v2  ;;  %248 = vst.msk [vmem:[%s711_s29 + $0x28] sm:$0xff] %vm242_vm1, %v652_v2 }
  0x15   : > { %249 = vst.msk [vmem:[%s711_s29 + $0x30] sm:$0xff] %vm242_vm1, %v652_v2  ;;  %250 = vst.msk [vmem:[%s711_s29 + $0x38] sm:$0xff] %vm242_vm1, %v652_v2 }
  0x16   : > { %276 = vperm.xlu1 %621, %v252_v4   ;;  %262 = vperm.xlu0 %620, %v252_v4  }
  0x17   : > { %v329_v54 = vld [vmem:[%s701_s22] sm:$0x1] }
  0x19   : > { %v344_v62 = vld [vmem:[%s711_s29] sm:$0xff] }
  0x1a   : > { %623 = vset.pattern.permute.xlu1 %v653_v5  ;;  %622 = vset.pattern.permute.xlu0 %v653_v5  ;;  %v346_v61 = vld [vmem:[%s711_s29 + $0x10] sm:$0xff]  ;;  %v347_v0 = vld [vmem:[%s711_s29 + $0x18] sm:$0xff] }
  0x1b   : > { %292 = vperm.xlu1 %623, %v252_v4   ;;  %288 = vperm.xlu0 %622, %v251_v3  }
  0x1c   : > { %v351_v12 = vld [vmem:[%s711_s29 + $0x38] sm:$0xff] }
  0x1f   : > { %624 = vset.pattern.permute.xlu1 %v654_v6  ;;  %625 = vset.pattern.permute.xlu0 %v654_v6 }
  0x20   : > { %304 = vperm.xlu1 %624, %v251_v3   ;;  %308 = vperm.xlu0 %625, %v252_v4   ;;  %v345_v3 = vld [vmem:[%s711_s29 + $0x8] sm:$0xff] }
  0x91   : > { %v273_v9 = vpop.permute.xlu1 %272  ;;  %v258_v10 = vpop.permute.xlu0 %257 }
  0x92   : > { %v283_v21 = vmul.f32 %v282_v17, %v273_v9  ;;  %v269_v22 = vmul.f32 %v268_v18, %v258_v10  ;;  %v350_v9 = vld [vmem:[%s711_s29 + $0x30] sm:$0xff]  ;;  %v348_v10 = vld [vmem:[%s711_s29 + $0x20] sm:$0xff] }
  0x94   : > { %v285_v30 = vadd.f32 %v283_v21, %v269_v22 }
  0x95   : > { %v277_v15 = vpop.permute.xlu1 %276  ;;  %v263_v16 = vpop.permute.xlu0 %262 }
  0x96   : > { %v284_v23 = vmul.f32 %v282_v17, %v277_v15  ;;  %v270_v24 = vmul.f32 %v268_v18, %v263_v16  ;;  %v349_v15 = vld [vmem:[%s711_s29 + $0x28] sm:$0xff] }
  0x98   : > { %v286_v31 = vadd.f32 %v284_v23, %v270_v24 }
  0x9a   : > { %v293_v25 = vpop.permute.xlu1 %292  ;;  %v289_v26 = vpop.permute.xlu0 %288 }
  0x9b   : > { %v300_v27 = vmul.f32 %v298_v19, %v293_v25  ;;  %v299_v28 = vmul.f32 %v298_v19, %v289_v26 }
  0x9d   : > { %v302_v34 = vadd.f32 %v300_v27, %v286_v31  ;;  %v301_v35 = vadd.f32 %v299_v28, %v285_v30 }
  0x9f   : > { %v305_v32 = vpop.permute.xlu1 %304  ;;  %v309_v33 = vpop.permute.xlu0 %308 }
  0xa0   : > { %v315_v36 = vmul.f32 %v314_v29, %v305_v32  ;;  %v316_v37 = vmul.f32 %v314_v29, %v309_v33 }
  0xa2   : > { %v317_v39 = vadd.f32 %v315_v36, %v301_v35  ;;  %v318_v40 = vadd.f32 %v316_v37, %v302_v34 }
  0xa4   : > { %v325_v41 = vadd.f32 %v565_v38, %v317_v39  ;;  %v326_v42 = vadd.f32 %v565_v38, %v318_v40 }
  0xa6   : > { %v327_v43 = vmax.f32 %v325_v41, 0.0  ;;  %v328_v44 = vmax.f32 %v326_v42, 0.0 }
  0xa8   : > { %v331_v45 = vsel %vm242_vm1, %v327_v43, 0.0  ;;  %v332_v46 = vsel %vm242_vm1, %v328_v44, 0.0  ;;  %v343_v47 = vpack.c.bf16 %v328_v44, %v327_v43 }
  0xa9   : > { %v333_v48 = vadd.f32 %v332_v46, %v331_v45 }
  0xaa   : > { %352 = vxpose.xlu1.c.b16.start.end [1/1] (short) (narrow) %v343_v47, 64  ;;  %579 = vmatprep.subr.bf16.mxu0 %v343_v47 }
  0xab   : > { %v334_v49 = vrot.slane %v333_v48, 4  ;;  %589 = vmatprep.subr.bf16.mxu1 %v343_v47  ;;  %580 = vmatpush3.bf16.msra.mxu0 %v343_v47 }
  0xac   : > { %590 = vmatpush3.bf16.msra.mxu1 %v343_v47 }
  0xad   : > { %v335_v50 = vadd.f32 %v334_v49, %v333_v48 }
  0xaf   : > { %v336_v51 = vrot.slane %v335_v50, 2 }
  0xb1   : > { %v337_v52 = vadd.f32 %v336_v51, %v335_v50 }
  0xb3   : > { %v338_v53 = vrot.slane %v337_v52, 1 }
  0xb5   : > { %v339_v55 = vadd.f32 %v338_v53, %v337_v52 }
  0xb7   : > { %v340_v56 = vadd.f32 %v339_v55, %v329_v54 }
  0xb9   : > { %342 = vst.msk [vmem:[%s701_s22] sm:$0x1] %vm240_vm0, %v340_v56 }
 0x110   : > { %v360_v57 = vpop.trf.xlu1 }
 0x111   : > { %581 = vmatprep.mubr.msk.bf16.mxu0 %vm368_vm2, %v360_v57 }
 0x114   : > { %v361_v58 = vpop.trf.xlu1 }
 0x115   : > { %582 = vmatmul.mubr.msk.bf16.vlgmr.msra.gmra.mrb[0].mxu0 %vm368_vm2, %v361_v58 }
 0x118   : > { %v362_v59 = vpop.trf.xlu1 }
 0x119   : > { %585 = vmatprep.mubr.msk.bf16.mxu1 %vm368_vm2, %v362_v59 }
 0x11c   : > { %v363_v60 = vpop.trf.xlu1 }
 0x11d   : > { %586 = vmatmul.mubr.msk.bf16.vlgmr.msra.gmra.mrb[0].mxu1 %vm368_vm2, %v363_v60 }
 0x1e8   : > { %v583_v63 = vpop.f32.mrb[0].mxu0 }
 0x1e9   : > { %v448_v1 = vadd.f32 %v583_v63, %v346_v61  ;;  %v415_v2 = vpop.f32.mrb[1].mxu0 }
 0x1ea   : > { %v446_v4 = vadd.f32 %v415_v2, %v344_v62  ;;  %v584_v5 = vpop.f32.mrb[2].mxu0 }
 0x1eb   : > { %456 = vst.msk [vmem:[%s711_s29 + $0x10] sm:$0xff] %vm242_vm1, %v448_v1  ;;  %v449_v6 = vadd.f32 %v584_v5, %v347_v0  ;;  %v418_v7 = vpop.f32.mrb[3].mxu0 }
 0x1ec   : > { %454 = vst.msk [vmem:[%s711_s29] sm:$0xff] %vm242_vm1, %v446_v4  ;;  %v447_v8 = vadd.f32 %v418_v7, %v345_v3 }
 0x1ed   : > { %457 = vst.msk [vmem:[%s711_s29 + $0x18] sm:$0xff] %vm242_vm1, %v449_v6 }
 0x1ee   : > { %455 = vst.msk [vmem:[%s711_s29 + $0x8] sm:$0xff] %vm242_vm1, %v447_v8 }
 0x1f0   : > { %v587_v11 = vpop.f32.mrb[0].mxu1 }
 0x1f1   : > { %v452_v13 = vadd.f32 %v587_v11, %v350_v9  ;;  %v431_v14 = vpop.f32.mrb[1].mxu1 }
 0x1f2   : > { %v450_v16 = vadd.f32 %v431_v14, %v348_v10  ;;  %v588_v17 = vpop.f32.mrb[2].mxu1 }
 0x1f3   : > { %460 = vst.msk [vmem:[%s711_s29 + $0x30] sm:$0xff] %vm242_vm1, %v452_v13  ;;  %v453_v18 = vadd.f32 %v588_v17, %v351_v12  ;;  %v434_v19 = vpop.f32.mrb[3].mxu1 }
 0x1f4   : > { %458 = vst.msk [vmem:[%s711_s29 + $0x20] sm:$0xff] %vm242_vm1, %v450_v16  ;;  %v451_v20 = vadd.f32 %v434_v19, %v349_v15 }
 0x1f5   : > { %461 = vst.msk [vmem:[%s711_s29 + $0x38] sm:$0xff] %vm242_vm1, %v453_v18 }
 0x1f6   : > { %459 = vst.msk [vmem:[%s711_s29 + $0x28] sm:$0xff] %vm242_vm1, %v451_v20 }
 0x1f7 PF: > { %s15_s17 = sadd.s32 1, %s648_s17   ;;  %s778_s15 = smov %s644_s16 }
 0x1f8   : > { %p12_p5 = scmp.ge.s32.totalorder %s15_s17, 4   ;;  %s779_s16 = smov %s781_s18 }
 0x1fa   :  { %14 = sbr.rel (!%p12_p5) target bundleno = 2 (0x2), region = 78 }

// kernel: tnet_forward.4
= control target key start
LH: loop header
LB: loop body
LE: loop exit
PB: predicated region body
PF: predicated region fallthrough
CT: control target
= control target key end

     0   :  { %s1986_s30 = smov 0   ;;  %s1988_s10 = smov 0   ;;  %s2338_s0 = inlined_call_operand.vmem [shape: f32[2,16,4], index: 0, kind: input, shape index: {}]   ;;  %s2339_s1 = inlined_call_operand.vmem [shape: f32[4,64], index: 1, kind: input, shape index: {}]   ;;  %s2340_s2 = inlined_call_operand.vmem [shape: f32[1,64], index: 2, kind: input, shape index: {}]   ;;  %s2341_s3 = inlined_call_operand.vmem [shape: bf16[64,128], index: 3, kind: input, shape index: {}]   ;;  %s2342_s4 = inlined_call_operand.vmem [shape: f32[1,128], index: 4, kind: input, shape index: {}]   ;;  %s2343_s5 = inlined_call_operand.vmem [shape: bf16[128,1024], index: 5, kind: input, shape index: {}]   ;;  %s2344_s6 = inlined_call_operand.vmem [shape: f32[2,1,128], index: 6, kind: output, shape index: {0}]   ;;  %s2345_s7 = inlined_call_operand.vmem [shape: f32[2,128,128], index: 7, kind: output, shape index: {1}]   ;;  %s2346_s8 = inlined_call_operand.vmem [shape: f32[2,1,1024], index: 8, kind: output, shape index: {2}]   ;;  %s2347_s9 = inlined_call_operand.vmem [shape: f32[2,1,1024], index: 9, kind: output, shape index: {3}]  }
   0x1   :  { %s1990_s11 = smov 0  }
   0x2 LB: > { %s32_s12 = sadd.s32 1, %s1923_s10  ;;  %p1726_p0 = scmp.ge.s32.totalorder %s1927_s11, 1  ;;  %s1927_s11 = sphi %s1990_s11, %s20_s11   ;;  %s1923_s10 = sphi %s1988_s10, %s2349_s10   ;;  %s1919_s30 = sphi %s1986_s30, %s2348_s30  }
   0x3   : > { %p34_p1 = scmp.ge.s32.totalorder %s32_s12, 2  ;;  %p313_p2 = scmp.lt.s32.totalorder %s1927_s11, 3 }
   0x5   : > { %s2351_s12 = smov (%p34_p1, %s32_s12), 0  ;;  %p314_p3 = pnand %p1726_p0, %p313_p2 }
   0x6   : > { %p365_p4 = scmp.lt.s32.totalorder (!%p314_p3), %s1919_s30, 1  ;;  %v1929_v0 = vmov (!%p314_p3), 1   ;;  %v1930_v1 = vmov (!%p314_p3), 0   ;;  %v1931_v4 = vmov (!%p314_p3), 0.0   ;;  %v1901_v5 = vld [vmem:[%s2341_s3] sm:$0xff] (!%p314_p3)   ;;  %v1932_v6 = vmov (!%p314_p3), 2  }
   0x7   : > { %317 = sbr.rel (%p314_p3) target bundleno = 737 (0x2e1), region = 44  ;;  %1896 = vset.pattern.permute.xlu1 (!%p314_p3), %v1929_v0  ;;  %1895 = vset.pattern.permute.xlu0 (!%p314_p3), %v1930_v1  ;;  %v1902_v7 = vld [vmem:[%s2341_s3 + $0x8] sm:$0xff] (!%p314_p3)   ;;  %v1933_v8 = vmov (!%p314_p3), 3   ;;  %v1903_v9 = vld [vmem:[%s2341_s3 + $0x10] sm:$0xff] (!%p314_p3)   ;;  %v1904_v10 = vld [vmem:[%s2341_s3 + $0x18] sm:$0xff] (!%p314_p3)   ;;  %vm1934_vm0 = vmmov (!%p314_p3), 0   ;;  %v428_v39 = vlaneseq (!%p314_p3) }
   0x8   : > { %996 = vmatprep.mubr.bf16.mxu1 (!%p314_p3), %v1930_v1  ;;  %1830 = vmatprep.subr.bf16.mxu0 (!%p314_p3), %v1931_v4  ;;  %v580_v11 = vld [vmem:[%s2343_s5] sm:$0xff] (!%p314_p3)  ;;  %v2038_v13 = vld [vmem:[%s2343_s5 + $0x8] sm:$0xff] (!%p314_p3)  ;;  %vm532_vm1 = vcmask (!%p314_p3), 523264   ;;  %vm1178_vm2 = vcmask (!%p314_p3), 130048  }
   0x9   : > { %1831 = vmatpush3.bf16.msra.mxu0 (!%p314_p3), %v1901_v5  ;;  %1838 = vmatprep.mubr.msk.bf16.mxu0 (!%p314_p3), %vm1934_vm0, %v1931_v4  ;;  %v584_v12 = vld [vmem:[%s2343_s5 + $0x20] sm:$0xff] (!%p314_p3)  ;;  %v2043_v15 = vld [vmem:[%s2343_s5 + $0x28] sm:$0xff] (!%p314_p3)  ;;  %v2079_v40 = vshrl.u32 (!%p314_p3), %v428_v39, 7 }
   0xa   : > { %1832 = vmatprep.subr.bf16.mxu0 (!%p314_p3), %v1931_v4  ;;  %v1741_v14 = vcombine.high (!%p314_p3), %v580_v11, %v584_v12  ;;  %v1740_v16 = vcombine.low (!%p314_p3), %v580_v11, %v584_v12  ;;  %v588_v17 = vld [vmem:[%s2343_s5 + $0x40] sm:$0xff] (!%p314_p3)  ;;  %v1742_v19 = vcombine.low (!%p314_p3), %v2038_v13, %v2043_v15  ;;  %v1743_v20 = vcombine.high (!%p314_p3), %v2038_v13, %v2043_v15  ;;  %v613_v13 = vld [vmem:[%s2343_s5 + $0x108] sm:$0xff] (!%p314_p3) }
   0xb   : > { %v592_v18 = vld [vmem:[%s2343_s5 + $0x60] sm:$0xff] (!%p314_p3)  ;;  %v444_v43 = vsub.s32 (!%p314_p3), 1, %v2079_v40  ;;  %v430_v44 = vsub.s32 (!%p314_p3), 0, %v2079_v40  ;;  %v460_v46 = vsub.s32 (!%p314_p3), 2, %v2079_v40  ;;  %v476_v52 = vsub.s32 (!%p314_p3), 3, %v2079_v40  ;;  %v617_v15 = vld [vmem:[%s2343_s5 + $0x128] sm:$0xff] (!%p314_p3) }
   0xc   : > { %v1749_v21 = vcombine.high (!%p314_p3), %v588_v17, %v592_v18  ;;  %964 = vmatprep.subr.bf16.mxu1 (!%p314_p3), %v1741_v14  ;;  %v1748_v22 = vcombine.low (!%p314_p3), %v588_v17, %v592_v18  ;;  %v596_v23 = vld [vmem:[%s2343_s5 + $0x80] sm:$0xff] (!%p314_p3)  ;;  %v589_v14 = vld [vmem:[%s2343_s5 + $0x48] sm:$0xff] (!%p314_p3) }
   0xd   : > { %1833 = vmatpush3.bf16.msra.mxu0 (!%p314_p3), %v1902_v7  ;;  %965 = vmatpush1.bf16.msra.mxu1 (!%p314_p3), %v1740_v16  ;;  %v600_v24 = vld [vmem:[%s2343_s5 + $0xa0] sm:$0xff] (!%p314_p3)  ;;  %v593_v16 = vld [vmem:[%s2343_s5 + $0x68] sm:$0xff] (!%p314_p3) }
   0xe   : > { %s2353_s30 = smov (!%p365_p4, %s1919_s30), 1  ;;  %1834 = vmatprep.subr.bf16.mxu0 %v1931_v4  ;;  %966 = vmatprep.subr.bf16.mxu1 %v1749_v21  ;;  %v1757_v25 = vcombine.high %v596_v23, %v600_v24  ;;  %v1756_v26 = vcombine.low %v596_v23, %v600_v24  ;;  %v604_v27 = vld [vmem:[%s2343_s5 + $0xc0] sm:$0xff]  ;;  %v1751_v21 = vcombine.high %v589_v14, %v593_v16  ;;  %v601_v23 = vld [vmem:[%s2343_s5 + $0xa8] sm:$0xff] }
   0xf   : > { %s1814_s13 = sshll.u32 %s2353_s30, 4  ;;  %v608_v28 = vld [vmem:[%s2343_s5 + $0xe0] sm:$0xff]  ;;  %v1750_v24 = vcombine.low %v589_v14, %v593_v16  ;;  %s2153_s27 = scalar_lea.vmem %s2344_s6, %s2353_s30 }
  0x10   : > { %s372_s16 = scalar_lea.vmem %s2338_s0, %s1814_s13  ;;  %v1765_v29 = vcombine.high %v604_v27, %v608_v28  ;;  %v1764_v30 = vcombine.low %v604_v27, %v608_v28  ;;  %v612_v31 = vld [vmem:[%s2343_s5 + $0x100] sm:$0xff]  ;;  %v609_v27 = vld [vmem:[%s2343_s5 + $0xe8] sm:$0xff]  ;;  %395 = vst [vmem:[%s2153_s27] sm:$0x1] %v1931_v4  ;;  %s1731_s29 = sshll.u32 %s2353_s30, 3 }
  0x11   : > { %v414_v2 = vld [vmem:[%s372_s16] sm:$0xff]  ;;  %v415_v3 = vld [vmem:[%s372_s16 + $0x8] sm:$0xff]  ;;  %1835 = vmatpush3.bf16.msra.mxu0 %v1903_v9  ;;  %967 = vmatpush1.bf16.msra.mxu1 %v1748_v22  ;;  %s385_s15 = scalar_lea.vmem %s2346_s8, %s1731_s29  ;;  %s389_s18 = scalar_lea.vmem %s2347_s9, %s1731_s29 }
  0x12   : > { %435 = vperm.xlu1 %1896, %v414_v2   ;;  %420 = vperm.xlu0 %1895, %v414_v2   ;;  %v616_v32 = vld [vmem:[%s2343_s5 + $0x120] sm:$0xff]  ;;  %v597_v22 = vld [vmem:[%s2343_s5 + $0x88] sm:$0xff]  ;;  %s1815_s19 = sshll.u32 %s2353_s30, 7 }
  0x13   : > { %1836 = vmatprep.subr.bf16.mxu0 %v1931_v4  ;;  %968 = vmatprep.subr.bf16.mxu1 %v1757_v25  ;;  %v1773_v33 = vcombine.high %v612_v31, %v616_v32  ;;  %v1772_v34 = vcombine.low %v612_v31, %v616_v32  ;;  %v620_v35 = vld [vmem:[%s2343_s5 + $0x140] sm:$0xff]  ;;  %v1759_v25 = vcombine.high %v597_v22, %v601_v23  ;;  %v621_v31 = vld [vmem:[%s2343_s5 + $0x148] sm:$0xff]  ;;  %v587_v4 = vld [vmem:[%s2343_s5 + $0x38] sm:$0xff]  ;;  %s2311_s21 = scalar_lea.vmem %s2345_s7, %s1815_s19 }
  0x14   : > { %v624_v36 = vld [vmem:[%s2343_s5 + $0x160] sm:$0xff]  ;;  %v1758_v28 = vcombine.low %v597_v22, %v601_v23  ;;  %v625_v32 = vld [vmem:[%s2343_s5 + $0x168] sm:$0xff]  ;;  %v603_v22 = vld [vmem:[%s2343_s5 + $0xb8] sm:$0xff] }
  0x15   : > { %1837 = vmatpush3.bf16.msra.mxu0 %v1904_v10  ;;  %969 = vmatpush1.bf16.msra.mxu1 %v1756_v26  ;;  %v1781_v37 = vcombine.high %v620_v35, %v624_v36  ;;  %v1780_v38 = vcombine.low %v620_v35, %v624_v36  ;;  %v416_v45 = vld [vmem:[%s2339_s1] sm:$0xf]  ;;  %v605_v26 = vld [vmem:[%s2343_s5 + $0xc8] sm:$0xff]  ;;  %v1782_v35 = vcombine.low %v621_v31, %v625_v32 }
  0x16   : > { %439 = vperm.xlu1 %1896, %v415_v3   ;;  %425 = vperm.xlu0 %1895, %v415_v3   ;;  %v445_v49 = vrot.slane %v416_v45, %v444_v43  ;;  %v431_v50 = vrot.slane %v416_v45, %v430_v44  ;;  %v461_v51 = vrot.slane %v416_v45, %v460_v46  ;;  %v628_v36 = vld [vmem:[%s2343_s5 + $0x180] sm:$0xff] }
  0x17   : > { %1007 = vmatprep.subr.bf16.mxu0 %v1743_v20  ;;  %970 = vmatprep.subr.bf16.mxu1 %v1765_v29  ;;  %v477_v61 = vrot.slane %v416_v45, %v476_v52  ;;  %v1767_v29 = vcombine.high %v605_v26, %v609_v27  ;;  %v636_v45 = vld [vmem:[%s2343_s5 + $0x1c0] sm:$0xff] }
  0x18   : > { %v640_v46 = vld [vmem:[%s2343_s5 + $0x1e0] sm:$0xff] }
  0x19   : > { %971 = vmatpush1.bf16.msra.mxu1 %v1764_v30  ;;  %v1775_v30 = vcombine.high %v613_v13, %v617_v15  ;;  %v1796_v52 = vcombine.low %v636_v45, %v640_v46 }
  0x1a   : > { %1898 = vset.pattern.permute.xlu1 %v1932_v6  ;;  %1897 = vset.pattern.permute.xlu0 %v1932_v6 }
  0x1b   : > { %455 = vperm.xlu1 %1898, %v415_v3   ;;  %451 = vperm.xlu0 %1897, %v414_v2  }
  0x1c   : > { %972 = vmatprep.subr.bf16.mxu1 %v1773_v33  ;;  %v1774_v33 = vcombine.low %v613_v13, %v617_v15  ;;  %v607_v15 = vld [vmem:[%s2343_s5 + $0xd8] sm:$0xff] }
  0x1d   : > { %973 = vmatpush1.bf16.msra.mxu1 %v1772_v34  ;;  %v1783_v34 = vcombine.high %v621_v31, %v625_v32 }
  0x1e   : > { %974 = vmatprep.subr.bf16.mxu1 %v1781_v37  ;;  %v632_v37 = vld [vmem:[%s2343_s5 + $0x1a0] sm:$0xff] }
  0x1f   : > { %1899 = vset.pattern.permute.xlu1 %v1933_v8  ;;  %1900 = vset.pattern.permute.xlu0 %v1933_v8  ;;  %v1733_v8 = vld [vmem:[%s2340_s2] ss:$0 sm:$0xff]  ;;  %v1789_v39 = vcombine.high %v628_v36, %v632_v37  ;;  %v1788_v44 = vcombine.low %v628_v36, %v632_v37  ;;  %v618_v36 = vld [vmem:[%s2343_s5 + $0x130] sm:$0xff] }
  0x20   : > { %467 = vperm.xlu1 %1899, %v414_v2   ;;  %471 = vperm.xlu0 %1900, %v415_v3  }
  0x21   : > { %975 = vmatpush1.bf16.msra.mxu1 %v1780_v38  ;;  %v629_v38 = vld [vmem:[%s2343_s5 + $0x188] sm:$0xff] }
  0x22   : > { %976 = vmatprep.subr.bf16.mxu1 %v1789_v39  ;;  %v1136_v39 = vld [vmem:[%s2153_s27] sm:$0x1] }
  0x25   : > { %977 = vmatpush1.bf16.msra.mxu1 %v1788_v44 }
  0x91   : > { %v436_v41 = vpop.permute.xlu1 %435  ;;  %v421_v42 = vpop.permute.xlu0 %420 }
  0x92   : > { %v446_v53 = vmul.f32 %v445_v49, %v436_v41  ;;  %v432_v54 = vmul.f32 %v431_v50, %v421_v42  ;;  %v633_v41 = vld [vmem:[%s2343_s5 + $0x1a8] sm:$0xff] }
  0x93   : > { %v1790_v42 = vcombine.low %v629_v38, %v633_v41  ;;  %v1791_v43 = vcombine.high %v629_v38, %v633_v41  ;;  %v619_v38 = vld [vmem:[%s2343_s5 + $0x138] sm:$0xff] }
  0x94   : > { %v448_v62 = vadd.f32 %v446_v53, %v432_v54  ;;  %v582_v53 = vld [vmem:[%s2343_s5 + $0x10] sm:$0xff] }
  0x95   : > { %v440_v47 = vpop.permute.xlu1 %439  ;;  %v426_v48 = vpop.permute.xlu0 %425  ;;  %v586_v54 = vld [vmem:[%s2343_s5 + $0x30] sm:$0xff] }
  0x96   : > { %v447_v55 = vmul.f32 %v445_v49, %v440_v47  ;;  %v433_v56 = vmul.f32 %v431_v50, %v426_v48  ;;  %v637_v47 = vld [vmem:[%s2343_s5 + $0x1c8] sm:$0xff]  ;;  %v1797_v48 = vcombine.high %v636_v45, %v640_v46  ;;  %v622_v46 = vld [vmem:[%s2343_s5 + $0x150] sm:$0xff] }
  0x97   : > { %v641_v49 = vld [vmem:[%s2343_s5 + $0x1e8] sm:$0xff] }
  0x98   : > { %v449_v63 = vadd.f32 %v447_v55, %v433_v56  ;;  %v1798_v50 = vcombine.low %v637_v47, %v641_v49  ;;  %978 = vmatprep.subr.bf16.mxu1 %v1797_v48  ;;  %v583_v55 = vld [vmem:[%s2343_s5 + $0x18] sm:$0xff]  ;;  %v1745_v56 = vcombine.high %v582_v53, %v586_v54 }
  0x99   : > { %979 = vmatpush1.bf16.msra.mxu1 %v1796_v52 }
  0x9a   : > { %v456_v57 = vpop.permute.xlu1 %455  ;;  %v452_v58 = vpop.permute.xlu0 %451  ;;  %1050 = vmatprep.subr.bf16.mxu1 %v1745_v56  ;;  %v634_v56 = vld [vmem:[%s2343_s5 + $0x1b0] sm:$0xff] }
  0x9b   : > { %v463_v59 = vmul.f32 %v461_v51, %v456_v57  ;;  %v462_v60 = vmul.f32 %v461_v51, %v452_v58  ;;  %v1799_v51 = vcombine.high %v637_v47, %v641_v49  ;;  %v1744_v57 = vcombine.low %v582_v53, %v586_v54  ;;  %v626_v47 = vld [vmem:[%s2343_s5 + $0x170] sm:$0xff]  ;;  %v623_v49 = vld [vmem:[%s2343_s5 + $0x158] sm:$0xff] }
  0x9c   : > { %v1746_v58 = vcombine.low %v583_v55, %v587_v4  ;;  %v1785_v53 = vcombine.high %v622_v46, %v626_v47 }
  0x9d   : > { %v465_v3 = vadd.f32 %v463_v59, %v449_v63  ;;  %v464_v5 = vadd.f32 %v462_v60, %v448_v62  ;;  %v1747_v59 = vcombine.high %v583_v55, %v587_v4  ;;  %v1734_v60 = vld [vmem:[%s2342_s4] ss:$0 sm:$0xff]  ;;  %v630_v55 = vld [vmem:[%s2343_s5 + $0x190] sm:$0xff]  ;;  %v631_v4 = vld [vmem:[%s2343_s5 + $0x198] sm:$0xff] }
  0x9f   : > { %v468_v0 = vpop.permute.xlu1 %467  ;;  %v472_v2 = vpop.permute.xlu0 %471 }
  0xa0   : > { %v478_v6 = vmul.f32 %v477_v61, %v468_v0  ;;  %v479_v7 = vmul.f32 %v477_v61, %v472_v2 }
  0xa2   : > { %v480_v9 = vadd.f32 %v478_v6, %v464_v5  ;;  %v481_v10 = vadd.f32 %v479_v7, %v465_v3  ;;  %v590_v5 = vld [vmem:[%s2343_s5 + $0x50] sm:$0xff] }
  0xa3   : > { %v594_v6 = vld [vmem:[%s2343_s5 + $0x70] sm:$0xff] }
  0xa4   : > { %v488_v11 = vadd.f32 %v1733_v8, %v480_v9  ;;  %v489_v12 = vadd.f32 %v1733_v8, %v481_v10  ;;  %v591_v9 = vld [vmem:[%s2343_s5 + $0x58] sm:$0xff]  ;;  %v1753_v14 = vcombine.high %v590_v5, %v594_v6  ;;  %v1752_v23 = vcombine.low %v590_v5, %v594_v6 }
  0xa5   : > { %v595_v10 = vld [vmem:[%s2343_s5 + $0x78] sm:$0xff] }
  0xa6   : > { %v490_v17 = vmax.f32 %v488_v11, 0.0  ;;  %v491_v18 = vmax.f32 %v489_v12, 0.0  ;;  %v1755_v16 = vcombine.high %v591_v9, %v595_v10 }
  0xa8   : > { %v492_v20 = vpack.c.bf16 %v491_v18, %v490_v17  ;;  %v598_v17 = vld [vmem:[%s2343_s5 + $0x90] sm:$0xff] }
  0xa9   : > { %v602_v18 = vld [vmem:[%s2343_s5 + $0xb0] sm:$0xff] }
  0xaa   : > { %1839 = vmatmul.mubr.msk.bf16.vlgmr.msra.gmra.mrb[0].mxu0 %vm532_vm1, %v492_v20 }
  0xab   : > { %1008 = vmatpush1.bf16.msra.mxu0 %v1742_v19  ;;  %1039 = vmatprep.mubr.bf16.mxu0 %v1930_v1  ;;  %v1766_v19 = vcombine.low %v605_v26, %v609_v27  ;;  %v1761_v26 = vcombine.high %v598_v17, %v602_v18 }
  0xac   : > { %1009 = vmatprep.subr.bf16.mxu0 %v1751_v21  ;;  %v599_v21 = vld [vmem:[%s2343_s5 + $0x98] sm:$0xff] }
  0xad   : > { %v1763_v27 = vcombine.high %v599_v21, %v603_v22  ;;  %v1762_v32 = vcombine.low %v599_v21, %v603_v22  ;;  %v1935_v21 = vmov 1966171168  }
  0xae   : > { %v1402_v22 = vunpack.c.l.s4 %v1935_v21 }
  0xaf   : > { %1010 = vmatpush1.bf16.msra.mxu0 %v1750_v24 }
  0xb0   : > { %1011 = vmatprep.subr.bf16.mxu0 %v1759_v25  ;;  %v1754_v25 = vcombine.low %v591_v9, %v595_v10 }
  0xb3   : > { %1012 = vmatpush1.bf16.msra.mxu0 %v1758_v28  ;;  %v606_v28 = vld [vmem:[%s2343_s5 + $0xd0] sm:$0xff] }
  0xb4   : > { %1013 = vmatprep.subr.bf16.mxu0 %v1767_v29  ;;  %v610_v29 = vld [vmem:[%s2343_s5 + $0xf0] sm:$0xff] }
  0xb5   : > { %v1768_v41 = vcombine.low %v606_v28, %v610_v29 }
  0xb7   : > { %1014 = vmatpush1.bf16.msra.mxu0 %v1766_v19  ;;  %v611_v19 = vld [vmem:[%s2343_s5 + $0xf8] sm:$0xff] }
  0xb8   : > { %1015 = vmatprep.subr.bf16.mxu0 %v1775_v30  ;;  %v1760_v30 = vcombine.low %v598_v17, %v602_v18 }
  0xbb   : > { %1016 = vmatpush1.bf16.msra.mxu0 %v1774_v33  ;;  %v1769_v33 = vcombine.high %v606_v28, %v610_v29 }
  0xbc   : > { %1017 = vmatprep.subr.bf16.mxu0 %v1783_v34  ;;  %v1771_v34 = vcombine.high %v607_v15, %v611_v19 }
  0xbf   : > { %1018 = vmatpush1.bf16.msra.mxu0 %v1782_v35  ;;  %v614_v35 = vld [vmem:[%s2343_s5 + $0x110] sm:$0xff] }
  0xc0   : > { %1019 = vmatprep.subr.bf16.mxu0 %v1791_v43  ;;  %v1770_v43 = vcombine.low %v607_v15, %v611_v19  ;;  %v1777_v44 = vcombine.high %v614_v35, %v618_v36 }
  0xc3   : > { %1020 = vmatpush1.bf16.msra.mxu0 %v1790_v42 }
  0xc4   : > { %1021 = vmatprep.subr.bf16.mxu0 %v1799_v51  ;;  %v1776_v51 = vcombine.low %v614_v35, %v618_v36 }
  0xc7   : > { %1022 = vmatpush1.bf16.msra.mxu0 %v1798_v50  ;;  %v627_v50 = vld [vmem:[%s2343_s5 + $0x178] sm:$0xff] }
  0xc8   : > { %1093 = vmatprep.subr.bf16.mxu0 %v1747_v59  ;;  %v1787_v54 = vcombine.high %v623_v49, %v627_v50  ;;  %v1786_v59 = vcombine.low %v623_v49, %v627_v50 }
 0x17d   : > { %v570_v61 = vpop.f32.mrb[0].mxu0 }
 0x17e   : > { %v571_v62 = vadd.f32 %v1734_v60, %v570_v61  ;;  %v1840_v63 = vpop.f32.mrb[1].mxu0 }
 0x17f   : > { %v573_v0 = vpop.f32.mrb[2].mxu0  ;;  %v642_v63 = vld [vmem:[%s2343_s5 + $0x1f0] sm:$0xff] }
 0x180   : > { %v574_v2 = vadd.f32 %v1734_v60, %v573_v0  ;;  %v1841_v3 = vpop.f32.mrb[3].mxu0  ;;  %v577_v7 = vmax.f32 %v571_v62, 0.0  ;;  %v1793_v60 = vcombine.high %v630_v55, %v634_v56  ;;  %v638_v62 = vld [vmem:[%s2343_s5 + $0x1d0] sm:$0xff]  ;;  %v639_v0 = vld [vmem:[%s2343_s5 + $0x1d8] sm:$0xff] }
 0x181   : > { %v1792_v3 = vcombine.low %v630_v55, %v634_v56  ;;  %v1801_v6 = vcombine.high %v638_v62, %v642_v63 }
 0x182   : > { %v578_v8 = vmax.f32 %v574_v2, 0.0  ;;  %v643_v2 = vld [vmem:[%s2343_s5 + $0x1f8] sm:$0xff] }
 0x183   : > { %v1802_v9 = vcombine.low %v639_v0, %v643_v2 }
 0x184   : > { %v2184_v11 = vpack.c.bf16 %v578_v8, %v577_v7  ;;  %v1137_v12 = vadd.f32 %v578_v8, %v577_v7  ;;  %v1803_v7 = vcombine.high %v639_v0, %v643_v2  ;;  %v1800_v8 = vcombine.low %v638_v62, %v642_v63 }
 0x186   : > { %v1138_v20 = vrot.slane %v1137_v12, 4  ;;  %1162 = vxpose.xlu1.c.b16.start.end [1/1] (short) %v2184_v11, 128  ;;  %997 = vmatmul.mubr.bf16.vlgmr.msra.gmra.mrb[0].mxu1 %v2184_v11 }
 0x187   : > { %1040 = vmatmul.mubr.bf16.vlgmr.msra.gmra.mrb[4].mxu0 %v2184_v11  ;;  %1051 = vmatpush1.bf16.msra.mxu1 %v1744_v57  ;;  %v635_v57 = vld [vmem:[%s2343_s5 + $0x1b8] sm:$0xff] }
 0x188   : > { %v1139_v24 = vadd.f32 %v1138_v20, %v1137_v12  ;;  %1094 = vmatpush1.bf16.msra.mxu0 %v1746_v58  ;;  %1052 = vmatprep.subr.bf16.mxu1 %v1753_v14  ;;  %v1784_v58 = vcombine.low %v622_v46, %v626_v47  ;;  %v1795_v61 = vcombine.high %v631_v4, %v635_v57 }
 0x189   : > { %1095 = vmatprep.subr.bf16.mxu0 %v1755_v16  ;;  %1082 = vmatprep.mubr.bf16.mxu1 %v1930_v1  ;;  %v1794_v5 = vcombine.low %v631_v4, %v635_v57 }
 0x18a   : > { %v1140_v13 = vrot.slane %v1139_v24, 2  ;;  %1125 = vmatprep.mubr.bf16.mxu0 %v1930_v1  ;;  %v615_v1 = vld [vmem:[%s2343_s5 + $0x118] sm:$0xff] }
 0x18b   : > { %1053 = vmatpush1.bf16.msra.mxu1 %v1752_v23  ;;  %v1779_v45 = vcombine.high %v615_v1, %v619_v38  ;;  %v1778_v52 = vcombine.low %v615_v1, %v619_v38  ;;  %v1403_v23 = vunpack.c.0.s8 %v1402_v22 }
 0x18c   : > { %v1141_v31 = vadd.f32 %v1140_v13, %v1139_v24  ;;  %1096 = vmatpush1.bf16.msra.mxu0 %v1754_v25  ;;  %1054 = vmatprep.subr.bf16.mxu1 %v1761_v26 }
 0x18d   : > { %1097 = vmatprep.subr.bf16.mxu0 %v1763_v27  ;;  %v2280_v29 = vsub.s32 %v1403_v23, %v2079_v40 }
 0x18e   : > { %v1142_v37 = vrot.slane %v1141_v31, 1 }
 0x18f   : > { %1055 = vmatpush1.bf16.msra.mxu1 %v1760_v30 }
 0x190   : > { %v1143_v42 = vadd.f32 %v1142_v37, %v1141_v31  ;;  %1098 = vmatpush1.bf16.msra.mxu0 %v1762_v32  ;;  %1056 = vmatprep.subr.bf16.mxu1 %v1769_v33 }
 0x191   : > { %1099 = vmatprep.subr.bf16.mxu0 %v1771_v34 }
 0x192   : > { %v1144_v48 = vadd.f32 %v1143_v42, %v1136_v39 }
 0x193   : > { %1057 = vmatpush1.bf16.msra.mxu1 %v1768_v41 }
 0x194   : > { %1145 = vst [vmem:[%s2153_s27] sm:$0x1] %v1144_v48  ;;  %1100 = vmatpush1.bf16.msra.mxu0 %v1770_v43  ;;  %1058 = vmatprep.subr.bf16.mxu1 %v1777_v44 }
 0x195   : > { %1101 = vmatprep.subr.bf16.mxu0 %v1779_v45 }
 0x197   : > { %1059 = vmatpush1.bf16.msra.mxu1 %v1776_v51 }
 0x198   : > { %1102 = vmatpush1.bf16.msra.mxu0 %v1778_v52  ;;  %1060 = vmatprep.subr.bf16.mxu1 %v1785_v53 }
 0x199   : > { %1103 = vmatprep.subr.bf16.mxu0 %v1787_v54 }
 0x19b   : > { %1061 = vmatpush1.bf16.msra.mxu1 %v1784_v58 }
 0x19c   : > { %1104 = vmatpush1.bf16.msra.mxu0 %v1786_v59  ;;  %1062 = vmatprep.subr.bf16.mxu1 %v1793_v60 }
 0x19d   : > { %1105 = vmatprep.subr.bf16.mxu0 %v1795_v61 }
 0x19f   : > { %1063 = vmatpush1.bf16.msra.mxu1 %v1792_v3 }
 0x1a0   : > { %1106 = vmatpush1.bf16.msra.mxu0 %v1794_v5  ;;  %1064 = vmatprep.subr.bf16.mxu1 %v1801_v6 }
 0x1a1   : > { %1107 = vmatprep.subr.bf16.mxu0 %v1803_v7 }
 0x1a3   : > { %1065 = vmatpush1.bf16.msra.mxu1 %v1800_v8 }
 0x1a4   : > { %1108 = vmatpush1.bf16.msra.mxu0 %v1802_v9  ;;  %1860 = vmatprep.subr.bf16.mxu1 %v2184_v11 }
 0x1a5   : > { %1842 = vmatprep.subr.bf16.mxu0 %v2184_v11 }
 0x1a6   : > { %1083 = vmatmul.mubr.bf16.vlgmr.msra.gmra.mrb[4].mxu1 %v2184_v11 }
 0x1a7   : > { %1126 = vmatmul.mubr.bf16.vlgmr.msra.gmra.mrb[8].mxu0 %v2184_v11  ;;  %1861 = vmatpush3.bf16.msra.mxu1 %v2184_v11 }
 0x1a8   : > { %1843 = vmatpush3.bf16.msra.mxu0 %v2184_v11 }
 0x1ec   : > { %v1170_v10 = vpop.trf.xlu1 }
 0x1ed   : > { %1844 = vmatprep.mubr.msk.bf16.mxu0 %vm1178_vm2, %v1170_v10 }
 0x1f0   : > { %v1171_v12 = vpop.trf.xlu1 }
 0x1f1   : > { %1845 = vmatmul.mubr.msk.bf16.vlgmr.msra.gmra.mrb[12].mxu0 %vm1178_vm2, %v1171_v12 }
 0x1f4   : > { %v1172_v14 = vpop.trf.xlu1 }
 0x1f5   : > { %1848 = vmatprep.mubr.msk.bf16.mxu1 %vm1178_vm2, %v1172_v14 }
 0x1f8   : > { %v1173_v16 = vpop.trf.xlu1 }
 0x1f9   : > { %1849 = vmatmul.mubr.msk.bf16.vlgmr.msra.gmra.mrb[8].mxu1 %vm1178_vm2, %v1173_v16 }
 0x1fc   : > { %v1174_v17 = vpop.trf.xlu1 }
 0x1fd   : > { %1852 = vmatprep.mubr.msk.bf16.mxu1 %vm1178_vm2, %v1174_v17 }
 0x200   : > { %v1175_v18 = vpop.trf.xlu1 }
 0x201   : > { %1853 = vmatmul.mubr.msk.bf16.gmra.mrb[12].mxu1 %vm1178_vm2, %v1175_v18 }
 0x204   : > { %v1176_v11 = vpop.trf.xlu1 }
 0x205   : > { %1856 = vmatprep.mubr.msk.bf16.mxu1 %vm1178_vm2, %v1176_v11 }
 0x208   : > { %v1177_v20 = vpop.trf.xlu1 }
 0x209   : > { %1857 = vmatmul.mubr.msk.bf16.gmra.mrb[16].mxu1 %vm1178_vm2, %v1177_v20 }
 0x259   : > { %v998_v24 = vpop.f32.mrb[0].mxu1 }
 0x25a   : > { %v1041_v25 = vpop.f32.mrb[4].mxu0  ;;  %v1000_v26 = vpop.f32.mrb[1].mxu1 }
 0x25b   : > { %v1043_v27 = vpop.f32.mrb[5].mxu0  ;;  %v1002_v28 = vpop.f32.mrb[2].mxu1 }
 0x25c   : > { %v1333_v13 = vmax.f32 %v998_v24, %v1002_v28  ;;  %v1450_v15 = vmin.f32 %v998_v24, %v1002_v28  ;;  %v1045_v19 = vpop.f32.mrb[6].mxu0  ;;  %v1004_v30 = vpop.f32.mrb[3].mxu1 }
 0x25d   : > { %v1347_v31 = vmax.f32 %v1041_v25, %v1045_v19  ;;  %v1464_v32 = vmin.f32 %v1041_v25, %v1045_v19  ;;  %v1340_v33 = vmax.f32 %v1000_v26, %v1004_v30  ;;  %v1457_v34 = vmin.f32 %v1000_v26, %v1004_v30  ;;  %v1047_v35 = vpop.f32.mrb[7].mxu0 }
 0x25e   : > { %v1334_v36 = vrot.slane %v1333_v13, 4  ;;  %v1451_v37 = vrot.slane %v1450_v15, 4  ;;  %v1354_v1 = vmax.f32 %v1043_v27, %v1047_v35  ;;  %v1471_v38 = vmin.f32 %v1043_v27, %v1047_v35 }
 0x25f   : > { %v1348_v39 = vrot.slane %v1347_v31, 4  ;;  %v1465_v41 = vrot.slane %v1464_v32, 4  ;;  %v1341_v42 = vrot.slane %v1340_v33, 4  ;;  %v1458_v43 = vrot.slane %v1457_v34, 4 }
 0x260   : > { %v1335_v44 = vmax.f32 %v1333_v13, %v1334_v36  ;;  %v1452_v40 = vmin.f32 %v1450_v15, %v1451_v37  ;;  %v1355_v45 = vrot.slane %v1354_v1, 4  ;;  %v1472_v46 = vrot.slane %v1471_v38, 4 }
 0x261   : > { %v1349_v47 = vmax.f32 %v1347_v31, %v1348_v39  ;;  %v1466_v48 = vmin.f32 %v1464_v32, %v1465_v41  ;;  %v1342_v49 = vmax.f32 %v1340_v33, %v1341_v42  ;;  %v1459_v50 = vmin.f32 %v1457_v34, %v1458_v43 }
 0x262   : > { %v1336_v51 = vrot.slane %v1335_v44, 2  ;;  %v1453_v52 = vrot.slane %v1452_v40, 2  ;;  %v1356_v53 = vmax.f32 %v1354_v1, %v1355_v45  ;;  %v1473_v54 = vmin.f32 %v1471_v38, %v1472_v46 }
 0x263   : > { %v1350_v55 = vrot.slane %v1349_v47, 2  ;;  %v1467_v56 = vrot.slane %v1466_v48, 2  ;;  %v1343_v4 = vrot.slane %v1342_v49, 2  ;;  %v1460_v57 = vrot.slane %v1459_v50, 2 }
 0x264   : > { %v1337_v58 = vmax.f32 %v1335_v44, %v1336_v51  ;;  %v1454_v59 = vmin.f32 %v1452_v40, %v1453_v52  ;;  %v1357_v60 = vrot.slane %v1356_v53, 2  ;;  %v1474_v61 = vrot.slane %v1473_v54, 2 }
 0x265   : > { %v1351_v62 = vmax.f32 %v1349_v47, %v1350_v55  ;;  %v1468_v63 = vmin.f32 %v1466_v48, %v1467_v56  ;;  %v1344_v0 = vmax.f32 %v1342_v49, %v1343_v4  ;;  %v1461_v2 = vmin.f32 %v1459_v50, %v1460_v57 }
 0x266   : > { %v1338_v3 = vrot.slane %v1337_v58, 1  ;;  %v1455_v5 = vrot.slane %v1454_v59, 1  ;;  %v1358_v6 = vmax.f32 %v1356_v53, %v1357_v60  ;;  %v1475_v7 = vmin.f32 %v1473_v54, %v1474_v61 }
 0x267   : > { %v1352_v8 = vrot.slane %v1351_v62, 1  ;;  %v1469_v9 = vrot.slane %v1468_v63, 1  ;;  %v1345_v10 = vrot.slane %v1344_v0, 1  ;;  %v1462_v12 = vrot.slane %v1461_v2, 1 }
 0x268   : > { %v1339_v14 = vmax.f32 %v1337_v58, %v1338_v3  ;;  %v1456_v16 = vmin.f32 %v1454_v59, %v1455_v5  ;;  %v1359_v17 = vrot.slane %v1358_v6, 1  ;;  %v1476_v18 = vrot.slane %v1475_v7, 1 }
 0x269   : > { %v1353_v11 = vmax.f32 %v1351_v62, %v1352_v8  ;;  %v1470_v20 = vmin.f32 %v1468_v63, %v1469_v9  ;;  %v1346_v21 = vmax.f32 %v1344_v0, %v1345_v10  ;;  %v1463_v22 = vmin.f32 %v1461_v2, %v1462_v12 }
 0x26a   : > { %v1360_v23 = vmax.f32 %v1358_v6, %v1359_v17  ;;  %v1477_v24 = vmin.f32 %v1475_v7, %v1476_v18 }
 0x26b   : > { %v1397_v25 = vcombine.low %v1339_v14, %v1346_v21  ;;  %v1514_v26 = vcombine.low %v1456_v16, %v1463_v22 }
 0x26c   : > { %v1398_v27 = vcombine.low %v1353_v11, %v1360_v23  ;;  %v1515_v28 = vcombine.low %v1470_v20, %v1477_v24 }
 0x26d   : > { %v1407_v13 = vrot.slane %v1397_v25, %v2280_v29  ;;  %v1524_v15 = vrot.slane %v1514_v26, %v2280_v29 }
 0x26e   : > { %v1414_v19 = vrot.slane %v1398_v27, %v2280_v29  ;;  %v1531_v30 = vrot.slane %v1515_v28, %v2280_v29 }
 0x270   : > { %v1429_v31 = vcombine.low %v1407_v13, %v1414_v19  ;;  %v1546_v32 = vcombine.low %v1524_v15, %v1531_v30 }
 0x272   : > { %v2287_v33 = vrot.slane %v1429_v31, %v2280_v29  ;;  %v2290_v34 = vrot.slane %v1546_v32, %v2280_v29 }
 0x279   : > { %v1084_v35 = vpop.f32.mrb[4].mxu1 }
 0x27a   : > { %v1127_v36 = vpop.f32.mrb[8].mxu0  ;;  %v1086_v37 = vpop.f32.mrb[5].mxu1 }
 0x27b   : > { %v1129_v1 = vpop.f32.mrb[9].mxu0  ;;  %v1088_v38 = vpop.f32.mrb[6].mxu1 }
 0x27c   : > { %v1361_v39 = vmax.f32 %v1084_v35, %v1088_v38  ;;  %v1478_v41 = vmin.f32 %v1084_v35, %v1088_v38  ;;  %v1131_v42 = vpop.f32.mrb[10].mxu0  ;;  %v1090_v43 = vpop.f32.mrb[7].mxu1 }
 0x27d   : > { %v1375_v44 = vmax.f32 %v1127_v36, %v1131_v42  ;;  %v1492_v40 = vmin.f32 %v1127_v36, %v1131_v42  ;;  %v1368_v45 = vmax.f32 %v1086_v37, %v1090_v43  ;;  %v1485_v46 = vmin.f32 %v1086_v37, %v1090_v43  ;;  %v1133_v47 = vpop.f32.mrb[11].mxu0 }
 0x27e   : > { %v1362_v48 = vrot.slane %v1361_v39, 4  ;;  %v1479_v49 = vrot.slane %v1478_v41, 4  ;;  %v1382_v50 = vmax.f32 %v1129_v1, %v1133_v47  ;;  %v1499_v51 = vmin.f32 %v1129_v1, %v1133_v47 }
 0x27f   : > { %v1376_v52 = vrot.slane %v1375_v44, 4  ;;  %v1493_v53 = vrot.slane %v1492_v40, 4  ;;  %v1369_v54 = vrot.slane %v1368_v45, 4  ;;  %v1486_v55 = vrot.slane %v1485_v46, 4 }
 0x280   : > { %v1363_v56 = vmax.f32 %v1361_v39, %v1362_v48  ;;  %v1480_v4 = vmin.f32 %v1478_v41, %v1479_v49  ;;  %v1383_v57 = vrot.slane %v1382_v50, 4  ;;  %v1500_v58 = vrot.slane %v1499_v51, 4 }
 0x281   : > { %v1377_v59 = vmax.f32 %v1375_v44, %v1376_v52  ;;  %v1494_v60 = vmin.f32 %v1492_v40, %v1493_v53  ;;  %v1370_v61 = vmax.f32 %v1368_v45, %v1369_v54  ;;  %v1487_v62 = vmin.f32 %v1485_v46, %v1486_v55 }
 0x282   : > { %v1364_v63 = vrot.slane %v1363_v56, 2  ;;  %v1481_v0 = vrot.slane %v1480_v4, 2  ;;  %v1384_v2 = vmax.f32 %v1382_v50, %v1383_v57  ;;  %v1501_v3 = vmin.f32 %v1499_v51, %v1500_v58 }
 0x283   : > { %v1378_v5 = vrot.slane %v1377_v59, 2  ;;  %v1495_v6 = vrot.slane %v1494_v60, 2  ;;  %v1371_v7 = vrot.slane %v1370_v61, 2  ;;  %v1488_v8 = vrot.slane %v1487_v62, 2 }
 0x284   : > { %v1365_v9 = vmax.f32 %v1363_v56, %v1364_v63  ;;  %v1482_v10 = vmin.f32 %v1480_v4, %v1481_v0  ;;  %v1385_v12 = vrot.slane %v1384_v2, 2  ;;  %v1502_v14 = vrot.slane %v1501_v3, 2 }
 0x285   : > { %v1379_v16 = vmax.f32 %v1377_v59, %v1378_v5  ;;  %v1496_v17 = vmin.f32 %v1494_v60, %v1495_v6  ;;  %v1372_v18 = vmax.f32 %v1370_v61, %v1371_v7  ;;  %v1489_v11 = vmin.f32 %v1487_v62, %v1488_v8 }
 0x286   : > { %v1366_v20 = vrot.slane %v1365_v9, 1  ;;  %v1483_v21 = vrot.slane %v1482_v10, 1  ;;  %v1386_v22 = vmax.f32 %v1384_v2, %v1385_v12  ;;  %v1503_v23 = vmin.f32 %v1501_v3, %v1502_v14 }
 0x287   : > { %v1380_v24 = vrot.slane %v1379_v16, 1  ;;  %v1497_v25 = vrot.slane %v1496_v17, 1  ;;  %v1373_v26 = vrot.slane %v1372_v18, 1  ;;  %v1490_v27 = vrot.slane %v1489_v11, 1 }
 0x288   : > { %v1367_v28 = vmax.f32 %v1365_v9, %v1366_v20  ;;  %v1484_v13 = vmin.f32 %v1482_v10, %v1483_v21  ;;  %v1387_v15 = vrot.slane %v1386_v22, 1  ;;  %v1504_v19 = vrot.slane %v1503_v23, 1 }
 0x289   : > { %v1381_v30 = vmax.f32 %v1379_v16, %v1380_v24  ;;  %v1498_v31 = vmin.f32 %v1496_v17, %v1497_v25  ;;  %v1374_v32 = vmax.f32 %v1372_v18, %v1373_v26  ;;  %v1491_v35 = vmin.f32 %v1489_v11, %v1490_v27 }
 0x28a   : > { %v1388_v36 = vmax.f32 %v1386_v22, %v1387_v15  ;;  %v1505_v37 = vmin.f32 %v1503_v23, %v1504_v19 }
 0x28b   : > { %v1399_v1 = vcombine.low %v1367_v28, %v1374_v32  ;;  %v1516_v38 = vcombine.low %v1484_v13, %v1491_v35 }
 0x28c   : > { %v1400_v39 = vcombine.low %v1381_v30, %v1388_v36  ;;  %v1517_v41 = vcombine.low %v1498_v31, %v1505_v37 }
 0x28d   : > { %v1421_v42 = vrot.slane %v1399_v1, %v2280_v29  ;;  %v1538_v43 = vrot.slane %v1516_v38, %v2280_v29 }
 0x28e   : > { %v1428_v44 = vrot.slane %v1400_v39, %v2280_v29  ;;  %v1545_v40 = vrot.slane %v1517_v41, %v2280_v29 }
 0x290   : > { %v1430_v45 = vcombine.low %v1421_v42, %v1428_v44  ;;  %v1547_v46 = vcombine.low %v1538_v43, %v1545_v40 }
 0x292   : > { %v1444_v47 = vrot.slane %v1430_v45, %v2280_v29  ;;  %v1561_v48 = vrot.slane %v1547_v46, %v2280_v29 }
 0x294   : > { %v1445_v49 = vcombine.low %v2287_v33, %v1444_v47  ;;  %v1562_v50 = vcombine.low %v2290_v34, %v1561_v48 }
 0x296   : > { %1448 = vst [vmem:[%s385_s15] sm:$0xff] %v1445_v49  ;;  %1565 = vst [vmem:[%s389_s18] sm:$0xff] %v1562_v50 }
 0x2c4   : > { %v1846_v29 = vpop.f32.mrb[12].mxu0 }
 0x2c5   : > { %v1237_v33 = vpop.f32.mrb[13].mxu0  ;;  %1318 = vst [vmem:[%s2311_s21 + $0x10] sm:$0xff] %v1846_v29 }
 0x2c6   : > { %v1847_v34 = vpop.f32.mrb[14].mxu0  ;;  %1316 = vst [vmem:[%s2311_s21] sm:$0xff] %v1237_v33 }
 0x2c7   : > { %v1240_v51 = vpop.f32.mrb[15].mxu0  ;;  %1319 = vst [vmem:[%s2311_s21 + $0x18] sm:$0xff] %v1847_v34 }
 0x2c8   : > { %1317 = vst [vmem:[%s2311_s21 + $0x8] sm:$0xff] %v1240_v51 }
 0x2cc   : > { %v1850_v52 = vpop.f32.mrb[8].mxu1 }
 0x2cd   : > { %v1253_v53 = vpop.f32.mrb[9].mxu1  ;;  %1322 = vst [vmem:[%s2311_s21 + $0x30] sm:$0xff] %v1850_v52 }
 0x2ce   : > { %v1851_v54 = vpop.f32.mrb[10].mxu1  ;;  %1320 = vst [vmem:[%s2311_s21 + $0x20] sm:$0xff] %v1253_v53 }
 0x2cf   : > { %v1256_v55 = vpop.f32.mrb[11].mxu1  ;;  %1323 = vst [vmem:[%s2311_s21 + $0x38] sm:$0xff] %v1851_v54 }
 0x2d0   : > { %1321 = vst [vmem:[%s2311_s21 + $0x28] sm:$0xff] %v1256_v55 }
 0x2d4   : > { %v1854_v56 = vpop.f32.mrb[12].mxu1 }
 0x2d5   : > { %v1269_v4 = vpop.f32.mrb[13].mxu1  ;;  %1326 = vst [vmem:[%s2311_s21 + $0x50] sm:$0xff] %v1854_v56 }
 0x2d6   : > { %v1855_v57 = vpop.f32.mrb[14].mxu1  ;;  %1324 = vst [vmem:[%s2311_s21 + $0x40] sm:$0xff] %v1269_v4 }
 0x2d7   : > { %v1272_v58 = vpop.f32.mrb[15].mxu1  ;;  %1327 = vst [vmem:[%s2311_s21 + $0x58] sm:$0xff] %v1855_v57 }
 0x2d8   : > { %1325 = vst [vmem:[%s2311_s21 + $0x48] sm:$0xff] %v1272_v58 }
 0x2dc   : > { %v1858_v59 = vpop.f32.mrb[16].mxu1 }
 0x2dd   : > { %v1285_v60 = vpop.f32.mrb[17].mxu1  ;;  %1330 = vst [vmem:[%s2311_s21 + $0x70] sm:$0xff] %v1858_v59 }
 0x2de   : > { %v1859_v61 = vpop.f32.mrb[18].mxu1  ;;  %1328 = vst [vmem:[%s2311_s21 + $0x60] sm:$0xff] %v1285_v60 }
 0x2df   : > { %v1288_v62 = vpop.f32.mrb[19].mxu1  ;;  %1331 = vst [vmem:[%s2311_s21 + $0x78] sm:$0xff] %v1859_v61 }
 0x2e0   : > { %1329 = vst [vmem:[%s2311_s21 + $0x68] sm:$0xff] %v1288_v62 }
 0x2e1 PF: > { %s20_s11 = sadd.s32 1, %s1927_s11   ;;  %s2348_s30 = smov %s1923_s10 }
 0x2e2   : > { %p17_p5 = scmp.ge.s32.totalorder %s20_s11, 4   ;;  %s2349_s10 = smov %s2351_s12 }
 0x2e4   :  { %19 = sbr.rel (!%p17_p5) target bundleno = 2 (0x2), region = 114 }

// kernel: tnet_forward.5
= control target key start
LH: loop header
LB: loop body
LE: loop exit
PB: predicated region body
PF: predicated region fallthrough
CT: control target
= control target key end

     0   :  { %v48_v37 = vlaneseq  ;;  %v3984_v38 = vmov 1983009808   ;;  %vm2165_vm9 = vcmask 1041408   ;;  %s5392_s4 = inlined_call_operand.vmem [shape: bf16[1024,512], index: 4, kind: input, shape index: {}]   ;;  %s5393_s2 = inlined_call_operand.vmem [shape: f32[1,1024], index: 2, kind: input, shape index: {}]   ;;  %s5394_s0 = inlined_call_operand.vmem [shape: f32[2,1024], index: 0, kind: input, shape index: {}]   ;;  %s5395_s1 = inlined_call_operand.vmem [shape: f32[2,1024], index: 1, kind: input, shape index: {}]   ;;  %s5396_s3 = inlined_call_operand.vmem [shape: f32[1,1024], index: 3, kind: input, shape index: {}]   ;;  %s5397_s7 = inlined_call_operand.vmem [shape: bf16[512,256], index: 7, kind: input, shape index: {}]   ;;  %s5398_s5 = inlined_call_operand.vmem [shape: f32[1,512], index: 5, kind: input, shape index: {}]   ;;  %s5399_s6 = inlined_call_operand.vmem [shape: f32[1,512], index: 6, kind: input, shape index: {}]   ;;  %s5400_s10 = inlined_call_operand.vmem [shape: f32[256,128], index: 10, kind: input, shape index: {}]   ;;  %s5401_s8 = inlined_call_operand.vmem [shape: f32[1,256], index: 8, kind: input, shape index: {}]   ;;  %s5402_s9 = inlined_call_operand.vmem [shape: f32[1,256], index: 9, kind: input, shape index: {}]   ;;  %s5403_s11 = inlined_call_operand.vmem [shape: f32[1,128], index: 11, kind: input, shape index: {}]   ;;  %s5404_s12 = inlined_call_operand.vmem [shape: f32[2,128], index: 12, kind: output, shape index: {}]  }
   0x1   :  { %v3488_v0 = vld [vmem:[%s5392_s4 + $0x4] ss:$16 sps:$4 sm:$0xff]   ;;  %v3492_v2 = vld [vmem:[%s5392_s4] ss:$16 sps:$4 sm:$0xff]   ;;  %v92_v39 = vunpack.c.l.s4 %v3984_v38  ;;  %v4228_v61 = vld [vmem:[%s5394_s0 + $0x8] sm:$0xff] }
   0x2   :  { %v3490_v1 = vld [vmem:[%s5392_s4 + $0x204] ss:$16 sps:$4 sm:$0xff]   ;;  %1835 = vmatprep.subr.bf16.mxu1 %v3488_v0  ;;  %v3493_v3 = vld [vmem:[%s5392_s4 + $0x200] ss:$16 sps:$4 sm:$0xff]   ;;  %v4175_v44 = vshrl.u32 %v48_v37, 7 }
   0x3   :  { %1876 = vmatprep.subr.bf16.mxu0 %v3490_v1  ;;  %v3494_v4 = vld [vmem:[%s5392_s4 + $0x24] ss:$16 sps:$4 sm:$0xff]   ;;  %1836 = vmatpush1.bf16.msra.mxu1 %v3492_v2  ;;  %v3498_v6 = vld [vmem:[%s5392_s4 + $0x20] ss:$16 sps:$4 sm:$0xff]   ;;  %v93_v45 = vunpack.c.0.s8 %v92_v39  ;;  %v4242_v2 = vld [vmem:[%s5395_s1 + $0x8] sm:$0xff] }
   0x4   :  { %1877 = vmatpush1.bf16.msra.mxu0 %v3493_v3  ;;  %v3496_v5 = vld [vmem:[%s5392_s4 + $0x224] ss:$16 sps:$4 sm:$0xff]   ;;  %1837 = vmatprep.subr.bf16.mxu1 %v3494_v4  ;;  %v3499_v7 = vld [vmem:[%s5392_s4 + $0x220] ss:$16 sps:$4 sm:$0xff]   ;;  %v4190_v50 = vsub.s32 1, %v4175_v44  ;;  %v4196_v52 = vsub.s32 0, %v4175_v44 }
   0x5   :  { %1878 = vmatprep.subr.bf16.mxu0 %v3496_v5  ;;  %v3500_v8 = vld [vmem:[%s5392_s4 + $0x44] ss:$16 sps:$4 sm:$0xff]   ;;  %v3504_v10 = vld [vmem:[%s5392_s4 + $0x40] ss:$16 sps:$4 sm:$0xff]   ;;  %v4193_v51 = vsub.s32 %v93_v45, %v4175_v44  ;;  %v4202_v54 = vsub.s32 3, %v4175_v44  ;;  %v4205_v55 = vsub.s32 2, %v4175_v44 }
   0x6   :  { %v3502_v9 = vld [vmem:[%s5392_s4 + $0x244] ss:$16 sps:$4 sm:$0xff]   ;;  %v3505_v11 = vld [vmem:[%s5392_s4 + $0x240] ss:$16 sps:$4 sm:$0xff]   ;;  %v4219_v59 = vsub.s32 5, %v4175_v44  ;;  %v3985_v3 = vmov 0  }
   0x7   :  { %1838 = vmatpush1.bf16.msra.mxu1 %v3498_v6  ;;  %v3506_v12 = vld [vmem:[%s5392_s4 + $0x64] ss:$16 sps:$4 sm:$0xff]   ;;  %v3510_v14 = vld [vmem:[%s5392_s4 + $0x60] ss:$16 sps:$4 sm:$0xff]   ;;  %v107_v6 = vcombine.high %v4228_v61, %v4228_v61 }
   0x8   :  { %1879 = vmatpush1.bf16.msra.mxu0 %v3499_v7  ;;  %1839 = vmatprep.subr.bf16.mxu1 %v3500_v8  ;;  %v3508_v13 = vld [vmem:[%s5392_s4 + $0x264] ss:$16 sps:$4 sm:$0xff]   ;;  %v3511_v15 = vld [vmem:[%s5392_s4 + $0x260] ss:$16 sps:$4 sm:$0xff]  }
   0x9   :  { %1880 = vmatprep.subr.bf16.mxu0 %v3502_v9  ;;  %v3512_v16 = vld [vmem:[%s5392_s4 + $0x84] ss:$16 sps:$4 sm:$0xff]   ;;  %v3516_v18 = vld [vmem:[%s5392_s4 + $0x80] ss:$16 sps:$4 sm:$0xff]  }
   0xa   :  { %v3514_v17 = vld [vmem:[%s5392_s4 + $0x284] ss:$16 sps:$4 sm:$0xff]   ;;  %v3517_v19 = vld [vmem:[%s5392_s4 + $0x280] ss:$16 sps:$4 sm:$0xff]  }
   0xb   :  { %1840 = vmatpush1.bf16.msra.mxu1 %v3504_v10  ;;  %v3518_v20 = vld [vmem:[%s5392_s4 + $0xa4] ss:$16 sps:$4 sm:$0xff]   ;;  %v3522_v22 = vld [vmem:[%s5392_s4 + $0xa0] ss:$16 sps:$4 sm:$0xff]  }
   0xc   :  { %1881 = vmatpush1.bf16.msra.mxu0 %v3505_v11  ;;  %1841 = vmatprep.subr.bf16.mxu1 %v3506_v12  ;;  %v3520_v21 = vld [vmem:[%s5392_s4 + $0x2a4] ss:$16 sps:$4 sm:$0xff]   ;;  %v3523_v23 = vld [vmem:[%s5392_s4 + $0x2a0] ss:$16 sps:$4 sm:$0xff]   ;;  %v151_v12 = vcombine.high %v4242_v2, %v4242_v2 }
   0xd   :  { %1882 = vmatprep.subr.bf16.mxu0 %v3508_v13  ;;  %v3524_v24 = vld [vmem:[%s5392_s4 + $0xc4] ss:$16 sps:$4 sm:$0xff]   ;;  %v3528_v26 = vld [vmem:[%s5392_s4 + $0xc0] ss:$16 sps:$4 sm:$0xff]  }
   0xe   :  { %v3526_v25 = vld [vmem:[%s5392_s4 + $0x2c4] ss:$16 sps:$4 sm:$0xff]   ;;  %v3529_v27 = vld [vmem:[%s5392_s4 + $0x2c0] ss:$16 sps:$4 sm:$0xff]  }
   0xf   :  { %1842 = vmatpush1.bf16.msra.mxu1 %v3510_v14  ;;  %v3530_v28 = vld [vmem:[%s5392_s4 + $0xe4] ss:$16 sps:$4 sm:$0xff]   ;;  %v3534_v30 = vld [vmem:[%s5392_s4 + $0xe0] ss:$16 sps:$4 sm:$0xff]   ;;  %v4268_v14 = vsub.s32 4, %v4175_v44 }
  0x10   :  { %1883 = vmatpush1.bf16.msra.mxu0 %v3511_v15  ;;  %1843 = vmatprep.subr.bf16.mxu1 %v3512_v16  ;;  %v3532_v29 = vld [vmem:[%s5392_s4 + $0x2e4] ss:$16 sps:$4 sm:$0xff]   ;;  %v3535_v31 = vld [vmem:[%s5392_s4 + $0x2e0] ss:$16 sps:$4 sm:$0xff]  }
  0x11   :  { %1884 = vmatprep.subr.bf16.mxu0 %v3514_v17  ;;  %v3536_v32 = vld [vmem:[%s5392_s4 + $0x104] ss:$16 sps:$4 sm:$0xff]   ;;  %v3540_v34 = vld [vmem:[%s5392_s4 + $0x100] ss:$16 sps:$4 sm:$0xff]  }
  0x12   :  { %v3538_v33 = vld [vmem:[%s5392_s4 + $0x304] ss:$16 sps:$4 sm:$0xff]   ;;  %v3541_v35 = vld [vmem:[%s5392_s4 + $0x300] ss:$16 sps:$4 sm:$0xff]  }
  0x13   :  { %1844 = vmatpush1.bf16.msra.mxu1 %v3516_v18  ;;  %v3542_v36 = vld [vmem:[%s5392_s4 + $0x124] ss:$16 sps:$4 sm:$0xff]   ;;  %v3546_v41 = vld [vmem:[%s5392_s4 + $0x120] ss:$16 sps:$4 sm:$0xff]  }
  0x14   :  { %1885 = vmatpush1.bf16.msra.mxu0 %v3517_v19  ;;  %1845 = vmatprep.subr.bf16.mxu1 %v3518_v20  ;;  %v3544_v40 = vld [vmem:[%s5392_s4 + $0x324] ss:$16 sps:$4 sm:$0xff]   ;;  %v3547_v42 = vld [vmem:[%s5392_s4 + $0x320] ss:$16 sps:$4 sm:$0xff]  }
  0x15   :  { %1886 = vmatprep.subr.bf16.mxu0 %v3520_v21  ;;  %v3548_v43 = vld [vmem:[%s5392_s4 + $0x144] ss:$16 sps:$4 sm:$0xff]   ;;  %v3552_v47 = vld [vmem:[%s5392_s4 + $0x140] ss:$16 sps:$4 sm:$0xff]  }
  0x16   :  { %v3550_v46 = vld [vmem:[%s5392_s4 + $0x344] ss:$16 sps:$4 sm:$0xff]   ;;  %v3553_v48 = vld [vmem:[%s5392_s4 + $0x340] ss:$16 sps:$4 sm:$0xff]  }
  0x17   :  { %1846 = vmatpush1.bf16.msra.mxu1 %v3522_v22  ;;  %v3554_v49 = vld [vmem:[%s5392_s4 + $0x164] ss:$16 sps:$4 sm:$0xff]   ;;  %v3558_v56 = vld [vmem:[%s5392_s4 + $0x160] ss:$16 sps:$4 sm:$0xff]  }
  0x18   :  { %1887 = vmatpush1.bf16.msra.mxu0 %v3523_v23  ;;  %1847 = vmatprep.subr.bf16.mxu1 %v3524_v24  ;;  %v3556_v53 = vld [vmem:[%s5392_s4 + $0x364] ss:$16 sps:$4 sm:$0xff]   ;;  %v3559_v57 = vld [vmem:[%s5392_s4 + $0x360] ss:$16 sps:$4 sm:$0xff]  }
  0x19   :  { %1888 = vmatprep.subr.bf16.mxu0 %v3526_v25  ;;  %v4216_v58 = vld [vmem:[%s5393_s2] sm:$0xff] }
  0x1a   :  { %vm42_vm0 = vcmp.ge.f32.partialorder %v4216_v58, 0.0  ;;  %v43_v60 = vld [vmem:[%s5394_s0] sm:$0xff]  ;;  %v192_v63 = vrot.slane %v4216_v58, %v4190_v50  ;;  %v188_v0 = vrot.slane %v4216_v58, %v4196_v52  ;;  %v200_v1 = vrot.slane %v4216_v58, %v4202_v54 }
  0x1b   :  { %1848 = vmatpush1.bf16.msra.mxu1 %v3528_v26  ;;  %v45_v62 = vld [vmem:[%s5395_s1] sm:$0xff]  ;;  %v4244_v4 = vsel %vm42_vm0, 1, %v3985_v3  ;;  %v97_v5 = vrot.slane %v43_v60, %v4193_v51  ;;  %v90_v20 = vcombine.high %v43_v60, %v43_v60  ;;  %v158_v60 = vrot.slane %v4242_v2, %v4193_v51 }
  0x1c   :  { %1889 = vmatpush1.bf16.msra.mxu0 %v3529_v27  ;;  %1849 = vmatprep.subr.bf16.mxu1 %v3530_v28  ;;  %v141_v7 = vrot.slane %v45_v62, %v4193_v51  ;;  %v4253_v8 = vld [vmem:[%s5396_s3] sm:$0xff]  ;;  %v55_v11 = vrot.slane %v4244_v4, %v4190_v50  ;;  %v51_v17 = vrot.slane %v4244_v4, %v4196_v52 }
  0x1d   :  { %1890 = vmatprep.subr.bf16.mxu0 %v3532_v29  ;;  %v3560_v9 = vld [vmem:[%s5392_s4 + $0x184] ss:$16 sps:$4 sm:$0xff]   ;;  %v242_v13 = vrot.slane %v4253_v8, %v4190_v50  ;;  %v105_v15 = vcombine.high %v97_v5, %v97_v5  ;;  %v238_v18 = vrot.slane %v4253_v8, %v4196_v52  ;;  %v63_v19 = vrot.slane %v4244_v4, %v4202_v54  ;;  %v3564_v22 = vld [vmem:[%s5392_s4 + $0x180] ss:$16 sps:$4 sm:$0xff]  }
  0x1e   :  { %v3562_v10 = vld [vmem:[%s5392_s4 + $0x384] ss:$16 sps:$4 sm:$0xff]   ;;  %v149_v16 = vcombine.high %v141_v7, %v141_v7  ;;  %vm81_vm1 = vcmp.eq.s32.totalorder %v55_v11, 1  ;;  %v134_v21 = vcombine.high %v45_v62, %v45_v62  ;;  %v3565_v23 = vld [vmem:[%s5392_s4 + $0x380] ss:$16 sps:$4 sm:$0xff]   ;;  %vm80_vm2 = vcmp.eq.s32.totalorder %v51_v17, 1 }
  0x1f   :  { %1850 = vmatpush1.bf16.msra.mxu1 %v3534_v30  ;;  %v250_v25 = vrot.slane %v4253_v8, %v4202_v54  ;;  %v59_v26 = vrot.slane %v4244_v4, %v4205_v55  ;;  %v3566_v27 = vld [vmem:[%s5392_s4 + $0x1a4] ss:$16 sps:$4 sm:$0xff]   ;;  %v176_v30 = vsel %vm80_vm2, %v97_v5, %v141_v7  ;;  %vm4292_vm3 = vcmp.eq.s32.totalorder %v63_v19, 1  ;;  %v3576_v11 = vld [vmem:[%s5392_s4 + $0x1c0] ss:$16 sps:$4 sm:$0xff]  }
  0x20   :  { %1891 = vmatpush1.bf16.msra.mxu0 %v3535_v31  ;;  %1851 = vmatprep.subr.bf16.mxu1 %v3536_v32  ;;  %v177_v24 = vsel %vm81_vm1, %v105_v15, %v149_v16  ;;  %v3568_v28 = vld [vmem:[%s5392_s4 + $0x3a4] ss:$16 sps:$4 sm:$0xff]   ;;  %v104_v32 = vrot.slane %v90_v20, %v4193_v51  ;;  %v246_v39 = vrot.slane %v4253_v8, %v4205_v55 }
  0x21   :  { %1892 = vmatprep.subr.bf16.mxu0 %v3538_v33  ;;  %v226_v29 = vmul.f32 %v192_v63, %v177_v24  ;;  %v225_v33 = vmul.f32 %v188_v0, %v176_v30  ;;  %vm4298_vm4 = vcmp.eq.s32.totalorder %v59_v26, 1  ;;  %v208_v3 = vrot.slane %v4216_v58, %v4219_v59  ;;  %v3583_v30 = vld [vmem:[%s5392_s4 + $0x3e0] ss:$16 sps:$4 sm:$0xff]   ;;  %v3603_v0 = vld [vmem:[%s5392_s4 + $0x48] ss:$16 sps:$4 sm:$0xff]  }
  0x22   :  { %v106_v38 = vcombine.high %v104_v32, %v104_v32  ;;  %v166_v16 = vcombine.high %v158_v60, %v158_v60  ;;  %v258_v17 = vrot.slane %v4253_v8, %v4219_v59  ;;  %v67_v20 = vrot.slane %v4244_v4, %v4268_v14 }
  0x23   :  { %1852 = vmatpush1.bf16.msra.mxu1 %v3540_v34  ;;  %v148_v34 = vrot.slane %v134_v21, %v4193_v51  ;;  %v276_v37 = vadd.f32 %v242_v13, %v226_v29  ;;  %v3577_v13 = vld [vmem:[%s5392_s4 + $0x3c0] ss:$16 sps:$4 sm:$0xff]   ;;  %v204_v21 = vrot.slane %v4216_v58, %v4268_v14 }
  0x24   :  { %1893 = vmatpush1.bf16.msra.mxu0 %v3541_v35  ;;  %1853 = vmatprep.subr.bf16.mxu1 %v3542_v36  ;;  %v196_v36 = vrot.slane %v4216_v58, %v4205_v55  ;;  %vm84_vm6 = vcmp.eq.s32.totalorder %v67_v20, 1  ;;  %v3582_v29 = vld [vmem:[%s5392_s4 + $0x1e0] ss:$16 sps:$4 sm:$0xff]   ;;  %v3626_v20 = vld [vmem:[%s5392_s4 + $0x4c4] ss:$16 sps:$4 sm:$0xff]  }
  0x25   :  { %1894 = vmatprep.subr.bf16.mxu0 %v3544_v40  ;;  %v71_v40 = vrot.slane %v4244_v4, %v4219_v59  ;;  %v150_v45 = vcombine.high %v148_v34, %v148_v34 }
  0x27   :  { %1854 = vmatpush1.bf16.msra.mxu1 %v3546_v41  ;;  %v3570_v41 = vld [vmem:[%s5392_s4 + $0x1a0] ss:$16 sps:$4 sm:$0xff]   ;;  %v179_v63 = vsel %vm4292_vm3, %v106_v38, %v150_v45  ;;  %vm4331_vm5 = vcmp.eq.s32.totalorder %v71_v40, 1  ;;  %v3599_v45 = vld [vmem:[%s5392_s4 + $0x2c] ss:$16 sps:$4 sm:$0xff]  }
  0x28   :  { %1895 = vmatpush1.bf16.msra.mxu0 %v3547_v42  ;;  %1855 = vmatprep.subr.bf16.mxu1 %v3548_v43  ;;  %v3571_v42 = vld [vmem:[%s5392_s4 + $0x3a0] ss:$16 sps:$4 sm:$0xff]   ;;  %v275_v43 = vadd.f32 %v238_v18, %v225_v33  ;;  %v228_v7 = vmul.f32 %v200_v1, %v179_v63  ;;  %v3578_v1 = vld [vmem:[%s5392_s4 + $0x1e4] ss:$16 sps:$4 sm:$0xff]   ;;  %v3593_v33 = vld [vmem:[%s5392_s4 + $0xc] ss:$16 sps:$4 sm:$0xff]  }
  0x29   :  { %1896 = vmatprep.subr.bf16.mxu0 %v3550_v46  ;;  %v178_v46 = vsel %vm4298_vm4, %v104_v32, %v148_v34  ;;  %v3580_v18 = vld [vmem:[%s5392_s4 + $0x3e4] ss:$16 sps:$4 sm:$0xff]   ;;  %v3600_v63 = vld [vmem:[%s5392_s4 + $0x440] ss:$16 sps:$4 sm:$0xff]  }
  0x2a   :  { %v283_v62 = vmax.f32 %v275_v43, 0.0  ;;  %v278_v19 = vadd.f32 %v250_v25, %v228_v7  ;;  %v121_v25 = vrot.slane %v107_v6, %v4193_v51  ;;  %v3606_v7 = vld [vmem:[%s5392_s4 + $0x460] ss:$16 sps:$4 sm:$0xff]  }
  0x2b   :  { %1856 = vmatpush1.bf16.msra.mxu1 %v3552_v47  ;;  %v4317_v47 = vsub.s32 7, %v4175_v44 }
  0x2c   :  { %1897 = vmatpush1.bf16.msra.mxu0 %v3553_v48  ;;  %1857 = vmatprep.subr.bf16.mxu1 %v3554_v49  ;;  %v3572_v48 = vld [vmem:[%s5392_s4 + $0x1c4] ss:$16 sps:$4 sm:$0xff]   ;;  %v4348_v15 = vpack.c.bf16 %v283_v62, %v283_v62  ;;  %v286_v26 = vmax.f32 %v278_v19, 0.0  ;;  %v123_v32 = vcombine.high %v121_v25, %v121_v25  ;;  %v3605_v62 = vld [vmem:[%s5392_s4 + $0x4c] ss:$16 sps:$4 sm:$0xff]  }
  0x2d   :  { %1898 = vmatprep.subr.bf16.mxu0 %v3556_v53  ;;  %v3574_v49 = vld [vmem:[%s5392_s4 + $0x3c4] ss:$16 sps:$4 sm:$0xff]   ;;  %v284_v53 = vmax.f32 %v276_v37, 0.0  ;;  %v79_v24 = vrot.slane %v4244_v4, %v4317_v47  ;;  %v3621_v19 = vld [vmem:[%s5392_s4 + $0xa8] ss:$16 sps:$4 sm:$0xff]  }
  0x2e   :  { %v4384_v6 = vpack.c.bf16 %v286_v26, %v286_v26  ;;  %v3633_v26 = vld [vmem:[%s5392_s4 + $0xe8] ss:$16 sps:$4 sm:$0xff]  }
  0x2f   :  { %1858 = vmatpush1.bf16.msra.mxu1 %v3558_v56  ;;  %v227_v56 = vmul.f32 %v196_v36, %v178_v46  ;;  %v4337_v5 = vpack.c.bf16 %v284_v53, %v284_v53  ;;  %vm87_vm7 = vcmp.eq.s32.totalorder %v79_v24, 1  ;;  %v3594_v53 = vld [vmem:[%s5392_s4 + $0x420] ss:$16 sps:$4 sm:$0xff]   ;;  %v3635_v24 = vld [vmem:[%s5392_s4 + $0xec] ss:$16 sps:$4 sm:$0xff]  }
  0x30   :  { %1899 = vmatpush1.bf16.msra.mxu0 %v3559_v57  ;;  %1859 = vmatprep.subr.bf16.mxu1 %v3560_v9  ;;  %v114_v57 = vrot.slane %v4228_v61, %v4193_v51  ;;  %v165_v61 = vrot.slane %v151_v12, %v4193_v51  ;;  %v216_v51 = vrot.slane %v4216_v58, %v4317_v47 }
  0x31   :  { %1900 = vmatprep.subr.bf16.mxu0 %v3562_v10  ;;  %v277_v9 = vadd.f32 %v246_v39, %v227_v56  ;;  %1867 = vmatprep.mubr.bf16.mxu1 %v4337_v5  ;;  %v266_v39 = vrot.slane %v4253_v8, %v4317_v47  ;;  %v3597_v56 = vld [vmem:[%s5392_s4 + $0x28] ss:$16 sps:$4 sm:$0xff]  }
  0x32   :  { %v122_v10 = vcombine.high %v114_v57, %v114_v57  ;;  %v180_v31 = vsel %vm84_vm6, %v114_v57, %v158_v60  ;;  %v167_v37 = vcombine.high %v165_v61, %v165_v61  ;;  %1908 = vmatprep.mubr.bf16.mxu0 %v4384_v6  ;;  %v3602_v60 = vld [vmem:[%s5392_s4 + $0x444] ss:$16 sps:$4 sm:$0xff]  }
  0x33   :  { %1860 = vmatpush1.bf16.msra.mxu1 %v3564_v22  ;;  %v74_v22 = vsub.s32 6, %v4175_v44  ;;  %v285_v59 = vmax.f32 %v277_v9, 0.0  ;;  %v229_v35 = vmul.f32 %v204_v21, %v180_v31  ;;  %v3609_v9 = vld [vmem:[%s5392_s4 + $0x68] ss:$16 sps:$4 sm:$0xff]   ;;  %v3629_v21 = vld [vmem:[%s5392_s4 + $0xcc] ss:$16 sps:$4 sm:$0xff]  }
  0x34   :  { %1901 = vmatpush1.bf16.msra.mxu0 %v3565_v23  ;;  %1861 = vmatprep.subr.bf16.mxu1 %v3566_v27  ;;  %v181_v23 = vsel %vm4331_vm5, %v122_v10, %v166_v16  ;;  %v3614_v10 = vld [vmem:[%s5392_s4 + $0x484] ss:$16 sps:$4 sm:$0xff]   ;;  %v3615_v16 = vld [vmem:[%s5392_s4 + $0x88] ss:$16 sps:$4 sm:$0xff]  }
  0x35   :  { %1902 = vmatprep.subr.bf16.mxu0 %v3568_v28  ;;  %v230_v27 = vmul.f32 %v208_v3, %v181_v23  ;;  %v254_v28 = vrot.slane %v4253_v8, %v4268_v14  ;;  %v3590_v14 = vld [vmem:[%s5392_s4 + $0x404] ss:$16 sps:$4 sm:$0xff]   ;;  %v4392_v36 = vpack.c.bf16 %v285_v59, %v285_v59  ;;  %v75_v2 = vrot.slane %v4244_v4, %v74_v22  ;;  %v3591_v4 = vld [vmem:[%s5392_s4 + $0x8] ss:$16 sps:$4 sm:$0xff]  }
  0x36   :  { %v212_v40 = vrot.slane %v4216_v58, %v74_v22  ;;  %v262_v43 = vrot.slane %v4253_v8, %v74_v22  ;;  %v3596_v58 = vld [vmem:[%s5392_s4 + $0x424] ss:$16 sps:$4 sm:$0xff]   ;;  %v3624_v22 = vld [vmem:[%s5392_s4 + $0x4c0] ss:$16 sps:$4 sm:$0xff]   ;;  %v3627_v59 = vld [vmem:[%s5392_s4 + $0xc8] ss:$16 sps:$4 sm:$0xff]  }
  0x37   :  { %1862 = vmatpush1.bf16.msra.mxu1 %v3570_v41  ;;  %v280_v34 = vadd.f32 %v258_v17, %v230_v27  ;;  %v4398_v38 = vadd.f32 %v254_v28, %v229_v35  ;;  %v3588_v41 = vld [vmem:[%s5392_s4 + $0x400] ss:$16 sps:$4 sm:$0xff]   ;;  %vm86_vm8 = vcmp.eq.s32.totalorder %v75_v2, 1  ;;  %v3608_v3 = vld [vmem:[%s5392_s4 + $0x464] ss:$16 sps:$4 sm:$0xff]  }
  0x38   :  { %1903 = vmatpush1.bf16.msra.mxu0 %v3571_v42  ;;  %1863 = vmatprep.subr.bf16.mxu1 %v3572_v48  ;;  %v183_v42 = vsel %vm87_vm7, %v123_v32, %v167_v37  ;;  %v182_v47 = vsel %vm86_vm8, %v121_v25, %v165_v61  ;;  %v3620_v17 = vld [vmem:[%s5392_s4 + $0x4a4] ss:$16 sps:$4 sm:$0xff]   ;;  %v3630_v25 = vld [vmem:[%s5392_s4 + $0x4e0] ss:$16 sps:$4 sm:$0xff]   ;;  %v3641_v28 = vld [vmem:[%s5392_s4 + $0x10c] ss:$16 sps:$4 sm:$0xff]  }
  0x39   :  { %1904 = vmatprep.subr.bf16.mxu0 %v3574_v49  ;;  %v288_v12 = vmax.f32 %v280_v34, 0.0  ;;  %v232_v46 = vmul.f32 %v216_v51, %v183_v42  ;;  %v231_v49 = vmul.f32 %v212_v40, %v182_v47  ;;  %v3632_v23 = vld [vmem:[%s5392_s4 + $0x4e4] ss:$16 sps:$4 sm:$0xff]   ;;  %v3647_v32 = vld [vmem:[%s5392_s4 + $0x12c] ss:$16 sps:$4 sm:$0xff]  }
  0x3a   :  { %v3638_v27 = vld [vmem:[%s5392_s4 + $0x504] ss:$16 sps:$4 sm:$0xff]   ;;  %v3642_v61 = vld [vmem:[%s5392_s4 + $0x520] ss:$16 sps:$4 sm:$0xff]   ;;  %v3653_v34 = vld [vmem:[%s5392_s4 + $0x14c] ss:$16 sps:$4 sm:$0xff]  }
  0x3b   :  { %1864 = vmatpush1.bf16.msra.mxu1 %v3576_v11  ;;  %v4416_v48 = vpack.c.bf16 %v288_v12, %v288_v12  ;;  %v4420_v8 = vadd.f32 %v266_v39, %v232_v46  ;;  %v4428_v57 = vadd.f32 %v262_v43, %v231_v49  ;;  %v3617_v11 = vld [vmem:[%s5392_s4 + $0x8c] ss:$16 sps:$4 sm:$0xff]   ;;  %v3644_v31 = vld [vmem:[%s5392_s4 + $0x524] ss:$16 sps:$4 sm:$0xff]   ;;  %v3648_v35 = vld [vmem:[%s5392_s4 + $0x540] ss:$16 sps:$4 sm:$0xff]  }
  0x3c   :  { %1905 = vmatpush1.bf16.msra.mxu0 %v3577_v13  ;;  %1865 = vmatprep.subr.bf16.mxu1 %v3578_v1  ;;  %v3612_v13 = vld [vmem:[%s5392_s4 + $0x480] ss:$16 sps:$4 sm:$0xff]   ;;  %v3623_v1 = vld [vmem:[%s5392_s4 + $0xac] ss:$16 sps:$4 sm:$0xff]   ;;  %v3651_v37 = vld [vmem:[%s5392_s4 + $0x148] ss:$16 sps:$4 sm:$0xff]  }
  0x3d   :  { %1906 = vmatprep.subr.bf16.mxu0 %v3580_v18  ;;  %v3618_v18 = vld [vmem:[%s5392_s4 + $0x4a0] ss:$16 sps:$4 sm:$0xff]   ;;  %v3656_v51 = vld [vmem:[%s5392_s4 + $0x564] ss:$16 sps:$4 sm:$0xff]   ;;  %v3659_v2 = vld [vmem:[%s5392_s4 + $0x16c] ss:$16 sps:$4 sm:$0xff]  }
  0x3e   :  { %v3654_v12 = vld [vmem:[%s5392_s4 + $0x560] ss:$16 sps:$4 sm:$0xff]   ;;  %v3657_v39 = vld [vmem:[%s5392_s4 + $0x168] ss:$16 sps:$4 sm:$0xff]   ;;  %v3662_v40 = vld [vmem:[%s5392_s4 + $0x584] ss:$16 sps:$4 sm:$0xff]  }
  0x3f   :  { %1866 = vmatpush1.bf16.msra.mxu1 %v3582_v29  ;;  %v3636_v29 = vld [vmem:[%s5392_s4 + $0x500] ss:$16 sps:$4 sm:$0xff]   ;;  %v3663_v42 = vld [vmem:[%s5392_s4 + $0x188] ss:$16 sps:$4 sm:$0xff]   ;;  %v3668_v43 = vld [vmem:[%s5392_s4 + $0x5a4] ss:$16 sps:$4 sm:$0xff]  }
  0x40   :  { %1907 = vmatpush1.bf16.msra.mxu0 %v3583_v30  ;;  %1999 = vmatprep.subr.bf16.mxu1 %v3593_v33  ;;  %v3639_v30 = vld [vmem:[%s5392_s4 + $0x108] ss:$16 sps:$4 sm:$0xff]   ;;  %v3650_v33 = vld [vmem:[%s5392_s4 + $0x544] ss:$16 sps:$4 sm:$0xff]   ;;  %v3677_v49 = vld [vmem:[%s5392_s4 + $0x1cc] ss:$16 sps:$4 sm:$0xff]  }
  0x41   :  { %1917 = vmatprep.subr.bf16.mxu0 %v3590_v14  ;;  %v3645_v14 = vld [vmem:[%s5392_s4 + $0x128] ss:$16 sps:$4 sm:$0xff]   ;;  %v3674_v47 = vld [vmem:[%s5392_s4 + $0x5c4] ss:$16 sps:$4 sm:$0xff]  }
  0x42   :  { %1868 = vmatmul.mubr.bf16.vlgmr.msra.gmra.mrb[0].mxu1 %v4348_v15  ;;  %v3669_v46 = vld [vmem:[%s5392_s4 + $0x1a8] ss:$16 sps:$4 sm:$0xff]  }
  0x43   :  { %1909 = vmatmul.mubr.bf16.vlgmr.msra.gmra.mrb[0].mxu0 %v4392_v36  ;;  %2000 = vmatpush1.bf16.msra.mxu1 %v3591_v4  ;;  %v3660_v4 = vld [vmem:[%s5392_s4 + $0x580] ss:$16 sps:$4 sm:$0xff]  }
  0x44   :  { %1918 = vmatpush1.bf16.msra.mxu0 %v3588_v41  ;;  %2001 = vmatprep.subr.bf16.mxu1 %v3599_v45  ;;  %v3665_v41 = vld [vmem:[%s5392_s4 + $0x18c] ss:$16 sps:$4 sm:$0xff]   ;;  %v3666_v45 = vld [vmem:[%s5392_s4 + $0x5a0] ss:$16 sps:$4 sm:$0xff]  }
  0x45   :  { %1919 = vmatprep.subr.bf16.mxu0 %v3596_v58  ;;  %1949 = vmatprep.mubr.bf16.mxu0 %v4416_v48  ;;  %v3671_v58 = vld [vmem:[%s5392_s4 + $0x1ac] ss:$16 sps:$4 sm:$0xff]  }
  0x46   :  { %2031 = vmatprep.mubr.bf16.mxu1 %v4337_v5  ;;  %v3611_v5 = vld [vmem:[%s5392_s4 + $0x6c] ss:$16 sps:$4 sm:$0xff]  }
  0x47   :  { %2002 = vmatpush1.bf16.msra.mxu1 %v3597_v56  ;;  %v3675_v56 = vld [vmem:[%s5392_s4 + $0x1c8] ss:$16 sps:$4 sm:$0xff]  }
  0x48   :  { %1920 = vmatpush1.bf16.msra.mxu0 %v3594_v53  ;;  %2003 = vmatprep.subr.bf16.mxu1 %v3605_v62  ;;  %v3672_v53 = vld [vmem:[%s5392_s4 + $0x5c0] ss:$16 sps:$4 sm:$0xff]   ;;  %v3683_v62 = vld [vmem:[%s5392_s4 + $0x1ec] ss:$16 sps:$4 sm:$0xff]  }
  0x49   :  { %1921 = vmatprep.subr.bf16.mxu0 %v3602_v60  ;;  %v3680_v60 = vld [vmem:[%s5392_s4 + $0x5e4] ss:$16 sps:$4 sm:$0xff]  }
  0x4b   :  { %2004 = vmatpush1.bf16.msra.mxu1 %v3603_v0  ;;  %v3678_v0 = vld [vmem:[%s5392_s4 + $0x5e0] ss:$16 sps:$4 sm:$0xff]  }
  0x4c   :  { %1922 = vmatpush1.bf16.msra.mxu0 %v3600_v63  ;;  %2005 = vmatprep.subr.bf16.mxu1 %v3611_v5  ;;  %v287_v63 = vmax.f32 %v4398_v38, 0.0  ;;  %v3686_v5 = vld [vmem:[%s5392_s4 + $0x604] ss:$16 sps:$4 sm:$0xff]   ;;  %v3689_v38 = vld [vmem:[%s5392_s4 + $0x20c] ss:$16 sps:$4 sm:$0xff]  }
  0x4d   :  { %1923 = vmatprep.subr.bf16.mxu0 %v3608_v3  ;;  %v3681_v3 = vld [vmem:[%s5392_s4 + $0x1e8] ss:$16 sps:$4 sm:$0xff]  }
  0x4f   :  { %2006 = vmatpush1.bf16.msra.mxu1 %v3609_v9  ;;  %v4608_v9 = vpack.c.bf16 %v287_v63, %v287_v63  ;;  %v3756_v63 = vld [vmem:[%s5392_s4 + $0x780] ss:$16 sps:$4 sm:$0xff]  }
  0x50   :  { %1924 = vmatpush1.bf16.msra.mxu0 %v3606_v7  ;;  %2007 = vmatprep.subr.bf16.mxu1 %v3617_v11  ;;  %v290_v7 = vmax.f32 %v4420_v8, 0.0  ;;  %v3687_v11 = vld [vmem:[%s5392_s4 + $0x208] ss:$16 sps:$4 sm:$0xff]   ;;  %v3695_v8 = vld [vmem:[%s5392_s4 + $0x22c] ss:$16 sps:$4 sm:$0xff]  }
  0x51   :  { %1925 = vmatprep.subr.bf16.mxu0 %v3614_v10  ;;  %v3684_v10 = vld [vmem:[%s5392_s4 + $0x600] ss:$16 sps:$4 sm:$0xff]  }
  0x53   :  { %2008 = vmatpush1.bf16.msra.mxu1 %v3615_v16  ;;  %v4622_v16 = vpack.c.bf16 %v290_v7, %v290_v7  ;;  %v3765_v7 = vld [vmem:[%s5392_s4 + $0x3a8] ss:$16 sps:$4 sm:$0xff]  }
  0x54   :  { %1926 = vmatpush1.bf16.msra.mxu0 %v3612_v13  ;;  %2009 = vmatprep.subr.bf16.mxu1 %v3623_v1  ;;  %v3692_v13 = vld [vmem:[%s5392_s4 + $0x624] ss:$16 sps:$4 sm:$0xff]   ;;  %v3693_v1 = vld [vmem:[%s5392_s4 + $0x228] ss:$16 sps:$4 sm:$0xff]  }
  0x55   :  { %1927 = vmatprep.subr.bf16.mxu0 %v3620_v17  ;;  %v3690_v17 = vld [vmem:[%s5392_s4 + $0x620] ss:$16 sps:$4 sm:$0xff]  }
  0x57   :  { %2010 = vmatpush1.bf16.msra.mxu1 %v3621_v19  ;;  %v3696_v19 = vld [vmem:[%s5392_s4 + $0x640] ss:$16 sps:$4 sm:$0xff]  }
  0x58   :  { %1928 = vmatpush1.bf16.msra.mxu0 %v3618_v18  ;;  %2011 = vmatprep.subr.bf16.mxu1 %v3629_v21  ;;  %v3698_v18 = vld [vmem:[%s5392_s4 + $0x644] ss:$16 sps:$4 sm:$0xff]  }
  0x59   :  { %1929 = vmatprep.subr.bf16.mxu0 %v3626_v20  ;;  %v3699_v20 = vld [vmem:[%s5392_s4 + $0x248] ss:$16 sps:$4 sm:$0xff]   ;;  %v3704_v21 = vld [vmem:[%s5392_s4 + $0x664] ss:$16 sps:$4 sm:$0xff]  }
  0x5b   :  { %2012 = vmatpush1.bf16.msra.mxu1 %v3627_v59  ;;  %v3705_v59 = vld [vmem:[%s5392_s4 + $0x268] ss:$16 sps:$4 sm:$0xff]  }
  0x5c   :  { %1930 = vmatpush1.bf16.msra.mxu0 %v3624_v22  ;;  %2013 = vmatprep.subr.bf16.mxu1 %v3635_v24  ;;  %v3702_v22 = vld [vmem:[%s5392_s4 + $0x660] ss:$16 sps:$4 sm:$0xff]   ;;  %v3713_v24 = vld [vmem:[%s5392_s4 + $0x28c] ss:$16 sps:$4 sm:$0xff]  }
  0x5d   :  { %1931 = vmatprep.subr.bf16.mxu0 %v3632_v23  ;;  %v3710_v23 = vld [vmem:[%s5392_s4 + $0x684] ss:$16 sps:$4 sm:$0xff]  }
  0x5f   :  { %2014 = vmatpush1.bf16.msra.mxu1 %v3633_v26  ;;  %v3711_v26 = vld [vmem:[%s5392_s4 + $0x288] ss:$16 sps:$4 sm:$0xff]  }
  0x60   :  { %1932 = vmatpush1.bf16.msra.mxu0 %v3630_v25  ;;  %2015 = vmatprep.subr.bf16.mxu1 %v3641_v28  ;;  %v3708_v25 = vld [vmem:[%s5392_s4 + $0x680] ss:$16 sps:$4 sm:$0xff]   ;;  %v3719_v28 = vld [vmem:[%s5392_s4 + $0x2ac] ss:$16 sps:$4 sm:$0xff]  }
  0x61   :  { %1933 = vmatprep.subr.bf16.mxu0 %v3638_v27  ;;  %v3716_v27 = vld [vmem:[%s5392_s4 + $0x6a4] ss:$16 sps:$4 sm:$0xff]  }
  0x63   :  { %2016 = vmatpush1.bf16.msra.mxu1 %v3639_v30  ;;  %v3717_v30 = vld [vmem:[%s5392_s4 + $0x2a8] ss:$16 sps:$4 sm:$0xff]  }
  0x64   :  { %1934 = vmatpush1.bf16.msra.mxu0 %v3636_v29  ;;  %2017 = vmatprep.subr.bf16.mxu1 %v3647_v32  ;;  %v3714_v29 = vld [vmem:[%s5392_s4 + $0x6a0] ss:$16 sps:$4 sm:$0xff]   ;;  %v3725_v32 = vld [vmem:[%s5392_s4 + $0x2cc] ss:$16 sps:$4 sm:$0xff]  }
  0x65   :  { %1935 = vmatprep.subr.bf16.mxu0 %v3644_v31  ;;  %v3722_v31 = vld [vmem:[%s5392_s4 + $0x6c4] ss:$16 sps:$4 sm:$0xff]  }
  0x67   :  { %2018 = vmatpush1.bf16.msra.mxu1 %v3645_v14  ;;  %v3723_v14 = vld [vmem:[%s5392_s4 + $0x2c8] ss:$16 sps:$4 sm:$0xff]  }
  0x68   :  { %1936 = vmatpush1.bf16.msra.mxu0 %v3642_v61  ;;  %2019 = vmatprep.subr.bf16.mxu1 %v3653_v34  ;;  %v3720_v61 = vld [vmem:[%s5392_s4 + $0x6c0] ss:$16 sps:$4 sm:$0xff]   ;;  %v3731_v34 = vld [vmem:[%s5392_s4 + $0x2ec] ss:$16 sps:$4 sm:$0xff]  }
  0x69   :  { %1937 = vmatprep.subr.bf16.mxu0 %v3650_v33  ;;  %v3728_v33 = vld [vmem:[%s5392_s4 + $0x6e4] ss:$16 sps:$4 sm:$0xff]  }
  0x6b   :  { %2020 = vmatpush1.bf16.msra.mxu1 %v3651_v37  ;;  %v3729_v37 = vld [vmem:[%s5392_s4 + $0x2e8] ss:$16 sps:$4 sm:$0xff]  }
  0x6c   :  { %1938 = vmatpush1.bf16.msra.mxu0 %v3648_v35  ;;  %2021 = vmatprep.subr.bf16.mxu1 %v3659_v2  ;;  %v3726_v35 = vld [vmem:[%s5392_s4 + $0x6e0] ss:$16 sps:$4 sm:$0xff]   ;;  %v3737_v2 = vld [vmem:[%s5392_s4 + $0x30c] ss:$16 sps:$4 sm:$0xff]  }
  0x6d   :  { %1939 = vmatprep.subr.bf16.mxu0 %v3656_v51  ;;  %v3734_v51 = vld [vmem:[%s5392_s4 + $0x704] ss:$16 sps:$4 sm:$0xff]  }
  0x6f   :  { %2022 = vmatpush1.bf16.msra.mxu1 %v3657_v39  ;;  %v3735_v39 = vld [vmem:[%s5392_s4 + $0x308] ss:$16 sps:$4 sm:$0xff]  }
  0x70   :  { %1940 = vmatpush1.bf16.msra.mxu0 %v3654_v12  ;;  %2023 = vmatprep.subr.bf16.mxu1 %v3665_v41  ;;  %v3732_v12 = vld [vmem:[%s5392_s4 + $0x700] ss:$16 sps:$4 sm:$0xff]   ;;  %v3743_v41 = vld [vmem:[%s5392_s4 + $0x32c] ss:$16 sps:$4 sm:$0xff]  }
  0x71   :  { %1941 = vmatprep.subr.bf16.mxu0 %v3662_v40  ;;  %v3740_v40 = vld [vmem:[%s5392_s4 + $0x724] ss:$16 sps:$4 sm:$0xff]  }
  0x73   :  { %2024 = vmatpush1.bf16.msra.mxu1 %v3663_v42  ;;  %v3741_v42 = vld [vmem:[%s5392_s4 + $0x328] ss:$16 sps:$4 sm:$0xff]  }
  0x74   :  { %1942 = vmatpush1.bf16.msra.mxu0 %v3660_v4  ;;  %2025 = vmatprep.subr.bf16.mxu1 %v3671_v58  ;;  %v3738_v4 = vld [vmem:[%s5392_s4 + $0x720] ss:$16 sps:$4 sm:$0xff]   ;;  %v3749_v58 = vld [vmem:[%s5392_s4 + $0x34c] ss:$16 sps:$4 sm:$0xff]  }
  0x75   :  { %1943 = vmatprep.subr.bf16.mxu0 %v3668_v43  ;;  %v3746_v43 = vld [vmem:[%s5392_s4 + $0x744] ss:$16 sps:$4 sm:$0xff]  }
  0x77   :  { %2026 = vmatpush1.bf16.msra.mxu1 %v3669_v46  ;;  %v3747_v46 = vld [vmem:[%s5392_s4 + $0x348] ss:$16 sps:$4 sm:$0xff]  }
  0x78   :  { %1944 = vmatpush1.bf16.msra.mxu0 %v3666_v45  ;;  %2027 = vmatprep.subr.bf16.mxu1 %v3677_v49  ;;  %v3744_v45 = vld [vmem:[%s5392_s4 + $0x740] ss:$16 sps:$4 sm:$0xff]   ;;  %v3755_v49 = vld [vmem:[%s5392_s4 + $0x36c] ss:$16 sps:$4 sm:$0xff]  }
  0x79   :  { %1945 = vmatprep.subr.bf16.mxu0 %v3674_v47  ;;  %v3752_v47 = vld [vmem:[%s5392_s4 + $0x764] ss:$16 sps:$4 sm:$0xff]  }
  0x7b   :  { %2028 = vmatpush1.bf16.msra.mxu1 %v3675_v56  ;;  %v3753_v56 = vld [vmem:[%s5392_s4 + $0x368] ss:$16 sps:$4 sm:$0xff]  }
  0x7c   :  { %1946 = vmatpush1.bf16.msra.mxu0 %v3672_v53  ;;  %2029 = vmatprep.subr.bf16.mxu1 %v3683_v62  ;;  %v3750_v53 = vld [vmem:[%s5392_s4 + $0x760] ss:$16 sps:$4 sm:$0xff]   ;;  %v3761_v62 = vld [vmem:[%s5392_s4 + $0x38c] ss:$16 sps:$4 sm:$0xff]  }
  0x7d   :  { %1947 = vmatprep.subr.bf16.mxu0 %v3680_v60  ;;  %v3758_v60 = vld [vmem:[%s5392_s4 + $0x784] ss:$16 sps:$4 sm:$0xff]  }
  0x7f   :  { %2030 = vmatpush1.bf16.msra.mxu1 %v3681_v3  ;;  %v3764_v3 = vld [vmem:[%s5392_s4 + $0x7a4] ss:$16 sps:$4 sm:$0xff]  }
  0x80   :  { %1948 = vmatpush1.bf16.msra.mxu0 %v3678_v0  ;;  %2040 = vmatprep.subr.bf16.mxu1 %v3689_v38  ;;  %v3759_v0 = vld [vmem:[%s5392_s4 + $0x388] ss:$16 sps:$4 sm:$0xff]   ;;  %v3762_v38 = vld [vmem:[%s5392_s4 + $0x7a0] ss:$16 sps:$4 sm:$0xff]  }
  0x81   :  { %1958 = vmatprep.subr.bf16.mxu0 %v3686_v5  ;;  %v3767_v5 = vld [vmem:[%s5392_s4 + $0x3ac] ss:$16 sps:$4 sm:$0xff]  }
  0x82   :  { %2032 = vmatmul.mubr.bf16.vlgmr.msra.gmra.mrb[4].mxu1 %v4348_v15  ;;  %v3701_v15 = vld [vmem:[%s5392_s4 + $0x24c] ss:$16 sps:$4 sm:$0xff]  }
  0x83   :  { %1950 = vmatmul.mubr.bf16.vlgmr.msra.gmra.mrb[0].mxu0 %v4608_v9  ;;  %2041 = vmatpush1.bf16.msra.mxu1 %v3687_v11  ;;  %v3773_v11 = vld [vmem:[%s5392_s4 + $0x3cc] ss:$16 sps:$4 sm:$0xff]  }
  0x84   :  { %1959 = vmatpush1.bf16.msra.mxu0 %v3684_v10  ;;  %2042 = vmatprep.subr.bf16.mxu1 %v3695_v8  ;;  %v3770_v10 = vld [vmem:[%s5392_s4 + $0x7c4] ss:$16 sps:$4 sm:$0xff]   ;;  %v3771_v8 = vld [vmem:[%s5392_s4 + $0x3c8] ss:$16 sps:$4 sm:$0xff]  }
  0x85   :  { %1960 = vmatprep.subr.bf16.mxu0 %v3692_v13  ;;  %1990 = vmatprep.mubr.bf16.mxu0 %v4622_v16  ;;  %v3768_v13 = vld [vmem:[%s5392_s4 + $0x7c0] ss:$16 sps:$4 sm:$0xff]  }
  0x86   :  { %2072 = vmatprep.mubr.bf16.mxu1 %v4384_v6  ;;  %v3707_v6 = vld [vmem:[%s5392_s4 + $0x26c] ss:$16 sps:$4 sm:$0xff]  }
  0x87   :  { %2043 = vmatpush1.bf16.msra.mxu1 %v3693_v1  ;;  %v3779_v1 = vld [vmem:[%s5392_s4 + $0x3ec] ss:$16 sps:$4 sm:$0xff]  }
  0x88   :  { %1961 = vmatpush1.bf16.msra.mxu0 %v3690_v17  ;;  %2044 = vmatprep.subr.bf16.mxu1 %v3701_v15  ;;  %v3776_v17 = vld [vmem:[%s5392_s4 + $0x7e4] ss:$16 sps:$4 sm:$0xff]   ;;  %v3774_v15 = vld [vmem:[%s5392_s4 + $0x7e0] ss:$16 sps:$4 sm:$0xff]  }
  0x89   :  { %1962 = vmatprep.subr.bf16.mxu0 %v3698_v18  ;;  %v289_v18 = vmax.f32 %v4428_v57, 0.0  ;;  %v3780_v57 = vld [vmem:[%s5392_s4 + $0x408] ss:$16 sps:$4 sm:$0xff]  }
  0x8b   :  { %2045 = vmatpush1.bf16.msra.mxu1 %v3699_v20  ;;  %v3782_v20 = vld [vmem:[%s5392_s4 + $0x40c] ss:$16 sps:$4 sm:$0xff]  }
  0x8c   :  { %1963 = vmatpush1.bf16.msra.mxu0 %v3696_v19  ;;  %2046 = vmatprep.subr.bf16.mxu1 %v3707_v6  ;;  %v3777_v19 = vld [vmem:[%s5392_s4 + $0x3e8] ss:$16 sps:$4 sm:$0xff]   ;;  %v3785_v6 = vld [vmem:[%s5392_s4 + $0x42c] ss:$16 sps:$4 sm:$0xff]  }
  0x8d   :  { %1964 = vmatprep.subr.bf16.mxu0 %v3704_v21  ;;  %v4806_v21 = vpack.c.bf16 %v289_v18, %v289_v18  ;;  %v3855_v18 = vld [vmem:[%s5392_s4 + $0x728] ss:$16 sps:$4 sm:$0xff]  }
  0x8f   :  { %2047 = vmatpush1.bf16.msra.mxu1 %v3705_v59  ;;  %v3788_v59 = vld [vmem:[%s5392_s4 + $0x44c] ss:$16 sps:$4 sm:$0xff]  }
  0x90   :  { %1965 = vmatpush1.bf16.msra.mxu0 %v3702_v22  ;;  %2048 = vmatprep.subr.bf16.mxu1 %v3713_v24  ;;  %v3783_v22 = vld [vmem:[%s5392_s4 + $0x428] ss:$16 sps:$4 sm:$0xff]   ;;  %v3794_v24 = vld [vmem:[%s5392_s4 + $0x48c] ss:$16 sps:$4 sm:$0xff]  }
  0x91   :  { %1966 = vmatprep.subr.bf16.mxu0 %v3710_v23  ;;  %v3786_v23 = vld [vmem:[%s5392_s4 + $0x448] ss:$16 sps:$4 sm:$0xff]  }
  0x93   :  { %2049 = vmatpush1.bf16.msra.mxu1 %v3711_v26  ;;  %v3797_v26 = vld [vmem:[%s5392_s4 + $0x4ac] ss:$16 sps:$4 sm:$0xff]  }
  0x94   :  { %1967 = vmatpush1.bf16.msra.mxu0 %v3708_v25  ;;  %2050 = vmatprep.subr.bf16.mxu1 %v3719_v28  ;;  %v3792_v25 = vld [vmem:[%s5392_s4 + $0x488] ss:$16 sps:$4 sm:$0xff]   ;;  %v3800_v28 = vld [vmem:[%s5392_s4 + $0x4cc] ss:$16 sps:$4 sm:$0xff]  }
  0x95   :  { %1968 = vmatprep.subr.bf16.mxu0 %v3716_v27  ;;  %v3795_v27 = vld [vmem:[%s5392_s4 + $0x4a8] ss:$16 sps:$4 sm:$0xff]  }
  0x97   :  { %2051 = vmatpush1.bf16.msra.mxu1 %v3717_v30  ;;  %v3803_v30 = vld [vmem:[%s5392_s4 + $0x4ec] ss:$16 sps:$4 sm:$0xff]  }
  0x98   :  { %1969 = vmatpush1.bf16.msra.mxu0 %v3714_v29  ;;  %2052 = vmatprep.subr.bf16.mxu1 %v3725_v32  ;;  %v3798_v29 = vld [vmem:[%s5392_s4 + $0x4c8] ss:$16 sps:$4 sm:$0xff]   ;;  %v3806_v32 = vld [vmem:[%s5392_s4 + $0x50c] ss:$16 sps:$4 sm:$0xff]  }
  0x99   :  { %1970 = vmatprep.subr.bf16.mxu0 %v3722_v31  ;;  %v3801_v31 = vld [vmem:[%s5392_s4 + $0x4e8] ss:$16 sps:$4 sm:$0xff]  }
  0x9b   :  { %2053 = vmatpush1.bf16.msra.mxu1 %v3723_v14  ;;  %v3809_v14 = vld [vmem:[%s5392_s4 + $0x52c] ss:$16 sps:$4 sm:$0xff]  }
  0x9c   :  { %1971 = vmatpush1.bf16.msra.mxu0 %v3720_v61  ;;  %2054 = vmatprep.subr.bf16.mxu1 %v3731_v34  ;;  %v3804_v61 = vld [vmem:[%s5392_s4 + $0x508] ss:$16 sps:$4 sm:$0xff]   ;;  %v3812_v34 = vld [vmem:[%s5392_s4 + $0x54c] ss:$16 sps:$4 sm:$0xff]  }
  0x9d   :  { %1972 = vmatprep.subr.bf16.mxu0 %v3728_v33  ;;  %v3807_v33 = vld [vmem:[%s5392_s4 + $0x528] ss:$16 sps:$4 sm:$0xff]  }
  0x9f   :  { %2055 = vmatpush1.bf16.msra.mxu1 %v3729_v37  ;;  %v3815_v37 = vld [vmem:[%s5392_s4 + $0x56c] ss:$16 sps:$4 sm:$0xff]  }
  0xa0   :  { %1973 = vmatpush1.bf16.msra.mxu0 %v3726_v35  ;;  %2056 = vmatprep.subr.bf16.mxu1 %v3737_v2  ;;  %v3810_v35 = vld [vmem:[%s5392_s4 + $0x548] ss:$16 sps:$4 sm:$0xff]   ;;  %v3818_v2 = vld [vmem:[%s5392_s4 + $0x58c] ss:$16 sps:$4 sm:$0xff]  }
  0xa1   :  { %1974 = vmatprep.subr.bf16.mxu0 %v3734_v51  ;;  %v3813_v51 = vld [vmem:[%s5392_s4 + $0x568] ss:$16 sps:$4 sm:$0xff]  }
  0xa3   :  { %2057 = vmatpush1.bf16.msra.mxu1 %v3735_v39  ;;  %v3821_v39 = vld [vmem:[%s5392_s4 + $0x5ac] ss:$16 sps:$4 sm:$0xff]  }
  0xa4   :  { %1975 = vmatpush1.bf16.msra.mxu0 %v3732_v12  ;;  %2058 = vmatprep.subr.bf16.mxu1 %v3743_v41  ;;  %v3816_v12 = vld [vmem:[%s5392_s4 + $0x588] ss:$16 sps:$4 sm:$0xff]   ;;  %v3824_v41 = vld [vmem:[%s5392_s4 + $0x5cc] ss:$16 sps:$4 sm:$0xff]  }
  0xa5   :  { %1976 = vmatprep.subr.bf16.mxu0 %v3740_v40  ;;  %v3819_v40 = vld [vmem:[%s5392_s4 + $0x5a8] ss:$16 sps:$4 sm:$0xff]  }
  0xa7   :  { %2059 = vmatpush1.bf16.msra.mxu1 %v3741_v42  ;;  %v3827_v42 = vld [vmem:[%s5392_s4 + $0x5ec] ss:$16 sps:$4 sm:$0xff]  }
  0xa8   :  { %1977 = vmatpush1.bf16.msra.mxu0 %v3738_v4  ;;  %2060 = vmatprep.subr.bf16.mxu1 %v3749_v58  ;;  %v3822_v4 = vld [vmem:[%s5392_s4 + $0x5c8] ss:$16 sps:$4 sm:$0xff]   ;;  %v3830_v58 = vld [vmem:[%s5392_s4 + $0x60c] ss:$16 sps:$4 sm:$0xff]  }
  0xa9   :  { %1978 = vmatprep.subr.bf16.mxu0 %v3746_v43  ;;  %v3825_v43 = vld [vmem:[%s5392_s4 + $0x5e8] ss:$16 sps:$4 sm:$0xff]  }
  0xab   :  { %2061 = vmatpush1.bf16.msra.mxu1 %v3747_v46  ;;  %v3833_v46 = vld [vmem:[%s5392_s4 + $0x62c] ss:$16 sps:$4 sm:$0xff]  }
  0xac   :  { %1979 = vmatpush1.bf16.msra.mxu0 %v3744_v45  ;;  %2062 = vmatprep.subr.bf16.mxu1 %v3755_v49  ;;  %v3828_v45 = vld [vmem:[%s5392_s4 + $0x608] ss:$16 sps:$4 sm:$0xff]   ;;  %v3836_v49 = vld [vmem:[%s5392_s4 + $0x64c] ss:$16 sps:$4 sm:$0xff]  }
  0xad   :  { %1980 = vmatprep.subr.bf16.mxu0 %v3752_v47  ;;  %v3831_v47 = vld [vmem:[%s5392_s4 + $0x628] ss:$16 sps:$4 sm:$0xff]  }
  0xaf   :  { %2063 = vmatpush1.bf16.msra.mxu1 %v3753_v56  ;;  %v3842_v56 = vld [vmem:[%s5392_s4 + $0x68c] ss:$16 sps:$4 sm:$0xff]  }
  0xb0   :  { %1981 = vmatpush1.bf16.msra.mxu0 %v3750_v53  ;;  %2064 = vmatprep.subr.bf16.mxu1 %v3761_v62  ;;  %v3834_v53 = vld [vmem:[%s5392_s4 + $0x648] ss:$16 sps:$4 sm:$0xff]   ;;  %v3845_v62 = vld [vmem:[%s5392_s4 + $0x6ac] ss:$16 sps:$4 sm:$0xff]  }
  0xb1   :  { %1982 = vmatprep.subr.bf16.mxu0 %v3758_v60  ;;  %v3840_v60 = vld [vmem:[%s5392_s4 + $0x688] ss:$16 sps:$4 sm:$0xff]  }
  0xb3   :  { %2065 = vmatpush1.bf16.msra.mxu1 %v3759_v0  ;;  %v3848_v0 = vld [vmem:[%s5392_s4 + $0x6cc] ss:$16 sps:$4 sm:$0xff]  }
  0xb4   :  { %1983 = vmatpush1.bf16.msra.mxu0 %v3756_v63  ;;  %2066 = vmatprep.subr.bf16.mxu1 %v3767_v5  ;;  %v3843_v63 = vld [vmem:[%s5392_s4 + $0x6a8] ss:$16 sps:$4 sm:$0xff]  }
  0xb5   :  { %1984 = vmatprep.subr.bf16.mxu0 %v3764_v3 }
  0xb7   :  { %2067 = vmatpush1.bf16.msra.mxu1 %v3765_v7  ;;  %v3846_v7 = vld [vmem:[%s5392_s4 + $0x6c8] ss:$16 sps:$4 sm:$0xff]  }
  0xb8   :  { %1985 = vmatpush1.bf16.msra.mxu0 %v3762_v38  ;;  %2068 = vmatprep.subr.bf16.mxu1 %v3773_v11  ;;  %v3851_v11 = vld [vmem:[%s5392_s4 + $0x6ec] ss:$16 sps:$4 sm:$0xff]  }
  0xb9   :  { %1986 = vmatprep.subr.bf16.mxu0 %v3770_v10 }
  0xbb   :  { %2069 = vmatpush1.bf16.msra.mxu1 %v3771_v8  ;;  %v3854_v8 = vld [vmem:[%s5392_s4 + $0x70c] ss:$16 sps:$4 sm:$0xff]  }
  0xbc   :  { %1987 = vmatpush1.bf16.msra.mxu0 %v3768_v13  ;;  %2070 = vmatprep.subr.bf16.mxu1 %v3779_v1  ;;  %v3849_v13 = vld [vmem:[%s5392_s4 + $0x6e8] ss:$16 sps:$4 sm:$0xff]   ;;  %v3857_v1 = vld [vmem:[%s5392_s4 + $0x72c] ss:$16 sps:$4 sm:$0xff]  }
  0xbd   :  { %1988 = vmatprep.subr.bf16.mxu0 %v3776_v17  ;;  %v3852_v17 = vld [vmem:[%s5392_s4 + $0x708] ss:$16 sps:$4 sm:$0xff]  }
  0xbf   :  { %2071 = vmatpush1.bf16.msra.mxu1 %v3777_v19  ;;  %v3858_v19 = vld [vmem:[%s5392_s4 + $0x748] ss:$16 sps:$4 sm:$0xff]  }
  0xc0   :  { %1989 = vmatpush1.bf16.msra.mxu0 %v3774_v15  ;;  %2081 = vmatprep.subr.bf16.mxu1 %v3782_v20  ;;  %v3860_v15 = vld [vmem:[%s5392_s4 + $0x74c] ss:$16 sps:$4 sm:$0xff]  }
  0xc1   :  { %v3863_v20 = vld [vmem:[%s5392_s4 + $0x76c] ss:$16 sps:$4 sm:$0xff]  }
  0xc2   :  { %2073 = vmatmul.mubr.bf16.vlgmr.msra.gmra.mrb[4].mxu1 %v4392_v36  ;;  %v3791_v36 = vld [vmem:[%s5392_s4 + $0x46c] ss:$16 sps:$4 sm:$0xff]  }
  0xc3   :  { %1991 = vmatmul.mubr.bf16.vlgmr.msra.gmra.mrb[0].mxu0 %v4806_v21  ;;  %2082 = vmatpush1.bf16.msra.mxu1 %v3780_v57  ;;  %v3861_v57 = vld [vmem:[%s5392_s4 + $0x768] ss:$16 sps:$4 sm:$0xff]  }
  0xc4   :  { %2113 = vmatprep.mubr.bf16.mxu1 %v4416_v48  ;;  %2083 = vmatprep.subr.bf16.mxu1 %v3785_v6  ;;  %v3789_v48 = vld [vmem:[%s5392_s4 + $0x468] ss:$16 sps:$4 sm:$0xff]   ;;  %v3866_v6 = vld [vmem:[%s5392_s4 + $0x78c] ss:$16 sps:$4 sm:$0xff]  }
  0xc7   :  { %2084 = vmatpush1.bf16.msra.mxu1 %v3783_v22  ;;  %v3864_v22 = vld [vmem:[%s5392_s4 + $0x788] ss:$16 sps:$4 sm:$0xff]  }
  0xc8   :  { %2085 = vmatprep.subr.bf16.mxu1 %v3788_v59  ;;  %v3869_v59 = vld [vmem:[%s5392_s4 + $0x7ac] ss:$16 sps:$4 sm:$0xff]  }
  0xcb   :  { %2086 = vmatpush1.bf16.msra.mxu1 %v3786_v23  ;;  %v3867_v23 = vld [vmem:[%s5392_s4 + $0x7a8] ss:$16 sps:$4 sm:$0xff]  }
  0xcc   :  { %2087 = vmatprep.subr.bf16.mxu1 %v3791_v36  ;;  %v3872_v36 = vld [vmem:[%s5392_s4 + $0x7cc] ss:$16 sps:$4 sm:$0xff]  }
  0xcf   :  { %2088 = vmatpush1.bf16.msra.mxu1 %v3789_v48  ;;  %v3870_v48 = vld [vmem:[%s5392_s4 + $0x7c8] ss:$16 sps:$4 sm:$0xff]  }
  0xd0   :  { %2089 = vmatprep.subr.bf16.mxu1 %v3794_v24  ;;  %v3875_v24 = vld [vmem:[%s5392_s4 + $0x7ec] ss:$16 sps:$4 sm:$0xff]  }
  0xd3   :  { %2090 = vmatpush1.bf16.msra.mxu1 %v3792_v25  ;;  %v3873_v25 = vld [vmem:[%s5392_s4 + $0x7e8] ss:$16 sps:$4 sm:$0xff]  }
  0xd4   :  { %2091 = vmatprep.subr.bf16.mxu1 %v3797_v26 }
  0xd7   :  { %2092 = vmatpush1.bf16.msra.mxu1 %v3795_v27 }
  0xd8   :  { %2093 = vmatprep.subr.bf16.mxu1 %v3800_v28 }
  0xdb   :  { %2094 = vmatpush1.bf16.msra.mxu1 %v3798_v29 }
  0xdc   :  { %2095 = vmatprep.subr.bf16.mxu1 %v3803_v30 }
  0xdf   :  { %2096 = vmatpush1.bf16.msra.mxu1 %v3801_v31  ;;  %v3878_v31 = vld [vmem:[%s5397_s7 + $0x4] ss:$8 sps:$4 sm:$0xff]  }
  0xe0   :  { %2097 = vmatprep.subr.bf16.mxu1 %v3806_v32  ;;  %2761 = vmatprep.subr.bf16.mxu0 %v3878_v31  ;;  %v3899_v31 = vld [vmem:[%s5397_s7 + $0x74] ss:$8 sps:$4 sm:$0xff]  }
  0xe3   :  { %2098 = vmatpush1.bf16.msra.mxu1 %v3804_v61 }
  0xe4   :  { %2099 = vmatprep.subr.bf16.mxu1 %v3809_v14 }
  0xe7   :  { %2100 = vmatpush1.bf16.msra.mxu1 %v3807_v33 }
  0xe8   :  { %2101 = vmatprep.subr.bf16.mxu1 %v3812_v34 }
  0xeb   :  { %2102 = vmatpush1.bf16.msra.mxu1 %v3810_v35 }
  0xec   :  { %2103 = vmatprep.subr.bf16.mxu1 %v3815_v37 }
  0xef   :  { %2104 = vmatpush1.bf16.msra.mxu1 %v3813_v51 }
  0xf0   :  { %2105 = vmatprep.subr.bf16.mxu1 %v3818_v2 }
  0xf3   :  { %2106 = vmatpush1.bf16.msra.mxu1 %v3816_v12 }
  0xf4   :  { %2107 = vmatprep.subr.bf16.mxu1 %v3821_v39 }
  0xf7   :  { %2108 = vmatpush1.bf16.msra.mxu1 %v3819_v40  ;;  %v3881_v40 = vld [vmem:[%s5397_s7 + $0x14] ss:$8 sps:$4 sm:$0xff]  }
  0xf8   :  { %2109 = vmatprep.subr.bf16.mxu1 %v3824_v41 }
  0xfb   :  { %2110 = vmatpush1.bf16.msra.mxu1 %v3822_v4 }
  0xfc   :  { %2111 = vmatprep.subr.bf16.mxu1 %v3827_v42  ;;  %v3879_v42 = vld [vmem:[%s5397_s7 + $0x10] ss:$8 sps:$4 sm:$0xff]  }
  0xff   :  { %2112 = vmatpush1.bf16.msra.mxu1 %v3825_v43 }
 0x100   :  { %2122 = vmatprep.subr.bf16.mxu1 %v3830_v58 }
 0x102   :  { %2114 = vmatmul.mubr.bf16.vlgmr.msra.gmra.mrb[4].mxu1 %v4608_v9  ;;  %v3839_v9 = vld [vmem:[%s5392_s4 + $0x66c] ss:$16 sps:$4 sm:$0xff]  }
 0x103   :  { %2123 = vmatpush1.bf16.msra.mxu1 %v3828_v45  ;;  %2154 = vmatprep.mubr.bf16.mxu1 %v4622_v16  ;;  %v3837_v16 = vld [vmem:[%s5392_s4 + $0x668] ss:$16 sps:$4 sm:$0xff]  }
 0x104   :  { %2124 = vmatprep.subr.bf16.mxu1 %v3833_v46 }
 0x107   :  { %2125 = vmatpush1.bf16.msra.mxu1 %v3831_v47 }
 0x108   :  { %2126 = vmatprep.subr.bf16.mxu1 %v3836_v49 }
 0x10b   :  { %2127 = vmatpush1.bf16.msra.mxu1 %v3834_v53  ;;  %v3884_v53 = vld [vmem:[%s5397_s7 + $0x24] ss:$8 sps:$4 sm:$0xff]  }
 0x10c   :  { %2128 = vmatprep.subr.bf16.mxu1 %v3839_v9 }
 0x10f   :  { %2129 = vmatpush1.bf16.msra.mxu1 %v3837_v16 }
 0x110   :  { %2130 = vmatprep.subr.bf16.mxu1 %v3842_v56  ;;  %v3882_v56 = vld [vmem:[%s5397_s7 + $0x20] ss:$8 sps:$4 sm:$0xff]  }
 0x113   :  { %2131 = vmatpush1.bf16.msra.mxu1 %v3840_v60 }
 0x114   :  { %2132 = vmatprep.subr.bf16.mxu1 %v3845_v62 }
 0x115   :  { %v1869_v3 = vpop.f32.mrb[0].mxu1 }
 0x116   :  { %v1871_v5 = vpop.f32.mrb[1].mxu1 }
 0x117   :  { %v1873_v38 = vpop.f32.mrb[2].mxu1  ;;  %2133 = vmatpush1.bf16.msra.mxu1 %v3843_v63 }
 0x118   :  { %v1874_v10 = vpop.f32.mrb[3].mxu1  ;;  %2134 = vmatprep.subr.bf16.mxu1 %v3848_v0  ;;  %v3887_v38 = vld [vmem:[%s5397_s7 + $0x34] ss:$8 sps:$4 sm:$0xff]  }
 0x11b   :  { %2135 = vmatpush1.bf16.msra.mxu1 %v3846_v7 }
 0x11c   :  { %2136 = vmatprep.subr.bf16.mxu1 %v3851_v11  ;;  %v3885_v11 = vld [vmem:[%s5397_s7 + $0x30] ss:$8 sps:$4 sm:$0xff]  }
 0x11f   :  { %2137 = vmatpush1.bf16.msra.mxu1 %v3849_v13 }
 0x120   :  { %2138 = vmatprep.subr.bf16.mxu1 %v3854_v8 }
 0x123   :  { %2139 = vmatpush1.bf16.msra.mxu1 %v3852_v17 }
 0x124   :  { %2140 = vmatprep.subr.bf16.mxu1 %v3857_v1 }
 0x127   :  { %2141 = vmatpush1.bf16.msra.mxu1 %v3855_v18 }
 0x128   :  { %2142 = vmatprep.subr.bf16.mxu1 %v3860_v15 }
 0x12b   :  { %2143 = vmatpush1.bf16.msra.mxu1 %v3858_v19  ;;  %v3890_v19 = vld [vmem:[%s5397_s7 + $0x44] ss:$8 sps:$4 sm:$0xff]  }
 0x12c   :  { %2144 = vmatprep.subr.bf16.mxu1 %v3863_v20 }
 0x12f   :  { %2145 = vmatpush1.bf16.msra.mxu1 %v3861_v57 }
 0x130   :  { %2146 = vmatprep.subr.bf16.mxu1 %v3866_v6  ;;  %v3888_v6 = vld [vmem:[%s5397_s7 + $0x40] ss:$8 sps:$4 sm:$0xff]  }
 0x133   :  { %2147 = vmatpush1.bf16.msra.mxu1 %v3864_v22 }
 0x134   :  { %2148 = vmatprep.subr.bf16.mxu1 %v3869_v59 }
 0x137   :  { %2149 = vmatpush1.bf16.msra.mxu1 %v3867_v23 }
 0x138   :  { %2150 = vmatprep.subr.bf16.mxu1 %v3872_v36  ;;  %v3893_v36 = vld [vmem:[%s5397_s7 + $0x54] ss:$8 sps:$4 sm:$0xff]  }
 0x13b   :  { %2151 = vmatpush1.bf16.msra.mxu1 %v3870_v48 }
 0x13c   :  { %2152 = vmatprep.subr.bf16.mxu1 %v3875_v24  ;;  %v3891_v24 = vld [vmem:[%s5397_s7 + $0x50] ss:$8 sps:$4 sm:$0xff]  }
 0x13f   :  { %2153 = vmatpush1.bf16.msra.mxu1 %v3873_v25 }
 0x142   :  { %2155 = vmatmul.mubr.bf16.vlgmr.msra.gmra.mrb[4].mxu1 %v4806_v21  ;;  %v3876_v21 = vld [vmem:[%s5397_s7] ss:$8 sps:$4 sm:$0xff]  }
 0x143   :  { %2762 = vmatpush1.bf16.msra.mxu0 %v3876_v21 }
 0x144   :  { %2763 = vmatprep.subr.bf16.mxu0 %v3881_v40  ;;  %v3914_v40 = vld [vmem:[%s5397_s7 + $0xc4] ss:$8 sps:$4 sm:$0xff]  }
 0x147   :  { %2764 = vmatpush1.bf16.msra.mxu0 %v3879_v42  ;;  %v3915_v42 = vld [vmem:[%s5397_s7 + $0xd0] ss:$8 sps:$4 sm:$0xff]  }
 0x148   :  { %2765 = vmatprep.subr.bf16.mxu0 %v3884_v53 }
 0x14b   :  { %2766 = vmatpush1.bf16.msra.mxu0 %v3882_v56 }
 0x14c   :  { %2767 = vmatprep.subr.bf16.mxu0 %v3887_v38 }
 0x14f   :  { %2768 = vmatpush1.bf16.msra.mxu0 %v3885_v11 }
 0x150   :  { %2769 = vmatprep.subr.bf16.mxu0 %v3890_v19 }
 0x153   :  { %2770 = vmatpush1.bf16.msra.mxu0 %v3888_v6 }
 0x154   :  { %2771 = vmatprep.subr.bf16.mxu0 %v3893_v36 }
 0x157   :  { %2772 = vmatpush1.bf16.msra.mxu0 %v3891_v24 }
 0x196   :  { %v1992_v26 = vpop.f32.mrb[0].mxu0 }
 0x197   :  { %v5003_v27 = vadd.f32 %v1992_v26, %v1869_v3  ;;  %v1994_v28 = vpop.f32.mrb[1].mxu0 }
 0x198   :  { %v5005_v29 = vadd.f32 %v1994_v28, %v1871_v5  ;;  %v1996_v30 = vpop.f32.mrb[2].mxu0  ;;  %v3896_v28 = vld [vmem:[%s5397_s7 + $0x64] ss:$8 sps:$4 sm:$0xff]  }
 0x199   :  { %v2166_v32 = vsel %vm2165_vm9, %v5003_v27, 0.0  ;;  %v2199_v61 = vmul.f32 %v5003_v27, %v5003_v27  ;;  %v1997_v14 = vpop.f32.mrb[3].mxu0  ;;  %v3894_v30 = vld [vmem:[%s5397_s7 + $0x60] ss:$8 sps:$4 sm:$0xff]   ;;  %2773 = vmatprep.subr.bf16.mxu0 %v3896_v28 }
 0x19a   :  { %v2167_v33 = vrot.slane %v2166_v32, 4  ;;  %v2173_v34 = vsel %vm2165_vm9, %v5005_v29, 0.0  ;;  %v2200_v35 = vmul.f32 %v5005_v29, %v5005_v29  ;;  %2774 = vmatpush1.bf16.msra.mxu0 %v3894_v30  ;;  %v3900_v14 = vld [vmem:[%s5397_s7 + $0x80] ss:$8 sps:$4 sm:$0xff]  }
 0x19b   :  { %v2203_v37 = vsel %vm2165_vm9, %v2199_v61, 0.0  ;;  %v2174_v51 = vrot.slane %v2173_v34, 4  ;;  %2775 = vmatprep.subr.bf16.mxu0 %v3899_v31  ;;  %v3902_v61 = vld [vmem:[%s5397_s7 + $0x84] ss:$8 sps:$4 sm:$0xff]  }
 0x19c   :  { %v2168_v2 = vadd.f32 %v2167_v33, %v2166_v32  ;;  %v2204_v12 = vrot.slane %v2203_v37, 4  ;;  %v2210_v39 = vsel %vm2165_vm9, %v2200_v35, 0.0  ;;  %v3897_v32 = vld [vmem:[%s5397_s7 + $0x70] ss:$8 sps:$4 sm:$0xff]   ;;  %v3905_v35 = vld [vmem:[%s5397_s7 + $0x94] ss:$8 sps:$4 sm:$0xff]  }
 0x19d   :  { %v2175_v41 = vadd.f32 %v2174_v51, %v2173_v34  ;;  %v2211_v4 = vrot.slane %v2210_v39, 4  ;;  %v3908_v51 = vld [vmem:[%s5397_s7 + $0xa4] ss:$8 sps:$4 sm:$0xff]  }
 0x19e   :  { %v2169_v43 = vrot.slane %v2168_v2, 2  ;;  %v2205_v58 = vadd.f32 %v2204_v12, %v2203_v37  ;;  %2776 = vmatpush1.bf16.msra.mxu0 %v3897_v32  ;;  %v3903_v37 = vld [vmem:[%s5397_s7 + $0x90] ss:$8 sps:$4 sm:$0xff]   ;;  %v3911_v12 = vld [vmem:[%s5397_s7 + $0xb4] ss:$8 sps:$4 sm:$0xff]  }
 0x19f   :  { %v2176_v45 = vrot.slane %v2175_v41, 2  ;;  %v2212_v46 = vadd.f32 %v2211_v4, %v2210_v39  ;;  %2777 = vmatprep.subr.bf16.mxu0 %v3902_v61  ;;  %v3909_v39 = vld [vmem:[%s5397_s7 + $0xb0] ss:$8 sps:$4 sm:$0xff]   ;;  %v3917_v4 = vld [vmem:[%s5397_s7 + $0xd4] ss:$8 sps:$4 sm:$0xff]  }
 0x1a0   :  { %v2170_v47 = vadd.f32 %v2169_v43, %v2168_v2  ;;  %v2206_v49 = vrot.slane %v2205_v58, 2  ;;  %v3906_v2 = vld [vmem:[%s5397_s7 + $0xa0] ss:$8 sps:$4 sm:$0xff]   ;;  %v3920_v43 = vld [vmem:[%s5397_s7 + $0xe4] ss:$8 sps:$4 sm:$0xff]  }
 0x1a1   :  { %v2177_v9 = vadd.f32 %v2176_v45, %v2175_v41  ;;  %v2213_v16 = vrot.slane %v2212_v46, 2  ;;  %v3912_v41 = vld [vmem:[%s5397_s7 + $0xc0] ss:$8 sps:$4 sm:$0xff]   ;;  %v3923_v45 = vld [vmem:[%s5397_s7 + $0xf4] ss:$8 sps:$4 sm:$0xff]  }
 0x1a2   :  { %v2171_v60 = vrot.slane %v2170_v47, 1  ;;  %v2207_v62 = vadd.f32 %v2206_v49, %v2205_v58  ;;  %2778 = vmatpush1.bf16.msra.mxu0 %v3900_v14  ;;  %v3918_v58 = vld [vmem:[%s5397_s7 + $0xe0] ss:$8 sps:$4 sm:$0xff]  }
 0x1a3   :  { %v2178_v63 = vrot.slane %v2177_v9, 1  ;;  %v2214_v0 = vadd.f32 %v2213_v16, %v2212_v46  ;;  %2779 = vmatprep.subr.bf16.mxu0 %v3905_v35  ;;  %v3921_v46 = vld [vmem:[%s5397_s7 + $0xf0] ss:$8 sps:$4 sm:$0xff]  }
 0x1a4   :  { %v2172_v3 = vadd.f32 %v2171_v60, %v2170_v47  ;;  %v2208_v5 = vrot.slane %v2207_v62, 1  ;;  %v3926_v47 = vld [vmem:[%s5397_s7 + $0x104] ss:$8 sps:$4 sm:$0xff]  }
 0x1a5   :  { %v2179_v7 = vadd.f32 %v2178_v63, %v2177_v9  ;;  %v2215_v10 = vrot.slane %v2214_v0, 1 }
 0x1a6   :  { %v5041_v13 = vmul.f32 0.5, %v2172_v3  ;;  %v2209_v8 = vadd.f32 %v2208_v5, %v2207_v62  ;;  %2780 = vmatpush1.bf16.msra.mxu0 %v3903_v37 }
 0x1a7   :  { %v5043_v17 = vmul.f32 0.5, %v2179_v7  ;;  %v2216_v1 = vadd.f32 %v2215_v10, %v2214_v0  ;;  %2781 = vmatprep.subr.bf16.mxu0 %v3908_v51 }
 0x1a8   :  { %v2231_v18 = vmul.f32 0.5, %v2209_v8  ;;  %v2235_v15 = vmul.f32 %v5041_v13, %v5041_v13 }
 0x1a9   :  { %v2232_v20 = vmul.f32 0.5, %v2216_v1  ;;  %v2236_v57 = vmul.f32 %v5043_v17, %v5043_v17 }
 0x1aa   :  { %v2239_v22 = vsub.f32 %v2231_v18, %v2235_v15  ;;  %2782 = vmatpush1.bf16.msra.mxu0 %v3906_v2 }
 0x1ab   :  { %v2240_v59 = vsub.f32 %v2232_v20, %v2236_v57  ;;  %2783 = vmatprep.subr.bf16.mxu0 %v3911_v12 }
 0x1ac   :  { %v2243_v23 = vmax.f32 %v2239_v22, 0.0 }
 0x1ad   :  { %v2244_v48 = vmax.f32 %v2240_v59, 0.0 }
 0x1ae   :  { %v2247_v25 = vadd.f32 1e-05, %v2243_v23  ;;  %2784 = vmatpush1.bf16.msra.mxu0 %v3909_v39 }
 0x1af   :  { %v2248_v26 = vadd.f32 1e-05, %v2244_v48  ;;  %2785 = vmatprep.subr.bf16.mxu0 %v3914_v40 }
 0x1b0   :  { %3972 = vrsqrt.f32 %v2247_v25 }
 0x1b1   :  { %3974 = vrsqrt.f32 %v2248_v26 }
 0x1b2   :  { %2786 = vmatpush1.bf16.msra.mxu0 %v3912_v41 }
 0x1b3   :  { %2787 = vmatprep.subr.bf16.mxu0 %v3917_v4 }
 0x1b6   :  { %2788 = vmatpush1.bf16.msra.mxu0 %v3915_v42  ;;  %v3986_v42 = vmov 1966171168  }
 0x1b7   :  { %2789 = vmatprep.subr.bf16.mxu0 %v3920_v43  ;;  %v2262_v43 = vunpack.c.l.s4 %v3986_v42  ;;  %v3950_v42 = vld [vmem:[%s5397_s7 + $0x184] ss:$8 sps:$4 sm:$0xff]  }
 0x1ba   :  { %v5079_v21 = vpop.eup %3972  ;;  %2790 = vmatpush1.bf16.msra.mxu0 %v3918_v58  ;;  %v2263_v58 = vunpack.c.0.s8 %v2262_v43  ;;  %v3948_v43 = vld [vmem:[%s5397_s7 + $0x180] ss:$8 sps:$4 sm:$0xff]  }
 0x1bb   :  { %v5081_v33 = vpop.eup %3974  ;;  %2791 = vmatprep.subr.bf16.mxu0 %v3923_v45 }
 0x1bc   :  { %v2259_v34 = vcombine.low %v5079_v21, %v5081_v33 }
 0x1be   :  { %2792 = vmatpush1.bf16.msra.mxu0 %v3921_v46  ;;  %v5145_v46 = vsub.s32 %v2263_v58, %v4175_v44  ;;  %v3953_v58 = vld [vmem:[%s5397_s7 + $0x194] ss:$8 sps:$4 sm:$0xff]  }
 0x1bf   :  { %2802 = vmatprep.subr.bf16.mxu0 %v3926_v47 }
 0x215   :  { %v5130_v49 = vpop.f32.mrb[4].mxu1 }
 0x216   :  { %v2180_v53 = vsel %vm2165_vm9, %v5130_v49, 0.0  ;;  %v2201_v9 = vmul.f32 %v5130_v49, %v5130_v49  ;;  %v5136_v16 = vpop.f32.mrb[5].mxu1 }
 0x217   :  { %v2181_v56 = vrot.slane %v2180_v53, 4  ;;  %v2187_v60 = vsel %vm2165_vm9, %v5136_v16, 0.0  ;;  %v2202_v62 = vmul.f32 %v5136_v16, %v5136_v16  ;;  %v2160_v63 = vpop.f32.mrb[6].mxu1 }
 0x218   :  { %v2217_v0 = vsel %vm2165_vm9, %v2201_v9, 0.0  ;;  %v2188_v3 = vrot.slane %v2187_v60, 4  ;;  %v2161_v5 = vpop.f32.mrb[7].mxu1  ;;  %v2267_v9 = vrot.slane %v2259_v34, %v5145_v46 }
 0x219   :  { %v2182_v38 = vadd.f32 %v2181_v56, %v2180_v53  ;;  %v2218_v7 = vrot.slane %v2217_v0, 4  ;;  %v2224_v10 = vsel %vm2165_vm9, %v2202_v62, 0.0  ;;  %v2163_v62 = vld [vmem:[%s5398_s5] sm:$0xf] }
 0x21a   :  { %v2189_v11 = vadd.f32 %v2188_v3, %v2187_v60  ;;  %v2225_v8 = vrot.slane %v2224_v10, 4 }
 0x21b   :  { %v2183_v1 = vrot.slane %v2182_v38, 2  ;;  %v2219_v18 = vadd.f32 %v2218_v7, %v2217_v0 }
 0x21c   :  { %v2190_v15 = vrot.slane %v2189_v11, 2  ;;  %v2226_v19 = vadd.f32 %v2225_v8, %v2224_v10 }
 0x21d   :  { %v2184_v20 = vadd.f32 %v2183_v1, %v2182_v38  ;;  %v2220_v57 = vrot.slane %v2219_v18, 2 }
 0x21e   :  { %v2191_v6 = vadd.f32 %v2190_v15, %v2189_v11  ;;  %v2227_v22 = vrot.slane %v2226_v19, 2 }
 0x21f   :  { %v2185_v59 = vrot.slane %v2184_v20, 1  ;;  %v2221_v23 = vadd.f32 %v2220_v57, %v2219_v18 }
 0x220   :  { %v2192_v36 = vrot.slane %v2191_v6, 1  ;;  %v2228_v48 = vadd.f32 %v2227_v22, %v2226_v19 }
 0x221   :  { %v2186_v24 = vadd.f32 %v2185_v59, %v2184_v20  ;;  %v2222_v25 = vrot.slane %v2221_v23, 1 }
 0x222   :  { %v2193_v26 = vadd.f32 %v2192_v36, %v2191_v6  ;;  %v2229_v28 = vrot.slane %v2228_v48, 1 }
 0x223   :  { %v2197_v30 = vmul.f32 0.5, %v2186_v24  ;;  %v2223_v31 = vadd.f32 %v2222_v25, %v2221_v23 }
 0x224   :  { %v2198_v32 = vmul.f32 0.5, %v2193_v26  ;;  %v2230_v61 = vadd.f32 %v2229_v28, %v2228_v48  ;;  %v3924_v28 = vld [vmem:[%s5397_s7 + $0x100] ss:$8 sps:$4 sm:$0xff]  }
 0x225   :  { %v2233_v14 = vmul.f32 0.5, %v2223_v31  ;;  %v2237_v35 = vmul.f32 %v2197_v30, %v2197_v30  ;;  %v3927_v31 = vld [vmem:[%s5397_s7 + $0x110] ss:$8 sps:$4 sm:$0xff]  }
 0x226   :  { %v2234_v37 = vmul.f32 0.5, %v2230_v61  ;;  %v2238_v51 = vmul.f32 %v2198_v32, %v2198_v32  ;;  %v3930_v61 = vld [vmem:[%s5397_s7 + $0x120] ss:$8 sps:$4 sm:$0xff]  }
 0x227   :  { %v2241_v2 = vsub.f32 %v2233_v14, %v2237_v35  ;;  %v3935_v14 = vld [vmem:[%s5397_s7 + $0x134] ss:$8 sps:$4 sm:$0xff]   ;;  %v3933_v35 = vld [vmem:[%s5397_s7 + $0x130] ss:$8 sps:$4 sm:$0xff]  }
 0x228   :  { %v2242_v12 = vsub.f32 %v2234_v37, %v2238_v51  ;;  %v3938_v37 = vld [vmem:[%s5397_s7 + $0x144] ss:$8 sps:$4 sm:$0xff]   ;;  %v3936_v51 = vld [vmem:[%s5397_s7 + $0x140] ss:$8 sps:$4 sm:$0xff]  }
 0x229   :  { %v2245_v39 = vmax.f32 %v2241_v2, 0.0  ;;  %v3941_v2 = vld [vmem:[%s5397_s7 + $0x154] ss:$8 sps:$4 sm:$0xff]  }
 0x22a   :  { %v2246_v40 = vmax.f32 %v2242_v12, 0.0  ;;  %v3939_v12 = vld [vmem:[%s5397_s7 + $0x150] ss:$8 sps:$4 sm:$0xff]  }
 0x22b   :  { %v2249_v41 = vadd.f32 1e-05, %v2245_v39  ;;  %v3944_v39 = vld [vmem:[%s5397_s7 + $0x164] ss:$8 sps:$4 sm:$0xff]  }
 0x22c   :  { %v2250_v4 = vadd.f32 1e-05, %v2246_v40  ;;  %v3942_v40 = vld [vmem:[%s5397_s7 + $0x160] ss:$8 sps:$4 sm:$0xff]  }
 0x22d   :  { %3976 = vrsqrt.f32 %v2249_v41  ;;  %v3947_v41 = vld [vmem:[%s5397_s7 + $0x174] ss:$8 sps:$4 sm:$0xff]  }
 0x22e   :  { %3978 = vrsqrt.f32 %v2250_v4  ;;  %v3945_v4 = vld [vmem:[%s5397_s7 + $0x170] ss:$8 sps:$4 sm:$0xff]  }
 0x237   :  { %v3977_v45 = vpop.eup %3976 }
 0x238   :  { %v3979_v47 = vpop.eup %3978 }
 0x239   :  { %v2260_v53 = vcombine.low %v3977_v45, %v3979_v47  ;;  %v3951_v45 = vld [vmem:[%s5397_s7 + $0x190] ss:$8 sps:$4 sm:$0xff]   ;;  %v3956_v47 = vld [vmem:[%s5397_s7 + $0x1a4] ss:$8 sps:$4 sm:$0xff]  }
 0x23b   :  { %v2274_v56 = vrot.slane %v2260_v53, %v5145_v46  ;;  %v3954_v53 = vld [vmem:[%s5397_s7 + $0x1a0] ss:$8 sps:$4 sm:$0xff]  }
 0x23d   :  { %v2275_v60 = vcombine.low %v2267_v9, %v2274_v56  ;;  %v3959_v9 = vld [vmem:[%s5397_s7 + $0x1b4] ss:$8 sps:$4 sm:$0xff]   ;;  %v3957_v56 = vld [vmem:[%s5397_s7 + $0x1b0] ss:$8 sps:$4 sm:$0xff]  }
 0x23f   :  { %v2282_v63 = vrot.slane %v2275_v60, %v5145_v46  ;;  %v3962_v60 = vld [vmem:[%s5397_s7 + $0x1c4] ss:$8 sps:$4 sm:$0xff]  }
 0x241   :  { %v2284_v0 = vmul.f32 %v2282_v63, %v2163_v62  ;;  %v3960_v62 = vld [vmem:[%s5397_s7 + $0x1c0] ss:$8 sps:$4 sm:$0xff]   ;;  %v3965_v63 = vld [vmem:[%s5397_s7 + $0x1d4] ss:$8 sps:$4 sm:$0xff]  }
 0x243   :  { %v2297_v44 = vrot.slane %v2284_v0, %v4205_v55  ;;  %v2301_v3 = vrot.slane %v2284_v0, %v4202_v54  ;;  %v2289_v5 = vrot.slane %v2284_v0, %v4196_v52  ;;  %v2293_v38 = vrot.slane %v2284_v0, %v4190_v50  ;;  %v3963_v0 = vld [vmem:[%s5397_s7 + $0x1d0] ss:$8 sps:$4 sm:$0xff]  }
 0x245   :  { %v2309_v21 = vmul.f32 %v2301_v3, %v5136_v16  ;;  %v2312_v33 = vmul.f32 %v2297_v44, %v2197_v30  ;;  %v2313_v34 = vmul.f32 %v2301_v3, %v2198_v32  ;;  %v2307_v7 = vmul.f32 %v5005_v29, %v2293_v38  ;;  %v2164_v16 = vld [vmem:[%s5399_s6] sm:$0xf]  ;;  %v3932_v32 = vld [vmem:[%s5397_s7 + $0x124] ss:$8 sps:$4 sm:$0xff]  }
 0x246   :  { %v2310_v10 = vmul.f32 %v2289_v5, %v5041_v13  ;;  %v2311_v11 = vmul.f32 %v2293_v38, %v5043_v17  ;;  %v2306_v8 = vmul.f32 %v5003_v27, %v2289_v5  ;;  %v2308_v1 = vmul.f32 %v2297_v44, %v5130_v49  ;;  %v3968_v44 = vld [vmem:[%s5397_s7 + $0x1e4] ss:$8 sps:$4 sm:$0xff]   ;;  %v3966_v3 = vld [vmem:[%s5397_s7 + $0x1e0] ss:$8 sps:$4 sm:$0xff]   ;;  %v3971_v5 = vld [vmem:[%s5397_s7 + $0x1f4] ss:$8 sps:$4 sm:$0xff]  }
 0x247   :  { %v2319_v18 = vcombine.low %v2312_v33, %v2313_v34  ;;  %v3969_v38 = vld [vmem:[%s5397_s7 + $0x1f0] ss:$8 sps:$4 sm:$0xff]   ;;  %v2973_v34 = vld [vmem:[%s5400_s10 + $0x80] sm:$0xff] }
 0x248   :  { %v2318_v15 = vcombine.low %v2310_v10, %v2311_v11  ;;  %v2957_v11 = vld [vmem:[%s5400_s10] sm:$0xff] }
 0x249   :  { %v2333_v19 = vrot.slane %v2319_v18, %v5145_v46  ;;  %v2975_v18 = vld [vmem:[%s5400_s10 + $0x90] sm:$0xff] }
 0x24a   :  { %v2326_v20 = vrot.slane %v2318_v15, %v5145_v46  ;;  %v2976_v15 = vld [vmem:[%s5400_s10 + $0x98] sm:$0xff] }
 0x24c   :  { %v2334_v57 = vcombine.low %v2326_v20, %v2333_v19  ;;  %v3431_v19 = vpack.c.bf16 %v2976_v15, %v2975_v18  ;;  %v2959_v20 = vld [vmem:[%s5400_s10 + $0x10] sm:$0xff] }
 0x24e   :  { %v2341_v29 = vrot.slane %v2334_v57, %v5145_v46  ;;  %v2960_v57 = vld [vmem:[%s5400_s10 + $0x18] sm:$0xff] }
 0x250   :  { %v2343_v13 = vsub.f32 %v2164_v16, %v2341_v29  ;;  %v3433_v16 = vpack.c.bf16 %v2960_v57, %v2959_v20  ;;  %v2977_v29 = vld [vmem:[%s5400_s10 + $0xa0] sm:$0xff] }
 0x252   :  { %v2352_v17 = vrot.slane %v2343_v13, %v4190_v50  ;;  %v2348_v27 = vrot.slane %v2343_v13, %v4196_v52  ;;  %v2360_v49 = vrot.slane %v2343_v13, %v4202_v54  ;;  %v2356_v6 = vrot.slane %v2343_v13, %v4205_v55  ;;  %v3929_v54 = vld [vmem:[%s5397_s7 + $0x114] ss:$8 sps:$4 sm:$0xff]   ;;  %v2978_v13 = vld [vmem:[%s5400_s10 + $0xa8] sm:$0xff] }
 0x254   :  { %v2366_v22 = vadd.f32 %v2352_v17, %v2307_v7  ;;  %v2365_v59 = vadd.f32 %v2348_v27, %v2306_v8  ;;  %v2368_v23 = vadd.f32 %v2360_v49, %v2309_v21  ;;  %v5176_v36 = vadd.f32 %v2356_v6, %v2308_v1  ;;  %v2974_v7 = vld [vmem:[%s5400_s10 + $0x88] sm:$0xff]  ;;  %v2961_v27 = vld [vmem:[%s5400_s10 + $0x20] sm:$0xff] }
 0x255   :  { %v3427_v10 = vpack.c.bf16 %v2974_v7, %v2973_v34  ;;  %v2958_v8 = vld [vmem:[%s5400_s10 + $0x8] sm:$0xff]  ;;  %v3435_v17 = vpack.c.bf16 %v2978_v13, %v2977_v29 }
 0x256   :  { %v2370_v48 = vmax.f32 %v2366_v22, 0.0  ;;  %v2369_v24 = vmax.f32 %v2365_v59, 0.0  ;;  %v2372_v25 = vmax.f32 %v2368_v23, 0.0  ;;  %v2371_v21 = vmax.f32 %v5176_v36, 0.0  ;;  %v2962_v49 = vld [vmem:[%s5400_s10 + $0x28] sm:$0xff]  ;;  %v2979_v22 = vld [vmem:[%s5400_s10 + $0xb0] sm:$0xff] }
 0x257   :  { %v3429_v1 = vpack.c.bf16 %v2958_v8, %v2957_v11  ;;  %3428 = vmatprep.subr.bf16.mxu1 %v3427_v10  ;;  %v3437_v6 = vpack.c.bf16 %v2962_v49, %v2961_v27  ;;  %v2980_v59 = vld [vmem:[%s5400_s10 + $0xb8] sm:$0xff]  ;;  %v2963_v36 = vld [vmem:[%s5400_s10 + $0x30] sm:$0xff] }
 0x258   :  { %v2374_v26 = vpack.c.bf16 %v2370_v48, %v2370_v48  ;;  %v2373_v30 = vpack.c.bf16 %v2369_v24, %v2369_v24  ;;  %v2376_v55 = vpack.c.bf16 %v2372_v25, %v2372_v25  ;;  %v2375_v33 = vpack.c.bf16 %v2371_v21, %v2371_v21  ;;  %v2964_v48 = vld [vmem:[%s5400_s10 + $0x38] sm:$0xff]  ;;  %v2981_v25 = vld [vmem:[%s5400_s10 + $0xc0] sm:$0xff] }
 0x259   :  { %3430 = vmatpush3.bf16.msra.mxu1 %v3429_v1  ;;  %v3439_v23 = vpack.c.bf16 %v2980_v59, %v2979_v22  ;;  %v3441_v24 = vpack.c.bf16 %v2964_v48, %v2963_v36 }
 0x25a   :  { %2793 = vmatprep.mubr.bf16.mxu0 %v2374_v26  ;;  %3432 = vmatprep.subr.bf16.mxu1 %v3431_v19  ;;  %v2982_v26 = vld [vmem:[%s5400_s10 + $0xc8] sm:$0xff] }
 0x25b   :  { %2794 = vmatmul.mubr.bf16.vlgmr.msra.gmra.mrb[4].mxu0 %v2373_v30  ;;  %v2965_v30 = vld [vmem:[%s5400_s10 + $0x40] sm:$0xff] }
 0x25c   :  { %2803 = vmatpush1.bf16.msra.mxu0 %v3924_v28  ;;  %2834 = vmatprep.mubr.bf16.mxu0 %v2376_v55  ;;  %v3443_v28 = vpack.c.bf16 %v2982_v26, %v2981_v25 }
 0x25d   :  { %2804 = vmatprep.subr.bf16.mxu0 %v3929_v54  ;;  %3434 = vmatpush3.bf16.msra.mxu1 %v3433_v16  ;;  %v2966_v54 = vld [vmem:[%s5400_s10 + $0x48] sm:$0xff] }
 0x25e   :  { %3436 = vmatprep.subr.bf16.mxu1 %v3435_v17  ;;  %v3445_v55 = vpack.c.bf16 %v2966_v54, %v2965_v30 }
 0x260   :  { %2805 = vmatpush1.bf16.msra.mxu0 %v3927_v31  ;;  %v2983_v31 = vld [vmem:[%s5400_s10 + $0xd0] sm:$0xff] }
 0x261   :  { %2806 = vmatprep.subr.bf16.mxu0 %v3932_v32  ;;  %3438 = vmatpush3.bf16.msra.mxu1 %v3437_v6  ;;  %v2984_v32 = vld [vmem:[%s5400_s10 + $0xd8] sm:$0xff] }
 0x262   :  { %3440 = vmatprep.subr.bf16.mxu1 %v3439_v23 }
 0x264   :  { %2807 = vmatpush1.bf16.msra.mxu0 %v3930_v61  ;;  %v3447_v61 = vpack.c.bf16 %v2984_v32, %v2983_v31 }
 0x265   :  { %2808 = vmatprep.subr.bf16.mxu0 %v3935_v14  ;;  %3442 = vmatpush3.bf16.msra.mxu1 %v3441_v24  ;;  %v2967_v14 = vld [vmem:[%s5400_s10 + $0x50] sm:$0xff] }
 0x266   :  { %3444 = vmatprep.subr.bf16.mxu1 %v3443_v28 }
 0x268   :  { %2809 = vmatpush1.bf16.msra.mxu0 %v3933_v35  ;;  %v2968_v35 = vld [vmem:[%s5400_s10 + $0x58] sm:$0xff] }
 0x269   :  { %2810 = vmatprep.subr.bf16.mxu0 %v3938_v37  ;;  %3446 = vmatpush3.bf16.msra.mxu1 %v3445_v55  ;;  %v3449_v37 = vpack.c.bf16 %v2968_v35, %v2967_v14 }
 0x26a   :  { %3448 = vmatprep.subr.bf16.mxu1 %v3447_v61 }
 0x26c   :  { %2811 = vmatpush1.bf16.msra.mxu0 %v3936_v51  ;;  %v2985_v51 = vld [vmem:[%s5400_s10 + $0xe0] sm:$0xff] }
 0x26d   :  { %2812 = vmatprep.subr.bf16.mxu0 %v3941_v2  ;;  %v2986_v2 = vld [vmem:[%s5400_s10 + $0xe8] sm:$0xff]  ;;  %3450 = vmatpush3.bf16.msra.mxu1 %v3449_v37 }
 0x270   :  { %2813 = vmatpush1.bf16.msra.mxu0 %v3939_v12  ;;  %v2969_v12 = vld [vmem:[%s5400_s10 + $0x60] sm:$0xff] }
 0x271   :  { %2814 = vmatprep.subr.bf16.mxu0 %v3944_v39  ;;  %v3451_v39 = vpack.c.bf16 %v2986_v2, %v2985_v51  ;;  %v2843_v2 = vld [vmem:[%s5401_s8] sm:$0x3] }
 0x273   :  { %3452 = vmatprep.subr.bf16.mxu1 %v3451_v39 }
 0x274   :  { %2815 = vmatpush1.bf16.msra.mxu0 %v3942_v40  ;;  %v2970_v40 = vld [vmem:[%s5400_s10 + $0x68] sm:$0xff] }
 0x275   :  { %2816 = vmatprep.subr.bf16.mxu0 %v3947_v41  ;;  %v2987_v41 = vld [vmem:[%s5400_s10 + $0xf0] sm:$0xff] }
 0x278   :  { %2817 = vmatpush1.bf16.msra.mxu0 %v3945_v4  ;;  %v2988_v4 = vld [vmem:[%s5400_s10 + $0xf8] sm:$0xff] }
 0x279   :  { %2818 = vmatprep.subr.bf16.mxu0 %v3950_v42  ;;  %v3453_v42 = vpack.c.bf16 %v2970_v40, %v2969_v12 }
 0x27b   :  { %3454 = vmatpush3.bf16.msra.mxu1 %v3453_v42 }
 0x27c   :  { %2819 = vmatpush1.bf16.msra.mxu0 %v3948_v43  ;;  %v3455_v43 = vpack.c.bf16 %v2988_v4, %v2987_v41 }
 0x27d   :  { %2820 = vmatprep.subr.bf16.mxu0 %v3953_v58  ;;  %v2971_v58 = vld [vmem:[%s5400_s10 + $0x70] sm:$0xff] }
 0x27e   :  { %3456 = vmatprep.subr.bf16.mxu1 %v3455_v43 }
 0x280   :  { %2821 = vmatpush1.bf16.msra.mxu0 %v3951_v45  ;;  %v2972_v45 = vld [vmem:[%s5400_s10 + $0x78] sm:$0xff] }
 0x281   :  { %2822 = vmatprep.subr.bf16.mxu0 %v3956_v47  ;;  %v3457_v47 = vpack.c.bf16 %v2972_v45, %v2971_v58 }
 0x283   :  { %3458 = vmatpush3.bf16.msra.mxu1 %v3457_v47 }
 0x284   :  { %2823 = vmatpush1.bf16.msra.mxu0 %v3954_v53 }
 0x285   :  { %2824 = vmatprep.subr.bf16.mxu0 %v3959_v9 }
 0x288   :  { %2825 = vmatpush1.bf16.msra.mxu0 %v3957_v56 }
 0x289   :  { %2826 = vmatprep.subr.bf16.mxu0 %v3962_v60 }
 0x28c   :  { %2827 = vmatpush1.bf16.msra.mxu0 %v3960_v62 }
 0x28d   :  { %2828 = vmatprep.subr.bf16.mxu0 %v3965_v63 }
 0x290   :  { %2829 = vmatpush1.bf16.msra.mxu0 %v3963_v0 }
 0x291   :  { %2830 = vmatprep.subr.bf16.mxu0 %v3968_v44 }
 0x294   :  { %2831 = vmatpush1.bf16.msra.mxu0 %v3966_v3 }
 0x295   :  { %2832 = vmatprep.subr.bf16.mxu0 %v3971_v5 }
 0x298   :  { %2833 = vmatpush1.bf16.msra.mxu0 %v3969_v38 }
 0x29b   :  { %2835 = vmatmul.mubr.bf16.vlgmr.msra.gmra.mrb[4].mxu0 %v2375_v33 }
 0x36e   :  { %v2836_v53 = vpop.f32.mrb[4].mxu0 }
 0x36f   :  { %v2845_v9 = vsel %vm2165_vm9, %v2836_v53, 0.0  ;;  %v2861_v56 = vmul.f32 %v2836_v53, %v2836_v53  ;;  %v2838_v60 = vpop.f32.mrb[5].mxu0 }
 0x370   :  { %v2846_v62 = vrot.slane %v2845_v9, 4  ;;  %v2852_v63 = vsel %vm2165_vm9, %v2838_v60, 0.0  ;;  %v2862_v0 = vmul.f32 %v2838_v60, %v2838_v60  ;;  %v2840_v44 = vpop.f32.mrb[6].mxu0 }
 0x371   :  { %v2863_v3 = vsel %vm2165_vm9, %v2861_v56, 0.0  ;;  %v2853_v5 = vrot.slane %v2852_v63, 4  ;;  %v2841_v38 = vpop.f32.mrb[7].mxu0 }
 0x372   :  { %v2847_v21 = vadd.f32 %v2846_v62, %v2845_v9  ;;  %v2864_v33 = vrot.slane %v2863_v3, 4  ;;  %v2870_v34 = vsel %vm2165_vm9, %v2862_v0, 0.0  ;;  %v2844_v9 = vld [vmem:[%s5402_s9] sm:$0x3] }
 0x373   :  { %v2854_v7 = vadd.f32 %v2853_v5, %v2852_v63  ;;  %v2871_v10 = vrot.slane %v2870_v34, 4  ;;  %v3391_v38 = vld [vmem:[%s5403_s11] ss:$0 sm:$0xff] }
 0x374   :  { %v2848_v11 = vrot.slane %v2847_v21, 2  ;;  %v2865_v8 = vadd.f32 %v2864_v33, %v2863_v3 }
 0x375   :  { %v2855_v1 = vrot.slane %v2854_v7, 2  ;;  %v2872_v18 = vadd.f32 %v2871_v10, %v2870_v34 }
 0x376   :  { %v2849_v15 = vadd.f32 %v2848_v11, %v2847_v21  ;;  %v2866_v19 = vrot.slane %v2865_v8, 2 }
 0x377   :  { %v2856_v20 = vadd.f32 %v2855_v1, %v2854_v7  ;;  %v2873_v57 = vrot.slane %v2872_v18, 2 }
 0x378   :  { %v2850_v16 = vrot.slane %v2849_v15, 1  ;;  %v2867_v29 = vadd.f32 %v2866_v19, %v2865_v8 }
 0x379   :  { %v2857_v13 = vrot.slane %v2856_v20, 1  ;;  %v2874_v17 = vadd.f32 %v2873_v57, %v2872_v18 }
 0x37a   :  { %v2851_v27 = vadd.f32 %v2850_v16, %v2849_v15  ;;  %v2868_v49 = vrot.slane %v2867_v29, 1 }
 0x37b   :  { %v2858_v6 = vadd.f32 %v2857_v13, %v2856_v20  ;;  %v2875_v22 = vrot.slane %v2874_v17, 1 }
 0x37c   :  { %v2859_v59 = vmul.f32 0.5, %v2851_v27  ;;  %v2869_v23 = vadd.f32 %v2868_v49, %v2867_v29 }
 0x37d   :  { %v2860_v36 = vmul.f32 0.5, %v2858_v6  ;;  %v2876_v48 = vadd.f32 %v2875_v22, %v2874_v17 }
 0x37e   :  { %v2877_v24 = vmul.f32 0.5, %v2869_v23  ;;  %v2879_v25 = vmul.f32 %v2859_v59, %v2859_v59 }
 0x37f   :  { %v2878_v26 = vmul.f32 0.5, %v2876_v48  ;;  %v2880_v28 = vmul.f32 %v2860_v36, %v2860_v36 }
 0x380   :  { %v2881_v30 = vsub.f32 %v2877_v24, %v2879_v25 }
 0x381   :  { %v2882_v54 = vsub.f32 %v2878_v26, %v2880_v28 }
 0x382   :  { %v2883_v55 = vmax.f32 %v2881_v30, 0.0 }
 0x383   :  { %v2884_v31 = vmax.f32 %v2882_v54, 0.0 }
 0x384   :  { %v2885_v32 = vadd.f32 1e-05, %v2883_v55 }
 0x385   :  { %v2886_v61 = vadd.f32 1e-05, %v2884_v31 }
 0x386   :  { %3980 = vrsqrt.f32 %v2885_v32 }
 0x387   :  { %3982 = vrsqrt.f32 %v2886_v61 }
 0x390   :  { %v3981_v14 = vpop.eup %3980 }
 0x391   :  { %v3983_v35 = vpop.eup %3982 }
 0x392   :  { %v2891_v37 = vcombine.low %v3981_v14, %v3983_v35 }
 0x394   :  { %v2898_v51 = vrot.slane %v2891_v37, %v5145_v46 }
 0x396   :  { %v2905_v12 = vrot.slane %v2898_v51, %v5145_v46 }
 0x398   :  { %v2907_v39 = vmul.f32 %v2905_v12, %v2843_v2 }
 0x39a   :  { %v2912_v40 = vrot.slane %v2907_v39, %v4196_v52  ;;  %v2916_v41 = vrot.slane %v2907_v39, %v4190_v50 }
 0x39c   :  { %v2920_v4 = vmul.f32 %v2916_v41, %v2838_v60  ;;  %v2921_v42 = vmul.f32 %v2912_v40, %v2859_v59  ;;  %v2922_v43 = vmul.f32 %v2916_v41, %v2860_v36  ;;  %v2919_v58 = vmul.f32 %v2912_v40, %v2836_v53 }
 0x39e   :  { %v2925_v45 = vcombine.low %v2921_v42, %v2922_v43 }
 0x3a0   :  { %v2932_v47 = vrot.slane %v2925_v45, %v5145_v46 }
 0x3a2   :  { %v2939_v56 = vrot.slane %v2932_v47, %v5145_v46 }
 0x3a4   :  { %v2941_v62 = vsub.f32 %v2844_v9, %v2939_v56 }
 0x3a6   :  { %v2950_v63 = vrot.slane %v2941_v62, %v4190_v50  ;;  %v2946_v0 = vrot.slane %v2941_v62, %v4196_v52 }
 0x3a8   :  { %v2954_v44 = vadd.f32 %v2950_v63, %v2920_v4  ;;  %v2953_v3 = vadd.f32 %v2946_v0, %v2919_v58 }
 0x3aa   :  { %v2956_v60 = vmax.f32 %v2954_v44, 0.0  ;;  %v2955_v5 = vmax.f32 %v2953_v3, 0.0 }
 0x3ac   :  { %3060 = vmatprep.mubr.f32.mxu1 %v2956_v60 }
 0x3ad   :  { %3061 = vmatmul.mubr.f32.vlgmr.msra.gmra.mrb[8].mxu1 %v2955_v5 }
 0x480   :  { %v3424_v53 = vpop.f32.mrb[8].mxu1 }
 0x481   :  { %v3425_v21 = vpop.f32.mrb[9].mxu1 }
 0x482   :  { %v3426_v33 = vadd.f32 %v3425_v21, %v3424_v53 }
 0x484   :  { %v3063_v34 = vadd.f32 %v3426_v33, %v3391_v38 }
 0x486   :  { %3066 = vst [vmem:[%s5404_s12] sm:$0x3] %v3063_v34 }

</bundles_post_ra>
